<compile_context>
chip_gen: v6e
topology: v6e:2x2x1
jax: 0.10.0
libtpu: 0.0.40
codegen_flags: <defaults>
</compile_context>

<pallas_src>
import numpy as np
import jax
import jax.numpy as jnp
from jax.experimental import pallas as pl
from jax.experimental.pallas import tpu as pltpu

INPUT_SIZE = 1
HIDDEN = 32          # small demo size (PyTorch default is 128; math is identical)
NUM_LAYERS = 3
OUTPUT = 3
B, T = 2, 8

GP = 4 * HIDDEN      # 128: all four gates (i,f,g,o) packed into one 128-lane group
BP = 8               # batch rows padded to one sublane tile (rows 0:B real)
NDIR = 2 * NUM_LAYERS


# ----------------------------- fused Pallas kernel ------------------------------

def _fused_bilstm_kernel(x_ref, wih_ref, whh_ref, b_ref, fcw_ref, fcb_ref,
                         out_ref, yf_ref, yb_ref, gxf_ref, gxb_ref):
    """Entire BiLSTM forward + final FC in one kernel invocation.

    x_ref   : (T*BP, H)   f32  time-major input, row t*BP+b, lane 0 = real feature
    wih_ref : (NDIR,2,H,GP) bf16  input->gates weights, part 0 = fwd half / layer-0 x,
                                  part 1 = bwd half of the previous layer's output
    whh_ref : (NDIR,H,GP) bf16  hidden->gates weights (gate-packed)
    b_ref   : (NDIR,1,GP) f32   b_ih + b_hh (gate-packed)
    fcw_ref : (2,H,GP)    bf16  FC weights (part 0: fwd hidden, part 1: bwd hidden)
    fcb_ref : (1,GP)      f32   FC bias (lanes 0:OUTPUT real)
    out_ref : (BP,GP)     f32   rows 0:B, lanes 0:OUTPUT are the real logits
    yf/yb   : (T*BP,H)    f32   current layer's fwd / bwd hidden sequence (scratch)
    gxf/gxb : (T*BP,GP)   f32   hoisted input projections for both directions (scratch)
    """
    bf16 = jnp.bfloat16
    f32 = jnp.float32

    # lane mask selecting the g-gate (tanh) lanes; hoisted once (constant).
    lane = jax.lax.broadcasted_iota(jnp.int32, (BP, GP), 1)
    g_mask = (lane >= 2 * HIDDEN) & (lane < 3 * HIDDEN)

    def lstm_cell(gates, c):
        # sigmoid(x) = 0.5*tanh(0.5*x)+0.5  -> one full-width EUP tanh per step.
        pre = jnp.where(g_mask, gates, 0.5 * gates)
        th = jnp.tanh(pre)
        act = jnp.where(g_mask, th, 0.5 * th + 0.5)      # [sig(i)|sig(f)|tanh(g)|sig(o)]
        i_g = act[:, 0 * HIDDEN:1 * HIDDEN]
        f_g = act[:, 1 * HIDDEN:2 * HIDDEN]
        g_g = act[:, 2 * HIDDEN:3 * HIDDEN]
        o_g = act[:, 3 * HIDDEN:4 * HIDDEN]
        c_new = f_g * c + i_g * g_g
        h_new = o_g * jnp.tanh(c_new)
        return h_new, c_new

    h_fc_f = None
    h_fc_b = None

    for layer in range(NUM_LAYERS):
        last = layer == NUM_LAYERS - 1
        idx_f = 2 * layer
        idx_b = 2 * layer + 1

        # ---- hoisted input projection for both directions (off the serial path) ----
        if layer == 0:
            xin = x_ref[...].astype(bf16)
            gxf_ref[...] = (jnp.dot(xin, wih_ref[idx_f, 0],
                                    preferred_element_type=f32) + b_ref[idx_f])
            gxb_ref[...] = (jnp.dot(xin, wih_ref[idx_b, 0],
                                    preferred_element_type=f32) + b_ref[idx_b])
        else:
            af = yf_ref[...].astype(bf16)          # previous layer fwd hiddens (T*BP, H)
            ab = yb_ref[...].astype(bf16)          # previous layer bwd hiddens (T*BP, H)
            gxf_ref[...] = (jnp.dot(af, wih_ref[idx_f, 0], preferred_element_type=f32)
                            + jnp.dot(ab, wih_ref[idx_f, 1], preferred_element_type=f32)
                            + b_ref[idx_f])
            if last:
                # Only row block t = T-1 of the bwd projection is ever consumed.
                r0 = (T - 1) * BP
                af_l = yf_ref[pl.ds(r0, BP), :].astype(bf16)
                ab_l = yb_ref[pl.ds(r0, BP), :].astype(bf16)
                gxb_ref[pl.ds(r0, BP), :] = (
                    jnp.dot(af_l, wih_ref[idx_b, 0], preferred_element_type=f32)
                    + jnp.dot(ab_l, wih_ref[idx_b, 1], preferred_element_type=f32)
                    + b_ref[idx_b])
            else:
                gxb_ref[...] = (jnp.dot(af, wih_ref[idx_b, 0], preferred_element_type=f32)
                                + jnp.dot(ab, wih_ref[idx_b, 1], preferred_element_type=f32)
                                + b_ref[idx_b])

        # ---- recurrent weights hoisted out of the step loop ----
        whh_f = whh_ref[idx_f]                     # (H, GP) bf16
        whh_b = whh_ref[idx_b]

        # ---- interleaved fwd/bwd recurrence (statically unrolled, T is tiny) ----
        h_f = jnp.zeros((BP, HIDDEN), f32)
        c_f = jnp.zeros((BP, HIDDEN), f32)
        h_b = jnp.zeros((BP, HIDDEN), f32)
        c_b = jnp.zeros((BP, HIDDEN), f32)

        for s in range(T):
            tf = s
            tb = T - 1 - s
            # Last layer's backward direction only needs its first step (t = T-1).
            do_b = not (last and s > 0)

            g_f = gxf_ref[pl.ds(tf * BP, BP), :]
            if s > 0:  # initial hidden state is zero -> skip the first h@W_hh
                g_f = g_f + jnp.dot(h_f.astype(bf16), whh_f, preferred_element_type=f32)
            if do_b:
                g_b = gxb_ref[pl.ds(tb * BP, BP), :]
                if s > 0:
                    g_b = g_b + jnp.dot(h_b.astype(bf16), whh_b,
                                        preferred_element_type=f32)

            h_f, c_f = lstm_cell(g_f, c_f)
            if do_b:
                h_b, c_b = lstm_cell(g_b, c_b)

            if not last:   # last layer's per-step outputs are never consumed
                yf_ref[pl.ds(tf * BP, BP), :] = h_f
                yb_ref[pl.ds(tb * BP, BP), :] = h_b
            else:
                if s == 0:
                    h_fc_b = h_b           # bwd hidden at position T-1
                if s == T - 1:
                    h_fc_f = h_f           # fwd hidden at position T-1

    # ---- fused final Linear(2H -> OUTPUT); dropout is identity in eval mode ----
    out_ref[...] = (
        jnp.dot(h_fc_f.astype(bf16), fcw_ref[0], preferred_element_type=f32)
        + jnp.dot(h_fc_b.astype(bf16), fcw_ref[1], preferred_element_type=f32)
        + fcb_ref[...])


# ----------------------------- weight packing (one-time, host side) -------------

def pack_params(lstm_params, fc_w, fc_b):
    """Re-layout PyTorch-style LSTM/FC weights into the gate-packed bf16 form."""
    wih = np.zeros((NDIR, 2, HIDDEN, GP), np.float32)
    whh = np.zeros((NDIR, HIDDEN, GP), np.float32)
    bias = np.zeros((NDIR, 1, GP), np.float32)
    for layer in range(NUM_LAYERS):
        for d in range(2):
            idx = 2 * layer + d
            p = lstm_params[layer][d]
            w_ih = np.asarray(p["w_ih"])                 # (4H, D_in)
            w_hh = np.asarray(p["w_hh"])                 # (4H, H)
            bb = np.asarray(p["b_ih"]) + np.asarray(p["b_hh"])
            for g in range(4):
                rows = slice(g * HIDDEN, (g + 1) * HIDDEN)
                cols = slice(g * HIDDEN, (g + 1) * HIDDEN)   # GP = 4H exactly
                whh[idx, :, cols] = w_hh[rows].T
                bias[idx, 0, cols] = bb[rows]
                if layer == 0:
                    wih[idx, 0, :INPUT_SIZE, cols] = w_ih[rows].T
                else:
                    wih[idx, 0, :, cols] = w_ih[rows, :HIDDEN].T   # fwd half
                    wih[idx, 1, :, cols] = w_ih[rows, HIDDEN:].T   # bwd half
    fcw = np.zeros((2, HIDDEN, GP), np.float32)
    fcb = np.zeros((1, GP), np.float32)
    fw = np.asarray(fc_w)                                # (OUTPUT, 2H)
    fcw[0, :, :OUTPUT] = fw[:, :HIDDEN].T
    fcw[1, :, :OUTPUT] = fw[:, HIDDEN:].T
    fcb[0, :OUTPUT] = np.asarray(fc_b)
    return dict(wih=jnp.asarray(wih, jnp.bfloat16),
                whh=jnp.asarray(whh, jnp.bfloat16),
                b=jnp.asarray(bias, jnp.float32),
                fcw=jnp.asarray(fcw, jnp.bfloat16),
                fcb=jnp.asarray(fcb, jnp.float32))


# ----------------------------- forward wrapper ----------------------------------

@jax.jit
def bilstm_forward(x, packed):
    """x: (B, T, input_size) batch_first, like the PyTorch module. -> (B, OUTPUT)."""
    xt = jnp.transpose(x, (1, 0, 2))                                   # (T, B, 1) time-major
    xt = jnp.pad(xt, ((0, 0), (0, BP - B), (0, HIDDEN - INPUT_SIZE)))  # (T, BP, H)
    x_p = xt.reshape(T * BP, HIDDEN)

    out = pl.pallas_call(
        _fused_bilstm_kernel,
        out_shape=jax.ShapeDtypeStruct((BP, GP), jnp.float32),
        scratch_shapes=[
            pltpu.VMEM((T * BP, HIDDEN), jnp.float32),   # current layer fwd hiddens
            pltpu.VMEM((T * BP, HIDDEN), jnp.float32),   # current layer bwd hiddens
            pltpu.VMEM((T * BP, GP), jnp.float32),       # hoisted input projection, fwd
            pltpu.VMEM((T * BP, GP), jnp.float32),       # hoisted input projection, bwd
        ],
    )(x_p, packed["wih"], packed["whh"], packed["b"], packed["fcw"], packed["fcb"])
    return out[:B, :OUTPUT]


# ----------------------------- params + pure-JAX reference ----------------------

def init_params(key):
    k = 1.0 / np.sqrt(HIDDEN)
    lstm = []
    for layer in range(NUM_LAYERS):
        d_in = INPUT_SIZE if layer == 0 else 2 * HIDDEN
        dirs = []
        for _ in range(2):
            key, k1, k2, k3, k4 = jax.random.split(key, 5)
            dirs.append(dict(
                w_ih=jax.random.uniform(k1, (4 * HIDDEN, d_in), jnp.float32, -k, k),
                w_hh=jax.random.uniform(k2, (4 * HIDDEN, HIDDEN), jnp.float32, -k, k),
                b_ih=jax.random.uniform(k3, (4 * HIDDEN,), jnp.float32, -k, k),
                b_hh=jax.random.uniform(k4, (4 * HIDDEN,), jnp.float32, -k, k),
            ))
        lstm.append(dirs)
    kf = 1.0 / np.sqrt(2 * HIDDEN)
    key, k1, k2 = jax.random.split(key, 3)
    fc_w = jax.random.uniform(k1, (OUTPUT, 2 * HIDDEN), jnp.float32, -kf, kf)
    fc_b = jax.random.uniform(k2, (OUTPUT,), jnp.float32, -kf, kf)
    return lstm, fc_w, fc_b


def ref_forward(x, lstm_params, fc_w, fc_b):
    """Pure-JAX f32 reference mirroring torch.nn.LSTM(bidirectional) + Linear (eval)."""
    h = x
    for layer in lstm_params:
        outs = []
        for d, p in enumerate(layer):
            seq = h if d == 0 else h[:, ::-1]

            def step(carry, xt, p=p):
                hh, cc = carry
                gates = xt @ p["w_ih"].T + hh @ p["w_hh"].T + p["b_ih"] + p["b_hh"]
                i, f, g, o = jnp.split(gates, 4, axis=-1)
                cc = jax.nn.sigmoid(f) * cc + jax.nn.sigmoid(i) * jnp.tanh(g)
                hh = jax.nn.sigmoid(o) * jnp.tanh(cc)
                return (hh, cc), hh

            init = (jnp.zeros((x.shape[0], HIDDEN), jnp.float32),
                    jnp.zeros((x.shape[0], HIDDEN), jnp.float32))
            _, ys = jax.lax.scan(step, init, jnp.transpose(seq, (1, 0, 2)))
            ys = jnp.transpose(ys, (1, 0, 2))
            if d == 1:
                ys = ys[:, ::-1]
            outs.append(ys)
        h = jnp.concatenate(outs, axis=-1)
    return h[:, -1, :] @ fc_w.T + fc_b


if __name__ == "__main__":
    key = jax.random.PRNGKey(0)
    key, xkey = jax.random.split(key)
    x = jax.random.normal(xkey, (B, T, INPUT_SIZE), jnp.float32)
    lstm_params, fc_w, fc_b = init_params(key)
    packed = pack_params(lstm_params, fc_w, fc_b)

    out = bilstm_forward(x, packed)
    out = jax.block_until_ready(out)

    ref = ref_forward(x, lstm_params, fc_w, fc_b)
    # Tolerance widened slightly vs. the pure-f32 version because MXU operands are bf16.
    np.testing.assert_allclose(np.asarray(out), np.asarray(ref), rtol=2e-2, atol=2e-2)
    assert out.shape == (B, OUTPUT)
    print("KERNEL_OK")
</pallas_src>

<mosaic_0001>
module attributes {stable_mosaic.version = 11 : i64} {
  func.func @_fused_bilstm_kernel(%arg0: memref<64x32xf32, #tpu.memory_space<vmem>>, %arg1: memref<6x2x32x128xbf16, #tpu.memory_space<vmem>>, %arg2: memref<6x32x128xbf16, #tpu.memory_space<vmem>>, %arg3: memref<6x1x128xf32, #tpu.memory_space<vmem>>, %arg4: memref<2x32x128xbf16, #tpu.memory_space<vmem>>, %arg5: memref<1x128xf32, #tpu.memory_space<vmem>>, %arg6: memref<8x128xf32, #tpu.memory_space<vmem>>, %arg7: memref<64x32xf32, #tpu.memory_space<vmem>>, %arg8: memref<64x32xf32, #tpu.memory_space<vmem>>, %arg9: memref<64x128xf32, #tpu.memory_space<vmem>>, %arg10: memref<64x128xf32, #tpu.memory_space<vmem>>) attributes {dimension_semantics = [], scalar_prefetch = 0 : i64, scratch_operands = 4 : i64, tpu.core_type = #tpu.core_type<tc>} {
    %0 = tpu.iota {dimensions = array<i32: 1>} : vector<8x128xi32>
    %c64_i32 = arith.constant 64 : i32
    %1 = vector.broadcast %c64_i32 : i32 to vector<8x128xi32>
    %2 = arith.cmpi sge, %0, %1 : vector<8x128xi32>
    %c96_i32 = arith.constant 96 : i32
    %3 = vector.broadcast %c96_i32 : i32 to vector<8x128xi32>
    %4 = arith.cmpi slt, %0, %3 : vector<8x128xi32>
    %5 = arith.andi %2, %4 : vector<8x128xi1>
    %c0 = arith.constant 0 : index
    %c0_0 = arith.constant 0 : index
    %6 = vector.load %arg0[%c0, %c0_0] : memref<64x32xf32, #tpu.memory_space<vmem>>, vector<64x32xf32>
    %7 = arith.truncf %6 : vector<64x32xf32> to vector<64x32xbf16>
    %c0_1 = arith.constant 0 : index
    %c0_2 = arith.constant 0 : index
    %c0_3 = arith.constant 0 : index
    %c0_4 = arith.constant 0 : index
    %8 = vector.load %arg1[%c0_1, %c0_2, %c0_3, %c0_4] : memref<6x2x32x128xbf16, #tpu.memory_space<vmem>>, vector<1x1x32x128xbf16>
    %9 = vector.shape_cast %8 : vector<1x1x32x128xbf16> to vector<32x128xbf16>
    %cst = arith.constant dense<0.000000e+00> : vector<64x128xf32>
    %10 = tpu.matmul %7, %9, %cst {dimension_numbers = #tpu.dot_dimension_numbers<[1], [0], [0], [1], [0, 0, 1, 1], [], []>} : vector<64x32xbf16>, vector<32x128xbf16>, vector<64x128xf32> -> vector<64x128xf32>
    %c0_5 = arith.constant 0 : index
    %c0_6 = arith.constant 0 : index
    %c0_7 = arith.constant 0 : index
    %11 = vector.load %arg3[%c0_5, %c0_6, %c0_7] : memref<6x1x128xf32, #tpu.memory_space<vmem>>, vector<1x1x128xf32>
    %12 = vector.shape_cast %11 : vector<1x1x128xf32> to vector<1x128xf32>
    %13 = vector.broadcast %12 : vector<1x128xf32> to vector<64x128xf32>
    %14 = arith.addf %10, %13 : vector<64x128xf32>
    %c0_8 = arith.constant 0 : index
    %c0_9 = arith.constant 0 : index
    %15 = vector.load %arg9[%c0_8, %c0_9] : memref<64x128xf32, #tpu.memory_space<vmem>>, vector<64x128xf32>
    tpu.vector_store %arg9[%c0_8, %c0_9], %14 {strides = array<i32>} : memref<64x128xf32, #tpu.memory_space<vmem>>, vector<64x128xf32>,
    %c1 = arith.constant 1 : index
    %c0_10 = arith.constant 0 : index
    %c0_11 = arith.constant 0 : index
    %c0_12 = arith.constant 0 : index
    %16 = vector.load %arg1[%c1, %c0_10, %c0_11, %c0_12] : memref<6x2x32x128xbf16, #tpu.memory_space<vmem>>, vector<1x1x32x128xbf16>
    %17 = vector.shape_cast %16 : vector<1x1x32x128xbf16> to vector<32x128xbf16>
    %cst_13 = arith.constant dense<0.000000e+00> : vector<64x128xf32>
    %18 = tpu.matmul %7, %17, %cst_13 {dimension_numbers = #tpu.dot_dimension_numbers<[1], [0], [0], [1], [0, 0, 1, 1], [], []>} : vector<64x32xbf16>, vector<32x128xbf16>, vector<64x128xf32> -> vector<64x128xf32>
    %c1_14 = arith.constant 1 : index
    %c0_15 = arith.constant 0 : index
    %c0_16 = arith.constant 0 : index
    %19 = vector.load %arg3[%c1_14, %c0_15, %c0_16] : memref<6x1x128xf32, #tpu.memory_space<vmem>>, vector<1x1x128xf32>
    %20 = vector.shape_cast %19 : vector<1x1x128xf32> to vector<1x128xf32>
    %21 = vector.broadcast %20 : vector<1x128xf32> to vector<64x128xf32>
    %22 = arith.addf %18, %21 : vector<64x128xf32>
    %c0_17 = arith.constant 0 : index
    %c0_18 = arith.constant 0 : index
    %23 = vector.load %arg10[%c0_17, %c0_18] : memref<64x128xf32, #tpu.memory_space<vmem>>, vector<64x128xf32>
    tpu.vector_store %arg10[%c0_17, %c0_18], %22 {strides = array<i32>} : memref<64x128xf32, #tpu.memory_space<vmem>>, vector<64x128xf32>,
    %c0_19 = arith.constant 0 : index
    %c0_20 = arith.constant 0 : index
    %c0_21 = arith.constant 0 : index
    %24 = vector.load %arg2[%c0_19, %c0_20, %c0_21] : memref<6x32x128xbf16, #tpu.memory_space<vmem>>, vector<1x32x128xbf16>
    %25 = vector.shape_cast %24 : vector<1x32x128xbf16> to vector<32x128xbf16>
    %c1_22 = arith.constant 1 : index
    %c0_23 = arith.constant 0 : index
    %c0_24 = arith.constant 0 : index
    %26 = vector.load %arg2[%c1_22, %c0_23, %c0_24] : memref<6x32x128xbf16, #tpu.memory_space<vmem>>, vector<1x32x128xbf16>
    %27 = vector.shape_cast %26 : vector<1x32x128xbf16> to vector<32x128xbf16>
    %cst_25 = arith.constant 0.000000e+00 : f32
    %28 = vector.broadcast %cst_25 : f32 to vector<8x32xf32>
    %cst_26 = arith.constant 0.000000e+00 : f32
    %29 = vector.broadcast %cst_26 : f32 to vector<8x32xf32>
    %c0_27 = arith.constant 0 : index
    %c0_28 = arith.constant 0 : index
    %30 = vector.load %arg9[%c0_27, %c0_28] : memref<64x128xf32, #tpu.memory_space<vmem>>, vector<8x128xf32>
    %c56 = arith.constant 56 : index
    %c0_29 = arith.constant 0 : index
    %31 = vector.load %arg10[%c56, %c0_29] : memref<64x128xf32, #tpu.memory_space<vmem>>, vector<8x128xf32>
    %cst_30 = arith.constant 5.000000e-01 : f32
    %32 = vector.broadcast %cst_30 : f32 to vector<8x128xf32>
    %33 = arith.mulf %32, %30 : vector<8x128xf32>
    %34 = arith.select %5, %30, %33 : vector<8x128xi1>, vector<8x128xf32>
    %35 = math.tanh %34 : vector<8x128xf32>
    %cst_31 = arith.constant 5.000000e-01 : f32
    %36 = vector.broadcast %cst_31 : f32 to vector<8x128xf32>
    %37 = arith.mulf %36, %35 : vector<8x128xf32>
    %cst_32 = arith.constant 5.000000e-01 : f32
    %38 = vector.broadcast %cst_32 : f32 to vector<8x128xf32>
    %39 = arith.addf %37, %38 : vector<8x128xf32>
    %40 = arith.select %5, %35, %39 : vector<8x128xi1>, vector<8x128xf32>
    %41 = vector.extract_strided_slice %40 {offsets = [0, 0], sizes = [8, 32], strides = [1, 1]} : vector<8x128xf32> to vector<8x32xf32>
    %42 = vector.extract_strided_slice %40 {offsets = [0, 32], sizes = [8, 32], strides = [1, 1]} : vector<8x128xf32> to vector<8x32xf32>
    %43 = vector.extract_strided_slice %40 {offsets = [0, 64], sizes = [8, 32], strides = [1, 1]} : vector<8x128xf32> to vector<8x32xf32>
    %44 = vector.extract_strided_slice %40 {offsets = [0, 96], sizes = [8, 32], strides = [1, 1]} : vector<8x128xf32> to vector<8x32xf32>
    %45 = arith.mulf %42, %28 : vector<8x32xf32>
    %46 = arith.mulf %41, %43 : vector<8x32xf32>
    %47 = arith.addf %45, %46 : vector<8x32xf32>
    %48 = math.tanh %47 : vector<8x32xf32>
    %49 = arith.mulf %44, %48 : vector<8x32xf32>
    %cst_33 = arith.constant 5.000000e-01 : f32
    %50 = vector.broadcast %cst_33 : f32 to vector<8x128xf32>
    %51 = arith.mulf %50, %31 : vector<8x128xf32>
    %52 = arith.select %5, %31, %51 : vector<8x128xi1>, vector<8x128xf32>
    %53 = math.tanh %52 : vector<8x128xf32>
    %cst_34 = arith.constant 5.000000e-01 : f32
    %54 = vector.broadcast %cst_34 : f32 to vector<8x128xf32>
    %55 = arith.mulf %54, %53 : vector<8x128xf32>
    %cst_35 = arith.constant 5.000000e-01 : f32
    %56 = vector.broadcast %cst_35 : f32 to vector<8x128xf32>
    %57 = arith.addf %55, %56 : vector<8x128xf32>
    %58 = arith.select %5, %53, %57 : vector<8x128xi1>, vector<8x128xf32>
    %59 = vector.extract_strided_slice %58 {offsets = [0, 0], sizes = [8, 32], strides = [1, 1]} : vector<8x128xf32> to vector<8x32xf32>
    %60 = vector.extract_strided_slice %58 {offsets = [0, 32], sizes = [8, 32], strides = [1, 1]} : vector<8x128xf32> to vector<8x32xf32>
    %61 = vector.extract_strided_slice %58 {offsets = [0, 64], sizes = [8, 32], strides = [1, 1]} : vector<8x128xf32> to vector<8x32xf32>
    %62 = vector.extract_strided_slice %58 {offsets = [0, 96], sizes = [8, 32], strides = [1, 1]} : vector<8x128xf32> to vector<8x32xf32>
    %63 = arith.mulf %60, %29 : vector<8x32xf32>
    %64 = arith.mulf %59, %61 : vector<8x32xf32>
    %65 = arith.addf %63, %64 : vector<8x32xf32>
    %66 = math.tanh %65 : vector<8x32xf32>
    %67 = arith.mulf %62, %66 : vector<8x32xf32>
    %c0_36 = arith.constant 0 : index
    %c0_37 = arith.constant 0 : index
    %68 = vector.load %arg7[%c0_36, %c0_37] : memref<64x32xf32, #tpu.memory_space<vmem>>, vector<8x32xf32>
    tpu.vector_store %arg7[%c0_36, %c0_37], %49 {strides = array<i32>} : memref<64x32xf32, #tpu.memory_space<vmem>>, vector<8x32xf32>,
    %c56_38 = arith.constant 56 : index
    %c0_39 = arith.constant 0 : index
    %69 = vector.load %arg8[%c56_38, %c0_39] : memref<64x32xf32, #tpu.memory_space<vmem>>, vector<8x32xf32>
    tpu.vector_store %arg8[%c56_38, %c0_39], %67 {strides = array<i32>} : memref<64x32xf32, #tpu.memory_space<vmem>>, vector<8x32xf32>,
    %c8 = arith.constant 8 : index
    %c0_40 = arith.constant 0 : index
    %70 = vector.load %arg9[%c8, %c0_40] : memref<64x128xf32, #tpu.memory_space<vmem>>, vector<8x128xf32>
    %71 = arith.truncf %49 : vector<8x32xf32> to vector<8x32xbf16>
    %cst_41 = arith.constant dense<0.000000e+00> : vector<8x128xf32>
    %72 = tpu.matmul %71, %25, %cst_41 {dimension_numbers = #tpu.dot_dimension_numbers<[1], [0], [0], [1], [0, 0, 1, 1], [], []>} : vector<8x32xbf16>, vector<32x128xbf16>, vector<8x128xf32> -> vector<8x128xf32>
    %73 = arith.addf %70, %72 : vector<8x128xf32>
    %c48 = arith.constant 48 : index
    %c0_42 = arith.constant 0 : index
    %74 = vector.load %arg10[%c48, %c0_42] : memref<64x128xf32, #tpu.memory_space<vmem>>, vector<8x128xf32>
    %75 = arith.truncf %67 : vector<8x32xf32> to vector<8x32xbf16>
    %cst_43 = arith.constant dense<0.000000e+00> : vector<8x128xf32>
    %76 = tpu.matmul %75, %27, %cst_43 {dimension_numbers = #tpu.dot_dimension_numbers<[1], [0], [0], [1], [0, 0, 1, 1], [], []>} : vector<8x32xbf16>, vector<32x128xbf16>, vector<8x128xf32> -> vector<8x128xf32>
    %77 = arith.addf %74, %76 : vector<8x128xf32>
    %cst_44 = arith.constant 5.000000e-01 : f32
    %78 = vector.broadcast %cst_44 : f32 to vector<8x128xf32>
    %79 = arith.mulf %78, %73 : vector<8x128xf32>
    %80 = arith.select %5, %73, %79 : vector<8x128xi1>, vector<8x128xf32>
    %81 = math.tanh %80 : vector<8x128xf32>
    %cst_45 = arith.constant 5.000000e-01 : f32
    %82 = vector.broadcast %cst_45 : f32 to vector<8x128xf32>
    %83 = arith.mulf %82, %81 : vector<8x128xf32>
    %cst_46 = arith.constant 5.000000e-01 : f32
    %84 = vector.broadcast %cst_46 : f32 to vector<8x128xf32>
    %85 = arith.addf %83, %84 : vector<8x128xf32>
    %86 = arith.select %5, %81, %85 : vector<8x128xi1>, vector<8x128xf32>
    %87 = vector.extract_strided_slice %86 {offsets = [0, 0], sizes = [8, 32], strides = [1, 1]} : vector<8x128xf32> to vector<8x32xf32>
    %88 = vector.extract_strided_slice %86 {offsets = [0, 32], sizes = [8, 32], strides = [1, 1]} : vector<8x128xf32> to vector<8x32xf32>
    %89 = vector.extract_strided_slice %86 {offsets = [0, 64], sizes = [8, 32], strides = [1, 1]} : vector<8x128xf32> to vector<8x32xf32>
    %90 = vector.extract_strided_slice %86 {offsets = [0, 96], sizes = [8, 32], strides = [1, 1]} : vector<8x128xf32> to vector<8x32xf32>
    %91 = arith.mulf %88, %47 : vector<8x32xf32>
    %92 = arith.mulf %87, %89 : vector<8x32xf32>
    %93 = arith.addf %91, %92 : vector<8x32xf32>
    %94 = math.tanh %93 : vector<8x32xf32>
    %95 = arith.mulf %90, %94 : vector<8x32xf32>
    %cst_47 = arith.constant 5.000000e-01 : f32
    %96 = vector.broadcast %cst_47 : f32 to vector<8x128xf32>
    %97 = arith.mulf %96, %77 : vector<8x128xf32>
    %98 = arith.select %5, %77, %97 : vector<8x128xi1>, vector<8x128xf32>
    %99 = math.tanh %98 : vector<8x128xf32>
    %cst_48 = arith.constant 5.000000e-01 : f32
    %100 = vector.broadcast %cst_48 : f32 to vector<8x128xf32>
    %101 = arith.mulf %100, %99 : vector<8x128xf32>
    %cst_49 = arith.constant 5.000000e-01 : f32
    %102 = vector.broadcast %cst_49 : f32 to vector<8x128xf32>
    %103 = arith.addf %101, %102 : vector<8x128xf32>
    %104 = arith.select %5, %99, %103 : vector<8x128xi1>, vector<8x128xf32>
    %105 = vector.extract_strided_slice %104 {offsets = [0, 0], sizes = [8, 32], strides = [1, 1]} : vector<8x128xf32> to vector<8x32xf32>
    %106 = vector.extract_strided_slice %104 {offsets = [0, 32], sizes = [8, 32], strides = [1, 1]} : vector<8x128xf32> to vector<8x32xf32>
    %107 = vector.extract_strided_slice %104 {offsets = [0, 64], sizes = [8, 32], strides = [1, 1]} : vector<8x128xf32> to vector<8x32xf32>
    %108 = vector.extract_strided_slice %104 {offsets = [0, 96], sizes = [8, 32], strides = [1, 1]} : vector<8x128xf32> to vector<8x32xf32>
    %109 = arith.mulf %106, %65 : vector<8x32xf32>
    %110 = arith.mulf %105, %107 : vector<8x32xf32>
    %111 = arith.addf %109, %110 : vector<8x32xf32>
    %112 = math.tanh %111 : vector<8x32xf32>
    %113 = arith.mulf %108, %112 : vector<8x32xf32>
    %c8_50 = arith.constant 8 : index
    %c0_51 = arith.constant 0 : index
    %114 = vector.load %arg7[%c8_50, %c0_51] : memref<64x32xf32, #tpu.memory_space<vmem>>, vector<8x32xf32>
    tpu.vector_store %arg7[%c8_50, %c0_51], %95 {strides = array<i32>} : memref<64x32xf32, #tpu.memory_space<vmem>>, vector<8x32xf32>,
    %c48_52 = arith.constant 48 : index
    %c0_53 = arith.constant 0 : index
    %115 = vector.load %arg8[%c48_52, %c0_53] : memref<64x32xf32, #tpu.memory_space<vmem>>, vector<8x32xf32>
    tpu.vector_store %arg8[%c48_52, %c0_53], %113 {strides = array<i32>} : memref<64x32xf32, #tpu.memory_space<vmem>>, vector<8x32xf32>,
    %c16 = arith.constant 16 : index
    %c0_54 = arith.constant 0 : index
    %116 = vector.load %arg9[%c16, %c0_54] : memref<64x128xf32, #tpu.memory_space<vmem>>, vector<8x128xf32>
    %117 = arith.truncf %95 : vector<8x32xf32> to vector<8x32xbf16>
    %cst_55 = arith.constant dense<0.000000e+00> : vector<8x128xf32>
    %118 = tpu.matmul %117, %25, %cst_55 {dimension_numbers = #tpu.dot_dimension_numbers<[1], [0], [0], [1], [0, 0, 1, 1], [], []>} : vector<8x32xbf16>, vector<32x128xbf16>, vector<8x128xf32> -> vector<8x128xf32>
    %119 = arith.addf %116, %118 : vector<8x128xf32>
    %c40 = arith.constant 40 : index
    %c0_56 = arith.constant 0 : index
    %120 = vector.load %arg10[%c40, %c0_56] : memref<64x128xf32, #tpu.memory_space<vmem>>, vector<8x128xf32>
    %121 = arith.truncf %113 : vector<8x32xf32> to vector<8x32xbf16>
    %cst_57 = arith.constant dense<0.000000e+00> : vector<8x128xf32>
    %122 = tpu.matmul %121, %27, %cst_57 {dimension_numbers = #tpu.dot_dimension_numbers<[1], [0], [0], [1], [0, 0, 1, 1], [], []>} : vector<8x32xbf16>, vector<32x128xbf16>, vector<8x128xf32> -> vector<8x128xf32>
    %123 = arith.addf %120, %122 : vector<8x128xf32>
    %cst_58 = arith.constant 5.000000e-01 : f32
    %124 = vector.broadcast %cst_58 : f32 to vector<8x128xf32>
    %125 = arith.mulf %124, %119 : vector<8x128xf32>
    %126 = arith.select %5, %119, %125 : vector<8x128xi1>, vector<8x128xf32>
    %127 = math.tanh %126 : vector<8x128xf32>
    %cst_59 = arith.constant 5.000000e-01 : f32
    %128 = vector.broadcast %cst_59 : f32 to vector<8x128xf32>
    %129 = arith.mulf %128, %127 : vector<8x128xf32>
    %cst_60 = arith.constant 5.000000e-01 : f32
    %130 = vector.broadcast %cst_60 : f32 to vector<8x128xf32>
    %131 = arith.addf %129, %130 : vector<8x128xf32>
    %132 = arith.select %5, %127, %131 : vector<8x128xi1>, vector<8x128xf32>
    %133 = vector.extract_strided_slice %132 {offsets = [0, 0], sizes = [8, 32], strides = [1, 1]} : vector<8x128xf32> to vector<8x32xf32>
    %134 = vector.extract_strided_slice %132 {offsets = [0, 32], sizes = [8, 32], strides = [1, 1]} : vector<8x128xf32> to vector<8x32xf32>
    %135 = vector.extract_strided_slice %132 {offsets = [0, 64], sizes = [8, 32], strides = [1, 1]} : vector<8x128xf32> to vector<8x32xf32>
    %136 = vector.extract_strided_slice %132 {offsets = [0, 96], sizes = [8, 32], strides = [1, 1]} : vector<8x128xf32> to vector<8x32xf32>
    %137 = arith.mulf %134, %93 : vector<8x32xf32>
    %138 = arith.mulf %133, %135 : vector<8x32xf32>
    %139 = arith.addf %137, %138 : vector<8x32xf32>
    %140 = math.tanh %139 : vector<8x32xf32>
    %141 = arith.mulf %136, %140 : vector<8x32xf32>
    %cst_61 = arith.constant 5.000000e-01 : f32
    %142 = vector.broadcast %cst_61 : f32 to vector<8x128xf32>
    %143 = arith.mulf %142, %123 : vector<8x128xf32>
    %144 = arith.select %5, %123, %143 : vector<8x128xi1>, vector<8x128xf32>
    %145 = math.tanh %144 : vector<8x128xf32>
    %cst_62 = arith.constant 5.000000e-01 : f32
    %146 = vector.broadcast %cst_62 : f32 to vector<8x128xf32>
    %147 = arith.mulf %146, %145 : vector<8x128xf32>
    %cst_63 = arith.constant 5.000000e-01 : f32
    %148 = vector.broadcast %cst_63 : f32 to vector<8x128xf32>
    %149 = arith.addf %147, %148 : vector<8x128xf32>
    %150 = arith.select %5, %145, %149 : vector<8x128xi1>, vector<8x128xf32>
    %151 = vector.extract_strided_slice %150 {offsets = [0, 0], sizes = [8, 32], strides = [1, 1]} : vector<8x128xf32> to vector<8x32xf32>
    %152 = vector.extract_strided_slice %150 {offsets = [0, 32], sizes = [8, 32], strides = [1, 1]} : vector<8x128xf32> to vector<8x32xf32>
    %153 = vector.extract_strided_slice %150 {offsets = [0, 64], sizes = [8, 32], strides = [1, 1]} : vector<8x128xf32> to vector<8x32xf32>
    %154 = vector.extract_strided_slice %150 {offsets = [0, 96], sizes = [8, 32], strides = [1, 1]} : vector<8x128xf32> to vector<8x32xf32>
    %155 = arith.mulf %152, %111 : vector<8x32xf32>
    %156 = arith.mulf %151, %153 : vector<8x32xf32>
    %157 = arith.addf %155, %156 : vector<8x32xf32>
    %158 = math.tanh %157 : vector<8x32xf32>
    %159 = arith.mulf %154, %158 : vector<8x32xf32>
    %c16_64 = arith.constant 16 : index
    %c0_65 = arith.constant 0 : index
    %160 = vector.load %arg7[%c16_64, %c0_65] : memref<64x32xf32, #tpu.memory_space<vmem>>, vector<8x32xf32>
    tpu.vector_store %arg7[%c16_64, %c0_65], %141 {strides = array<i32>} : memref<64x32xf32, #tpu.memory_space<vmem>>, vector<8x32xf32>,
    %c40_66 = arith.constant 40 : index
    %c0_67 = arith.constant 0 : index
    %161 = vector.load %arg8[%c40_66, %c0_67] : memref<64x32xf32, #tpu.memory_space<vmem>>, vector<8x32xf32>
    tpu.vector_store %arg8[%c40_66, %c0_67], %159 {strides = array<i32>} : memref<64x32xf32, #tpu.memory_space<vmem>>, vector<8x32xf32>,
    %c24 = arith.constant 24 : index
    %c0_68 = arith.constant 0 : index
    %162 = vector.load %arg9[%c24, %c0_68] : memref<64x128xf32, #tpu.memory_space<vmem>>, vector<8x128xf32>
    %163 = arith.truncf %141 : vector<8x32xf32> to vector<8x32xbf16>
    %cst_69 = arith.constant dense<0.000000e+00> : vector<8x128xf32>
    %164 = tpu.matmul %163, %25, %cst_69 {dimension_numbers = #tpu.dot_dimension_numbers<[1], [0], [0], [1], [0, 0, 1, 1], [], []>} : vector<8x32xbf16>, vector<32x128xbf16>, vector<8x128xf32> -> vector<8x128xf32>
    %165 = arith.addf %162, %164 : vector<8x128xf32>
    %c32 = arith.constant 32 : index
    %c0_70 = arith.constant 0 : index
    %166 = vector.load %arg10[%c32, %c0_70] : memref<64x128xf32, #tpu.memory_space<vmem>>, vector<8x128xf32>
    %167 = arith.truncf %159 : vector<8x32xf32> to vector<8x32xbf16>
    %cst_71 = arith.constant dense<0.000000e+00> : vector<8x128xf32>
    %168 = tpu.matmul %167, %27, %cst_71 {dimension_numbers = #tpu.dot_dimension_numbers<[1], [0], [0], [1], [0, 0, 1, 1], [], []>} : vector<8x32xbf16>, vector<32x128xbf16>, vector<8x128xf32> -> vector<8x128xf32>
    %169 = arith.addf %166, %168 : vector<8x128xf32>
    %cst_72 = arith.constant 5.000000e-01 : f32
    %170 = vector.broadcast %cst_72 : f32 to vector<8x128xf32>
    %171 = arith.mulf %170, %165 : vector<8x128xf32>
    %172 = arith.select %5, %165, %171 : vector<8x128xi1>, vector<8x128xf32>
    %173 = math.tanh %172 : vector<8x128xf32>
    %cst_73 = arith.constant 5.000000e-01 : f32
    %174 = vector.broadcast %cst_73 : f32 to vector<8x128xf32>
    %175 = arith.mulf %174, %173 : vector<8x128xf32>
    %cst_74 = arith.constant 5.000000e-01 : f32
    %176 = vector.broadcast %cst_74 : f32 to vector<8x128xf32>
    %177 = arith.addf %175, %176 : vector<8x128xf32>
    %178 = arith.select %5, %173, %177 : vector<8x128xi1>, vector<8x128xf32>
    %179 = vector.extract_strided_slice %178 {offsets = [0, 0], sizes = [8, 32], strides = [1, 1]} : vector<8x128xf32> to vector<8x32xf32>
    %180 = vector.extract_strided_slice %178 {offsets = [0, 32], sizes = [8, 32], strides = [1, 1]} : vector<8x128xf32> to vector<8x32xf32>
    %181 = vector.extract_strided_slice %178 {offsets = [0, 64], sizes = [8, 32], strides = [1, 1]} : vector<8x128xf32> to vector<8x32xf32>
    %182 = vector.extract_strided_slice %178 {offsets = [0, 96], sizes = [8, 32], strides = [1, 1]} : vector<8x128xf32> to vector<8x32xf32>
    %183 = arith.mulf %180, %139 : vector<8x32xf32>
    %184 = arith.mulf %179, %181 : vector<8x32xf32>
    %185 = arith.addf %183, %184 : vector<8x32xf32>
    %186 = math.tanh %185 : vector<8x32xf32>
    %187 = arith.mulf %182, %186 : vector<8x32xf32>
    %cst_75 = arith.constant 5.000000e-01 : f32
    %188 = vector.broadcast %cst_75 : f32 to vector<8x128xf32>
    %189 = arith.mulf %188, %169 : vector<8x128xf32>
    %190 = arith.select %5, %169, %189 : vector<8x128xi1>, vector<8x128xf32>
    %191 = math.tanh %190 : vector<8x128xf32>
    %cst_76 = arith.constant 5.000000e-01 : f32
    %192 = vector.broadcast %cst_76 : f32 to vector<8x128xf32>
    %193 = arith.mulf %192, %191 : vector<8x128xf32>
    %cst_77 = arith.constant 5.000000e-01 : f32
    %194 = vector.broadcast %cst_77 : f32 to vector<8x128xf32>
    %195 = arith.addf %193, %194 : vector<8x128xf32>
    %196 = arith.select %5, %191, %195 : vector<8x128xi1>, vector<8x128xf32>
    %197 = vector.extract_strided_slice %196 {offsets = [0, 0], sizes = [8, 32], strides = [1, 1]} : vector<8x128xf32> to vector<8x32xf32>
    %198 = vector.extract_strided_slice %196 {offsets = [0, 32], sizes = [8, 32], strides = [1, 1]} : vector<8x128xf32> to vector<8x32xf32>
    %199 = vector.extract_strided_slice %196 {offsets = [0, 64], sizes = [8, 32], strides = [1, 1]} : vector<8x128xf32> to vector<8x32xf32>
    %200 = vector.extract_strided_slice %196 {offsets = [0, 96], sizes = [8, 32], strides = [1, 1]} : vector<8x128xf32> to vector<8x32xf32>
    %201 = arith.mulf %198, %157 : vector<8x32xf32>
    %202 = arith.mulf %197, %199 : vector<8x32xf32>
    %203 = arith.addf %201, %202 : vector<8x32xf32>
    %204 = math.tanh %203 : vector<8x32xf32>
    %205 = arith.mulf %200, %204 : vector<8x32xf32>
    %c24_78 = arith.constant 24 : index
    %c0_79 = arith.constant 0 : index
    %206 = vector.load %arg7[%c24_78, %c0_79] : memref<64x32xf32, #tpu.memory_space<vmem>>, vector<8x32xf32>
    tpu.vector_store %arg7[%c24_78, %c0_79], %187 {strides = array<i32>} : memref<64x32xf32, #tpu.memory_space<vmem>>, vector<8x32xf32>,
    %c32_80 = arith.constant 32 : index
    %c0_81 = arith.constant 0 : index
    %207 = vector.load %arg8[%c32_80, %c0_81] : memref<64x32xf32, #tpu.memory_space<vmem>>, vector<8x32xf32>
    tpu.vector_store %arg8[%c32_80, %c0_81], %205 {strides = array<i32>} : memref<64x32xf32, #tpu.memory_space<vmem>>, vector<8x32xf32>,
    %c32_82 = arith.constant 32 : index
    %c0_83 = arith.constant 0 : index
    %208 = vector.load %arg9[%c32_82, %c0_83] : memref<64x128xf32, #tpu.memory_space<vmem>>, vector<8x128xf32>
    %209 = arith.truncf %187 : vector<8x32xf32> to vector<8x32xbf16>
    %cst_84 = arith.constant dense<0.000000e+00> : vector<8x128xf32>
    %210 = tpu.matmul %209, %25, %cst_84 {dimension_numbers = #tpu.dot_dimension_numbers<[1], [0], [0], [1], [0, 0, 1, 1], [], []>} : vector<8x32xbf16>, vector<32x128xbf16>, vector<8x128xf32> -> vector<8x128xf32>
    %211 = arith.addf %208, %210 : vector<8x128xf32>
    %c24_85 = arith.constant 24 : index
    %c0_86 = arith.constant 0 : index
    %212 = vector.load %arg10[%c24_85, %c0_86] : memref<64x128xf32, #tpu.memory_space<vmem>>, vector<8x128xf32>
    %213 = arith.truncf %205 : vector<8x32xf32> to vector<8x32xbf16>
    %cst_87 = arith.constant dense<0.000000e+00> : vector<8x128xf32>
    %214 = tpu.matmul %213, %27, %cst_87 {dimension_numbers = #tpu.dot_dimension_numbers<[1], [0], [0], [1], [0, 0, 1, 1], [], []>} : vector<8x32xbf16>, vector<32x128xbf16>, vector<8x128xf32> -> vector<8x128xf32>
    %215 = arith.addf %212, %214 : vector<8x128xf32>
    %cst_88 = arith.constant 5.000000e-01 : f32
    %216 = vector.broadcast %cst_88 : f32 to vector<8x128xf32>
    %217 = arith.mulf %216, %211 : vector<8x128xf32>
    %218 = arith.select %5, %211, %217 : vector<8x128xi1>, vector<8x128xf32>
    %219 = math.tanh %218 : vector<8x128xf32>
    %cst_89 = arith.constant 5.000000e-01 : f32
    %220 = vector.broadcast %cst_89 : f32 to vector<8x128xf32>
    %221 = arith.mulf %220, %219 : vector<8x128xf32>
    %cst_90 = arith.constant 5.000000e-01 : f32
    %222 = vector.broadcast %cst_90 : f32 to vector<8x128xf32>
    %223 = arith.addf %221, %222 : vector<8x128xf32>
    %224 = arith.select %5, %219, %223 : vector<8x128xi1>, vector<8x128xf32>
    %225 = vector.extract_strided_slice %224 {offsets = [0, 0], sizes = [8, 32], strides = [1, 1]} : vector<8x128xf32> to vector<8x32xf32>
    %226 = vector.extract_strided_slice %224 {offsets = [0, 32], sizes = [8, 32], strides = [1, 1]} : vector<8x128xf32> to vector<8x32xf32>
    %227 = vector.extract_strided_slice %224 {offsets = [0, 64], sizes = [8, 32], strides = [1, 1]} : vector<8x128xf32> to vector<8x32xf32>
    %228 = vector.extract_strided_slice %224 {offsets = [0, 96], sizes = [8, 32], strides = [1, 1]} : vector<8x128xf32> to vector<8x32xf32>
    %229 = arith.mulf %226, %185 : vector<8x32xf32>
    %230 = arith.mulf %225, %227 : vector<8x32xf32>
    %231 = arith.addf %229, %230 : vector<8x32xf32>
    %232 = math.tanh %231 : vector<8x32xf32>
    %233 = arith.mulf %228, %232 : vector<8x32xf32>
    %cst_91 = arith.constant 5.000000e-01 : f32
    %234 = vector.broadcast %cst_91 : f32 to vector<8x128xf32>
    %235 = arith.mulf %234, %215 : vector<8x128xf32>
    %236 = arith.select %5, %215, %235 : vector<8x128xi1>, vector<8x128xf32>
    %237 = math.tanh %236 : vector<8x128xf32>
    %cst_92 = arith.constant 5.000000e-01 : f32
    %238 = vector.broadcast %cst_92 : f32 to vector<8x128xf32>
    %239 = arith.mulf %238, %237 : vector<8x128xf32>
    %cst_93 = arith.constant 5.000000e-01 : f32
    %240 = vector.broadcast %cst_93 : f32 to vector<8x128xf32>
    %241 = arith.addf %239, %240 : vector<8x128xf32>
    %242 = arith.select %5, %237, %241 : vector<8x128xi1>, vector<8x128xf32>
    %243 = vector.extract_strided_slice %242 {offsets = [0, 0], sizes = [8, 32], strides = [1, 1]} : vector<8x128xf32> to vector<8x32xf32>
    %244 = vector.extract_strided_slice %242 {offsets = [0, 32], sizes = [8, 32], strides = [1, 1]} : vector<8x128xf32> to vector<8x32xf32>
    %245 = vector.extract_strided_slice %242 {offsets = [0, 64], sizes = [8, 32], strides = [1, 1]} : vector<8x128xf32> to vector<8x32xf32>
    %246 = vector.extract_strided_slice %242 {offsets = [0, 96], sizes = [8, 32], strides = [1, 1]} : vector<8x128xf32> to vector<8x32xf32>
    %247 = arith.mulf %244, %203 : vector<8x32xf32>
    %248 = arith.mulf %243, %245 : vector<8x32xf32>
    %249 = arith.addf %247, %248 : vector<8x32xf32>
    %250 = math.tanh %249 : vector<8x32xf32>
    %251 = arith.mulf %246, %250 : vector<8x32xf32>
    %c32_94 = arith.constant 32 : index
    %c0_95 = arith.constant 0 : index
    %252 = vector.load %arg7[%c32_94, %c0_95] : memref<64x32xf32, #tpu.memory_space<vmem>>, vector<8x32xf32>
    tpu.vector_store %arg7[%c32_94, %c0_95], %233 {strides = array<i32>} : memref<64x32xf32, #tpu.memory_space<vmem>>, vector<8x32xf32>,
    %c24_96 = arith.constant 24 : index
    %c0_97 = arith.constant 0 : index
    %253 = vector.load %arg8[%c24_96, %c0_97] : memref<64x32xf32, #tpu.memory_space<vmem>>, vector<8x32xf32>
    tpu.vector_store %arg8[%c24_96, %c0_97], %251 {strides = array<i32>} : memref<64x32xf32, #tpu.memory_space<vmem>>, vector<8x32xf32>,
    %c40_98 = arith.constant 40 : index
    %c0_99 = arith.constant 0 : index
    %254 = vector.load %arg9[%c40_98, %c0_99] : memref<64x128xf32, #tpu.memory_space<vmem>>, vector<8x128xf32>
    %255 = arith.truncf %233 : vector<8x32xf32> to vector<8x32xbf16>
    %cst_100 = arith.constant dense<0.000000e+00> : vector<8x128xf32>
    %256 = tpu.matmul %255, %25, %cst_100 {dimension_numbers = #tpu.dot_dimension_numbers<[1], [0], [0], [1], [0, 0, 1, 1], [], []>} : vector<8x32xbf16>, vector<32x128xbf16>, vector<8x128xf32> -> vector<8x128xf32>
    %257 = arith.addf %254, %256 : vector<8x128xf32>
    %c16_101 = arith.constant 16 : index
    %c0_102 = arith.constant 0 : index
    %258 = vector.load %arg10[%c16_101, %c0_102] : memref<64x128xf32, #tpu.memory_space<vmem>>, vector<8x128xf32>
    %259 = arith.truncf %251 : vector<8x32xf32> to vector<8x32xbf16>
    %cst_103 = arith.constant dense<0.000000e+00> : vector<8x128xf32>
    %260 = tpu.matmul %259, %27, %cst_103 {dimension_numbers = #tpu.dot_dimension_numbers<[1], [0], [0], [1], [0, 0, 1, 1], [], []>} : vector<8x32xbf16>, vector<32x128xbf16>, vector<8x128xf32> -> vector<8x128xf32>
    %261 = arith.addf %258, %260 : vector<8x128xf32>
    %cst_104 = arith.constant 5.000000e-01 : f32
    %262 = vector.broadcast %cst_104 : f32 to vector<8x128xf32>
    %263 = arith.mulf %262, %257 : vector<8x128xf32>
    %264 = arith.select %5, %257, %263 : vector<8x128xi1>, vector<8x128xf32>
    %265 = math.tanh %264 : vector<8x128xf32>
    %cst_105 = arith.constant 5.000000e-01 : f32
    %266 = vector.broadcast %cst_105 : f32 to vector<8x128xf32>
    %267 = arith.mulf %266, %265 : vector<8x128xf32>
    %cst_106 = arith.constant 5.000000e-01 : f32
    %268 = vector.broadcast %cst_106 : f32 to vector<8x128xf32>
    %269 = arith.addf %267, %268 : vector<8x128xf32>
    %270 = arith.select %5, %265, %269 : vector<8x128xi1>, vector<8x128xf32>
    %271 = vector.extract_strided_slice %270 {offsets = [0, 0], sizes = [8, 32], strides = [1, 1]} : vector<8x128xf32> to vector<8x32xf32>
    %272 = vector.extract_strided_slice %270 {offsets = [0, 32], sizes = [8, 32], strides = [1, 1]} : vector<8x128xf32> to vector<8x32xf32>
    %273 = vector.extract_strided_slice %270 {offsets = [0, 64], sizes = [8, 32], strides = [1, 1]} : vector<8x128xf32> to vector<8x32xf32>
    %274 = vector.extract_strided_slice %270 {offsets = [0, 96], sizes = [8, 32], strides = [1, 1]} : vector<8x128xf32> to vector<8x32xf32>
    %275 = arith.mulf %272, %231 : vector<8x32xf32>
    %276 = arith.mulf %271, %273 : vector<8x32xf32>
    %277 = arith.addf %275, %276 : vector<8x32xf32>
    %278 = math.tanh %277 : vector<8x32xf32>
    %279 = arith.mulf %274, %278 : vector<8x32xf32>
    %cst_107 = arith.constant 5.000000e-01 : f32
    %280 = vector.broadcast %cst_107 : f32 to vector<8x128xf32>
    %281 = arith.mulf %280, %261 : vector<8x128xf32>
    %282 = arith.select %5, %261, %281 : vector<8x128xi1>, vector<8x128xf32>
    %283 = math.tanh %282 : vector<8x128xf32>
    %cst_108 = arith.constant 5.000000e-01 : f32
    %284 = vector.broadcast %cst_108 : f32 to vector<8x128xf32>
    %285 = arith.mulf %284, %283 : vector<8x128xf32>
    %cst_109 = arith.constant 5.000000e-01 : f32
    %286 = vector.broadcast %cst_109 : f32 to vector<8x128xf32>
    %287 = arith.addf %285, %286 : vector<8x128xf32>
    %288 = arith.select %5, %283, %287 : vector<8x128xi1>, vector<8x128xf32>
    %289 = vector.extract_strided_slice %288 {offsets = [0, 0], sizes = [8, 32], strides = [1, 1]} : vector<8x128xf32> to vector<8x32xf32>
    %290 = vector.extract_strided_slice %288 {offsets = [0, 32], sizes = [8, 32], strides = [1, 1]} : vector<8x128xf32> to vector<8x32xf32>
    %291 = vector.extract_strided_slice %288 {offsets = [0, 64], sizes = [8, 32], strides = [1, 1]} : vector<8x128xf32> to vector<8x32xf32>
    %292 = vector.extract_strided_slice %288 {offsets = [0, 96], sizes = [8, 32], strides = [1, 1]} : vector<8x128xf32> to vector<8x32xf32>
    %293 = arith.mulf %290, %249 : vector<8x32xf32>
    %294 = arith.mulf %289, %291 : vector<8x32xf32>
    %295 = arith.addf %293, %294 : vector<8x32xf32>
    %296 = math.tanh %295 : vector<8x32xf32>
    %297 = arith.mulf %292, %296 : vector<8x32xf32>
    %c40_110 = arith.constant 40 : index
    %c0_111 = arith.constant 0 : index
    %298 = vector.load %arg7[%c40_110, %c0_111] : memref<64x32xf32, #tpu.memory_space<vmem>>, vector<8x32xf32>
    tpu.vector_store %arg7[%c40_110, %c0_111], %279 {strides = array<i32>} : memref<64x32xf32, #tpu.memory_space<vmem>>, vector<8x32xf32>,
    %c16_112 = arith.constant 16 : index
    %c0_113 = arith.constant 0 : index
    %299 = vector.load %arg8[%c16_112, %c0_113] : memref<64x32xf32, #tpu.memory_space<vmem>>, vector<8x32xf32>
    tpu.vector_store %arg8[%c16_112, %c0_113], %297 {strides = array<i32>} : memref<64x32xf32, #tpu.memory_space<vmem>>, vector<8x32xf32>,
    %c48_114 = arith.constant 48 : index
    %c0_115 = arith.constant 0 : index
    %300 = vector.load %arg9[%c48_114, %c0_115] : memref<64x128xf32, #tpu.memory_space<vmem>>, vector<8x128xf32>
    %301 = arith.truncf %279 : vector<8x32xf32> to vector<8x32xbf16>
    %cst_116 = arith.constant dense<0.000000e+00> : vector<8x128xf32>
    %302 = tpu.matmul %301, %25, %cst_116 {dimension_numbers = #tpu.dot_dimension_numbers<[1], [0], [0], [1], [0, 0, 1, 1], [], []>} : vector<8x32xbf16>, vector<32x128xbf16>, vector<8x128xf32> -> vector<8x128xf32>
    %303 = arith.addf %300, %302 : vector<8x128xf32>
    %c8_117 = arith.constant 8 : index
    %c0_118 = arith.constant 0 : index
    %304 = vector.load %arg10[%c8_117, %c0_118] : memref<64x128xf32, #tpu.memory_space<vmem>>, vector<8x128xf32>
    %305 = arith.truncf %297 : vector<8x32xf32> to vector<8x32xbf16>
    %cst_119 = arith.constant dense<0.000000e+00> : vector<8x128xf32>
    %306 = tpu.matmul %305, %27, %cst_119 {dimension_numbers = #tpu.dot_dimension_numbers<[1], [0], [0], [1], [0, 0, 1, 1], [], []>} : vector<8x32xbf16>, vector<32x128xbf16>, vector<8x128xf32> -> vector<8x128xf32>
    %307 = arith.addf %304, %306 : vector<8x128xf32>
    %cst_120 = arith.constant 5.000000e-01 : f32
    %308 = vector.broadcast %cst_120 : f32 to vector<8x128xf32>
    %309 = arith.mulf %308, %303 : vector<8x128xf32>
    %310 = arith.select %5, %303, %309 : vector<8x128xi1>, vector<8x128xf32>
    %311 = math.tanh %310 : vector<8x128xf32>
    %cst_121 = arith.constant 5.000000e-01 : f32
    %312 = vector.broadcast %cst_121 : f32 to vector<8x128xf32>
    %313 = arith.mulf %312, %311 : vector<8x128xf32>
    %cst_122 = arith.constant 5.000000e-01 : f32
    %314 = vector.broadcast %cst_122 : f32 to vector<8x128xf32>
    %315 = arith.addf %313, %314 : vector<8x128xf32>
    %316 = arith.select %5, %311, %315 : vector<8x128xi1>, vector<8x128xf32>
    %317 = vector.extract_strided_slice %316 {offsets = [0, 0], sizes = [8, 32], strides = [1, 1]} : vector<8x128xf32> to vector<8x32xf32>
    %318 = vector.extract_strided_slice %316 {offsets = [0, 32], sizes = [8, 32], strides = [1, 1]} : vector<8x128xf32> to vector<8x32xf32>
    %319 = vector.extract_strided_slice %316 {offsets = [0, 64], sizes = [8, 32], strides = [1, 1]} : vector<8x128xf32> to vector<8x32xf32>
    %320 = vector.extract_strided_slice %316 {offsets = [0, 96], sizes = [8, 32], strides = [1, 1]} : vector<8x128xf32> to vector<8x32xf32>
    %321 = arith.mulf %318, %277 : vector<8x32xf32>
    %322 = arith.mulf %317, %319 : vector<8x32xf32>
    %323 = arith.addf %321, %322 : vector<8x32xf32>
    %324 = math.tanh %323 : vector<8x32xf32>
    %325 = arith.mulf %320, %324 : vector<8x32xf32>
    %cst_123 = arith.constant 5.000000e-01 : f32
    %326 = vector.broadcast %cst_123 : f32 to vector<8x128xf32>
    %327 = arith.mulf %326, %307 : vector<8x128xf32>
    %328 = arith.select %5, %307, %327 : vector<8x128xi1>, vector<8x128xf32>
    %329 = math.tanh %328 : vector<8x128xf32>
    %cst_124 = arith.constant 5.000000e-01 : f32
    %330 = vector.broadcast %cst_124 : f32 to vector<8x128xf32>
    %331 = arith.mulf %330, %329 : vector<8x128xf32>
    %cst_125 = arith.constant 5.000000e-01 : f32
    %332 = vector.broadcast %cst_125 : f32 to vector<8x128xf32>
    %333 = arith.addf %331, %332 : vector<8x128xf32>
    %334 = arith.select %5, %329, %333 : vector<8x128xi1>, vector<8x128xf32>
    %335 = vector.extract_strided_slice %334 {offsets = [0, 0], sizes = [8, 32], strides = [1, 1]} : vector<8x128xf32> to vector<8x32xf32>
    %336 = vector.extract_strided_slice %334 {offsets = [0, 32], sizes = [8, 32], strides = [1, 1]} : vector<8x128xf32> to vector<8x32xf32>
    %337 = vector.extract_strided_slice %334 {offsets = [0, 64], sizes = [8, 32], strides = [1, 1]} : vector<8x128xf32> to vector<8x32xf32>
    %338 = vector.extract_strided_slice %334 {offsets = [0, 96], sizes = [8, 32], strides = [1, 1]} : vector<8x128xf32> to vector<8x32xf32>
    %339 = arith.mulf %336, %295 : vector<8x32xf32>
    %340 = arith.mulf %335, %337 : vector<8x32xf32>
    %341 = arith.addf %339, %340 : vector<8x32xf32>
    %342 = math.tanh %341 : vector<8x32xf32>
    %343 = arith.mulf %338, %342 : vector<8x32xf32>
    %c48_126 = arith.constant 48 : index
    %c0_127 = arith.constant 0 : index
    %344 = vector.load %arg7[%c48_126, %c0_127] : memref<64x32xf32, #tpu.memory_space<vmem>>, vector<8x32xf32>
    tpu.vector_store %arg7[%c48_126, %c0_127], %325 {strides = array<i32>} : memref<64x32xf32, #tpu.memory_space<vmem>>, vector<8x32xf32>,
    %c8_128 = arith.constant 8 : index
    %c0_129 = arith.constant 0 : index
    %345 = vector.load %arg8[%c8_128, %c0_129] : memref<64x32xf32, #tpu.memory_space<vmem>>, vector<8x32xf32>
    tpu.vector_store %arg8[%c8_128, %c0_129], %343 {strides = array<i32>} : memref<64x32xf32, #tpu.memory_space<vmem>>, vector<8x32xf32>,
    %c56_130 = arith.constant 56 : index
    %c0_131 = arith.constant 0 : index
    %346 = vector.load %arg9[%c56_130, %c0_131] : memref<64x128xf32, #tpu.memory_space<vmem>>, vector<8x128xf32>
    %347 = arith.truncf %325 : vector<8x32xf32> to vector<8x32xbf16>
    %cst_132 = arith.constant dense<0.000000e+00> : vector<8x128xf32>
    %348 = tpu.matmul %347, %25, %cst_132 {dimension_numbers = #tpu.dot_dimension_numbers<[1], [0], [0], [1], [0, 0, 1, 1], [], []>} : vector<8x32xbf16>, vector<32x128xbf16>, vector<8x128xf32> -> vector<8x128xf32>
    %349 = arith.addf %346, %348 : vector<8x128xf32>
    %c0_133 = arith.constant 0 : index
    %c0_134 = arith.constant 0 : index
    %350 = vector.load %arg10[%c0_133, %c0_134] : memref<64x128xf32, #tpu.memory_space<vmem>>, vector<8x128xf32>
    %351 = arith.truncf %343 : vector<8x32xf32> to vector<8x32xbf16>
    %cst_135 = arith.constant dense<0.000000e+00> : vector<8x128xf32>
    %352 = tpu.matmul %351, %27, %cst_135 {dimension_numbers = #tpu.dot_dimension_numbers<[1], [0], [0], [1], [0, 0, 1, 1], [], []>} : vector<8x32xbf16>, vector<32x128xbf16>, vector<8x128xf32> -> vector<8x128xf32>
    %353 = arith.addf %350, %352 : vector<8x128xf32>
    %cst_136 = arith.constant 5.000000e-01 : f32
    %354 = vector.broadcast %cst_136 : f32 to vector<8x128xf32>
    %355 = arith.mulf %354, %349 : vector<8x128xf32>
    %356 = arith.select %5, %349, %355 : vector<8x128xi1>, vector<8x128xf32>
    %357 = math.tanh %356 : vector<8x128xf32>
    %cst_137 = arith.constant 5.000000e-01 : f32
    %358 = vector.broadcast %cst_137 : f32 to vector<8x128xf32>
    %359 = arith.mulf %358, %357 : vector<8x128xf32>
    %cst_138 = arith.constant 5.000000e-01 : f32
    %360 = vector.broadcast %cst_138 : f32 to vector<8x128xf32>
    %361 = arith.addf %359, %360 : vector<8x128xf32>
    %362 = arith.select %5, %357, %361 : vector<8x128xi1>, vector<8x128xf32>
    %363 = vector.extract_strided_slice %362 {offsets = [0, 0], sizes = [8, 32], strides = [1, 1]} : vector<8x128xf32> to vector<8x32xf32>
    %364 = vector.extract_strided_slice %362 {offsets = [0, 32], sizes = [8, 32], strides = [1, 1]} : vector<8x128xf32> to vector<8x32xf32>
    %365 = vector.extract_strided_slice %362 {offsets = [0, 64], sizes = [8, 32], strides = [1, 1]} : vector<8x128xf32> to vector<8x32xf32>
    %366 = vector.extract_strided_slice %362 {offsets = [0, 96], sizes = [8, 32], strides = [1, 1]} : vector<8x128xf32> to vector<8x32xf32>
    %367 = arith.mulf %364, %323 : vector<8x32xf32>
    %368 = arith.mulf %363, %365 : vector<8x32xf32>
    %369 = arith.addf %367, %368 : vector<8x32xf32>
    %370 = math.tanh %369 : vector<8x32xf32>
    %371 = arith.mulf %366, %370 : vector<8x32xf32>
    %cst_139 = arith.constant 5.000000e-01 : f32
    %372 = vector.broadcast %cst_139 : f32 to vector<8x128xf32>
    %373 = arith.mulf %372, %353 : vector<8x128xf32>
    %374 = arith.select %5, %353, %373 : vector<8x128xi1>, vector<8x128xf32>
    %375 = math.tanh %374 : vector<8x128xf32>
    %cst_140 = arith.constant 5.000000e-01 : f32
    %376 = vector.broadcast %cst_140 : f32 to vector<8x128xf32>
    %377 = arith.mulf %376, %375 : vector<8x128xf32>
    %cst_141 = arith.constant 5.000000e-01 : f32
    %378 = vector.broadcast %cst_141 : f32 to vector<8x128xf32>
    %379 = arith.addf %377, %378 : vector<8x128xf32>
    %380 = arith.select %5, %375, %379 : vector<8x128xi1>, vector<8x128xf32>
    %381 = vector.extract_strided_slice %380 {offsets = [0, 0], sizes = [8, 32], strides = [1, 1]} : vector<8x128xf32> to vector<8x32xf32>
    %382 = vector.extract_strided_slice %380 {offsets = [0, 32], sizes = [8, 32], strides = [1, 1]} : vector<8x128xf32> to vector<8x32xf32>
    %383 = vector.extract_strided_slice %380 {offsets = [0, 64], sizes = [8, 32], strides = [1, 1]} : vector<8x128xf32> to vector<8x32xf32>
    %384 = vector.extract_strided_slice %380 {offsets = [0, 96], sizes = [8, 32], strides = [1, 1]} : vector<8x128xf32> to vector<8x32xf32>
    %385 = arith.mulf %382, %341 : vector<8x32xf32>
    %386 = arith.mulf %381, %383 : vector<8x32xf32>
    %387 = arith.addf %385, %386 : vector<8x32xf32>
    %388 = math.tanh %387 : vector<8x32xf32>
    %389 = arith.mulf %384, %388 : vector<8x32xf32>
    %c56_142 = arith.constant 56 : index
    %c0_143 = arith.constant 0 : index
    %390 = vector.load %arg7[%c56_142, %c0_143] : memref<64x32xf32, #tpu.memory_space<vmem>>, vector<8x32xf32>
    tpu.vector_store %arg7[%c56_142, %c0_143], %371 {strides = array<i32>} : memref<64x32xf32, #tpu.memory_space<vmem>>, vector<8x32xf32>,
    %c0_144 = arith.constant 0 : index
    %c0_145 = arith.constant 0 : index
    %391 = vector.load %arg8[%c0_144, %c0_145] : memref<64x32xf32, #tpu.memory_space<vmem>>, vector<8x32xf32>
    tpu.vector_store %arg8[%c0_144, %c0_145], %389 {strides = array<i32>} : memref<64x32xf32, #tpu.memory_space<vmem>>, vector<8x32xf32>,
    %c0_146 = arith.constant 0 : index
    %c0_147 = arith.constant 0 : index
    %392 = vector.load %arg7[%c0_146, %c0_147] : memref<64x32xf32, #tpu.memory_space<vmem>>, vector<64x32xf32>
    %393 = arith.truncf %392 : vector<64x32xf32> to vector<64x32xbf16>
    %c0_148 = arith.constant 0 : index
    %c0_149 = arith.constant 0 : index
    %394 = vector.load %arg8[%c0_148, %c0_149] : memref<64x32xf32, #tpu.memory_space<vmem>>, vector<64x32xf32>
    %395 = arith.truncf %394 : vector<64x32xf32> to vector<64x32xbf16>
    %c2 = arith.constant 2 : index
    %c0_150 = arith.constant 0 : index
    %c0_151 = arith.constant 0 : index
    %c0_152 = arith.constant 0 : index
    %396 = vector.load %arg1[%c2, %c0_150, %c0_151, %c0_152] : memref<6x2x32x128xbf16, #tpu.memory_space<vmem>>, vector<1x1x32x128xbf16>
    %397 = vector.shape_cast %396 : vector<1x1x32x128xbf16> to vector<32x128xbf16>
    %cst_153 = arith.constant dense<0.000000e+00> : vector<64x128xf32>
    %398 = tpu.matmul %393, %397, %cst_153 {dimension_numbers = #tpu.dot_dimension_numbers<[1], [0], [0], [1], [0, 0, 1, 1], [], []>} : vector<64x32xbf16>, vector<32x128xbf16>, vector<64x128xf32> -> vector<64x128xf32>
    %c2_154 = arith.constant 2 : index
    %c1_155 = arith.constant 1 : index
    %c0_156 = arith.constant 0 : index
    %c0_157 = arith.constant 0 : index
    %399 = vector.load %arg1[%c2_154, %c1_155, %c0_156, %c0_157] : memref<6x2x32x128xbf16, #tpu.memory_space<vmem>>, vector<1x1x32x128xbf16>
    %400 = vector.shape_cast %399 : vector<1x1x32x128xbf16> to vector<32x128xbf16>
    %cst_158 = arith.constant dense<0.000000e+00> : vector<64x128xf32>
    %401 = tpu.matmul %395, %400, %cst_158 {dimension_numbers = #tpu.dot_dimension_numbers<[1], [0], [0], [1], [0, 0, 1, 1], [], []>} : vector<64x32xbf16>, vector<32x128xbf16>, vector<64x128xf32> -> vector<64x128xf32>
    %402 = arith.addf %398, %401 : vector<64x128xf32>
    %c2_159 = arith.constant 2 : index
    %c0_160 = arith.constant 0 : index
    %c0_161 = arith.constant 0 : index
    %403 = vector.load %arg3[%c2_159, %c0_160, %c0_161] : memref<6x1x128xf32, #tpu.memory_space<vmem>>, vector<1x1x128xf32>
    %404 = vector.shape_cast %403 : vector<1x1x128xf32> to vector<1x128xf32>
    %405 = vector.broadcast %404 : vector<1x128xf32> to vector<64x128xf32>
    %406 = arith.addf %402, %405 : vector<64x128xf32>
    %c0_162 = arith.constant 0 : index
    %c0_163 = arith.constant 0 : index
    %407 = vector.load %arg9[%c0_162, %c0_163] : memref<64x128xf32, #tpu.memory_space<vmem>>, vector<64x128xf32>
    tpu.vector_store %arg9[%c0_162, %c0_163], %406 {strides = array<i32>} : memref<64x128xf32, #tpu.memory_space<vmem>>, vector<64x128xf32>,
    %c3 = arith.constant 3 : index
    %c0_164 = arith.constant 0 : index
    %c0_165 = arith.constant 0 : index
    %c0_166 = arith.constant 0 : index
    %408 = vector.load %arg1[%c3, %c0_164, %c0_165, %c0_166] : memref<6x2x32x128xbf16, #tpu.memory_space<vmem>>, vector<1x1x32x128xbf16>
    %409 = vector.shape_cast %408 : vector<1x1x32x128xbf16> to vector<32x128xbf16>
    %cst_167 = arith.constant dense<0.000000e+00> : vector<64x128xf32>
    %410 = tpu.matmul %393, %409, %cst_167 {dimension_numbers = #tpu.dot_dimension_numbers<[1], [0], [0], [1], [0, 0, 1, 1], [], []>} : vector<64x32xbf16>, vector<32x128xbf16>, vector<64x128xf32> -> vector<64x128xf32>
    %c3_168 = arith.constant 3 : index
    %c1_169 = arith.constant 1 : index
    %c0_170 = arith.constant 0 : index
    %c0_171 = arith.constant 0 : index
    %411 = vector.load %arg1[%c3_168, %c1_169, %c0_170, %c0_171] : memref<6x2x32x128xbf16, #tpu.memory_space<vmem>>, vector<1x1x32x128xbf16>
    %412 = vector.shape_cast %411 : vector<1x1x32x128xbf16> to vector<32x128xbf16>
    %cst_172 = arith.constant dense<0.000000e+00> : vector<64x128xf32>
    %413 = tpu.matmul %395, %412, %cst_172 {dimension_numbers = #tpu.dot_dimension_numbers<[1], [0], [0], [1], [0, 0, 1, 1], [], []>} : vector<64x32xbf16>, vector<32x128xbf16>, vector<64x128xf32> -> vector<64x128xf32>
    %414 = arith.addf %410, %413 : vector<64x128xf32>
    %c3_173 = arith.constant 3 : index
    %c0_174 = arith.constant 0 : index
    %c0_175 = arith.constant 0 : index
    %415 = vector.load %arg3[%c3_173, %c0_174, %c0_175] : memref<6x1x128xf32, #tpu.memory_space<vmem>>, vector<1x1x128xf32>
    %416 = vector.shape_cast %415 : vector<1x1x128xf32> to vector<1x128xf32>
    %417 = vector.broadcast %416 : vector<1x128xf32> to vector<64x128xf32>
    %418 = arith.addf %414, %417 : vector<64x128xf32>
    %c0_176 = arith.constant 0 : index
    %c0_177 = arith.constant 0 : index
    %419 = vector.load %arg10[%c0_176, %c0_177] : memref<64x128xf32, #tpu.memory_space<vmem>>, vector<64x128xf32>
    tpu.vector_store %arg10[%c0_176, %c0_177], %418 {strides = array<i32>} : memref<64x128xf32, #tpu.memory_space<vmem>>, vector<64x128xf32>,
    %c2_178 = arith.constant 2 : index
    %c0_179 = arith.constant 0 : index
    %c0_180 = arith.constant 0 : index
    %420 = vector.load %arg2[%c2_178, %c0_179, %c0_180] : memref<6x32x128xbf16, #tpu.memory_space<vmem>>, vector<1x32x128xbf16>
    %421 = vector.shape_cast %420 : vector<1x32x128xbf16> to vector<32x128xbf16>
    %c3_181 = arith.constant 3 : index
    %c0_182 = arith.constant 0 : index
    %c0_183 = arith.constant 0 : index
    %422 = vector.load %arg2[%c3_181, %c0_182, %c0_183] : memref<6x32x128xbf16, #tpu.memory_space<vmem>>, vector<1x32x128xbf16>
    %423 = vector.shape_cast %422 : vector<1x32x128xbf16> to vector<32x128xbf16>
    %cst_184 = arith.constant 0.000000e+00 : f32
    %424 = vector.broadcast %cst_184 : f32 to vector<8x32xf32>
    %cst_185 = arith.constant 0.000000e+00 : f32
    %425 = vector.broadcast %cst_185 : f32 to vector<8x32xf32>
    %c0_186 = arith.constant 0 : index
    %c0_187 = arith.constant 0 : index
    %426 = vector.load %arg9[%c0_186, %c0_187] : memref<64x128xf32, #tpu.memory_space<vmem>>, vector<8x128xf32>
    %c56_188 = arith.constant 56 : index
    %c0_189 = arith.constant 0 : index
    %427 = vector.load %arg10[%c56_188, %c0_189] : memref<64x128xf32, #tpu.memory_space<vmem>>, vector<8x128xf32>
    %cst_190 = arith.constant 5.000000e-01 : f32
    %428 = vector.broadcast %cst_190 : f32 to vector<8x128xf32>
    %429 = arith.mulf %428, %426 : vector<8x128xf32>
    %430 = arith.select %5, %426, %429 : vector<8x128xi1>, vector<8x128xf32>
    %431 = math.tanh %430 : vector<8x128xf32>
    %cst_191 = arith.constant 5.000000e-01 : f32
    %432 = vector.broadcast %cst_191 : f32 to vector<8x128xf32>
    %433 = arith.mulf %432, %431 : vector<8x128xf32>
    %cst_192 = arith.constant 5.000000e-01 : f32
    %434 = vector.broadcast %cst_192 : f32 to vector<8x128xf32>
    %435 = arith.addf %433, %434 : vector<8x128xf32>
    %436 = arith.select %5, %431, %435 : vector<8x128xi1>, vector<8x128xf32>
    %437 = vector.extract_strided_slice %436 {offsets = [0, 0], sizes = [8, 32], strides = [1, 1]} : vector<8x128xf32> to vector<8x32xf32>
    %438 = vector.extract_strided_slice %436 {offsets = [0, 32], sizes = [8, 32], strides = [1, 1]} : vector<8x128xf32> to vector<8x32xf32>
    %439 = vector.extract_strided_slice %436 {offsets = [0, 64], sizes = [8, 32], strides = [1, 1]} : vector<8x128xf32> to vector<8x32xf32>
    %440 = vector.extract_strided_slice %436 {offsets = [0, 96], sizes = [8, 32], strides = [1, 1]} : vector<8x128xf32> to vector<8x32xf32>
    %441 = arith.mulf %438, %424 : vector<8x32xf32>
    %442 = arith.mulf %437, %439 : vector<8x32xf32>
    %443 = arith.addf %441, %442 : vector<8x32xf32>
    %444 = math.tanh %443 : vector<8x32xf32>
    %445 = arith.mulf %440, %444 : vector<8x32xf32>
    %cst_193 = arith.constant 5.000000e-01 : f32
    %446 = vector.broadcast %cst_193 : f32 to vector<8x128xf32>
    %447 = arith.mulf %446, %427 : vector<8x128xf32>
    %448 = arith.select %5, %427, %447 : vector<8x128xi1>, vector<8x128xf32>
    %449 = math.tanh %448 : vector<8x128xf32>
    %cst_194 = arith.constant 5.000000e-01 : f32
    %450 = vector.broadcast %cst_194 : f32 to vector<8x128xf32>
    %451 = arith.mulf %450, %449 : vector<8x128xf32>
    %cst_195 = arith.constant 5.000000e-01 : f32
    %452 = vector.broadcast %cst_195 : f32 to vector<8x128xf32>
    %453 = arith.addf %451, %452 : vector<8x128xf32>
    %454 = arith.select %5, %449, %453 : vector<8x128xi1>, vector<8x128xf32>
    %455 = vector.extract_strided_slice %454 {offsets = [0, 0], sizes = [8, 32], strides = [1, 1]} : vector<8x128xf32> to vector<8x32xf32>
    %456 = vector.extract_strided_slice %454 {offsets = [0, 32], sizes = [8, 32], strides = [1, 1]} : vector<8x128xf32> to vector<8x32xf32>
    %457 = vector.extract_strided_slice %454 {offsets = [0, 64], sizes = [8, 32], strides = [1, 1]} : vector<8x128xf32> to vector<8x32xf32>
    %458 = vector.extract_strided_slice %454 {offsets = [0, 96], sizes = [8, 32], strides = [1, 1]} : vector<8x128xf32> to vector<8x32xf32>
    %459 = arith.mulf %456, %425 : vector<8x32xf32>
    %460 = arith.mulf %455, %457 : vector<8x32xf32>
    %461 = arith.addf %459, %460 : vector<8x32xf32>
    %462 = math.tanh %461 : vector<8x32xf32>
    %463 = arith.mulf %458, %462 : vector<8x32xf32>
    %c0_196 = arith.constant 0 : index
    %c0_197 = arith.constant 0 : index
    %464 = vector.load %arg7[%c0_196, %c0_197] : memref<64x32xf32, #tpu.memory_space<vmem>>, vector<8x32xf32>
    tpu.vector_store %arg7[%c0_196, %c0_197], %445 {strides = array<i32>} : memref<64x32xf32, #tpu.memory_space<vmem>>, vector<8x32xf32>,
    %c56_198 = arith.constant 56 : index
    %c0_199 = arith.constant 0 : index
    %465 = vector.load %arg8[%c56_198, %c0_199] : memref<64x32xf32, #tpu.memory_space<vmem>>, vector<8x32xf32>
    tpu.vector_store %arg8[%c56_198, %c0_199], %463 {strides = array<i32>} : memref<64x32xf32, #tpu.memory_space<vmem>>, vector<8x32xf32>,
    %c8_200 = arith.constant 8 : index
    %c0_201 = arith.constant 0 : index
    %466 = vector.load %arg9[%c8_200, %c0_201] : memref<64x128xf32, #tpu.memory_space<vmem>>, vector<8x128xf32>
    %467 = arith.truncf %445 : vector<8x32xf32> to vector<8x32xbf16>
    %cst_202 = arith.constant dense<0.000000e+00> : vector<8x128xf32>
    %468 = tpu.matmul %467, %421, %cst_202 {dimension_numbers = #tpu.dot_dimension_numbers<[1], [0], [0], [1], [0, 0, 1, 1], [], []>} : vector<8x32xbf16>, vector<32x128xbf16>, vector<8x128xf32> -> vector<8x128xf32>
    %469 = arith.addf %466, %468 : vector<8x128xf32>
    %c48_203 = arith.constant 48 : index
    %c0_204 = arith.constant 0 : index
    %470 = vector.load %arg10[%c48_203, %c0_204] : memref<64x128xf32, #tpu.memory_space<vmem>>, vector<8x128xf32>
    %471 = arith.truncf %463 : vector<8x32xf32> to vector<8x32xbf16>
    %cst_205 = arith.constant dense<0.000000e+00> : vector<8x128xf32>
    %472 = tpu.matmul %471, %423, %cst_205 {dimension_numbers = #tpu.dot_dimension_numbers<[1], [0], [0], [1], [0, 0, 1, 1], [], []>} : vector<8x32xbf16>, vector<32x128xbf16>, vector<8x128xf32> -> vector<8x128xf32>
    %473 = arith.addf %470, %472 : vector<8x128xf32>
    %cst_206 = arith.constant 5.000000e-01 : f32
    %474 = vector.broadcast %cst_206 : f32 to vector<8x128xf32>
    %475 = arith.mulf %474, %469 : vector<8x128xf32>
    %476 = arith.select %5, %469, %475 : vector<8x128xi1>, vector<8x128xf32>
    %477 = math.tanh %476 : vector<8x128xf32>
    %cst_207 = arith.constant 5.000000e-01 : f32
    %478 = vector.broadcast %cst_207 : f32 to vector<8x128xf32>
    %479 = arith.mulf %478, %477 : vector<8x128xf32>
    %cst_208 = arith.constant 5.000000e-01 : f32
    %480 = vector.broadcast %cst_208 : f32 to vector<8x128xf32>
    %481 = arith.addf %479, %480 : vector<8x128xf32>
    %482 = arith.select %5, %477, %481 : vector<8x128xi1>, vector<8x128xf32>
    %483 = vector.extract_strided_slice %482 {offsets = [0, 0], sizes = [8, 32], strides = [1, 1]} : vector<8x128xf32> to vector<8x32xf32>
    %484 = vector.extract_strided_slice %482 {offsets = [0, 32], sizes = [8, 32], strides = [1, 1]} : vector<8x128xf32> to vector<8x32xf32>
    %485 = vector.extract_strided_slice %482 {offsets = [0, 64], sizes = [8, 32], strides = [1, 1]} : vector<8x128xf32> to vector<8x32xf32>
    %486 = vector.extract_strided_slice %482 {offsets = [0, 96], sizes = [8, 32], strides = [1, 1]} : vector<8x128xf32> to vector<8x32xf32>
    %487 = arith.mulf %484, %443 : vector<8x32xf32>
    %488 = arith.mulf %483, %485 : vector<8x32xf32>
    %489 = arith.addf %487, %488 : vector<8x32xf32>
    %490 = math.tanh %489 : vector<8x32xf32>
    %491 = arith.mulf %486, %490 : vector<8x32xf32>
    %cst_209 = arith.constant 5.000000e-01 : f32
    %492 = vector.broadcast %cst_209 : f32 to vector<8x128xf32>
    %493 = arith.mulf %492, %473 : vector<8x128xf32>
    %494 = arith.select %5, %473, %493 : vector<8x128xi1>, vector<8x128xf32>
    %495 = math.tanh %494 : vector<8x128xf32>
    %cst_210 = arith.constant 5.000000e-01 : f32
    %496 = vector.broadcast %cst_210 : f32 to vector<8x128xf32>
    %497 = arith.mulf %496, %495 : vector<8x128xf32>
    %cst_211 = arith.constant 5.000000e-01 : f32
    %498 = vector.broadcast %cst_211 : f32 to vector<8x128xf32>
    %499 = arith.addf %497, %498 : vector<8x128xf32>
    %500 = arith.select %5, %495, %499 : vector<8x128xi1>, vector<8x128xf32>
    %501 = vector.extract_strided_slice %500 {offsets = [0, 0], sizes = [8, 32], strides = [1, 1]} : vector<8x128xf32> to vector<8x32xf32>
    %502 = vector.extract_strided_slice %500 {offsets = [0, 32], sizes = [8, 32], strides = [1, 1]} : vector<8x128xf32> to vector<8x32xf32>
    %503 = vector.extract_strided_slice %500 {offsets = [0, 64], sizes = [8, 32], strides = [1, 1]} : vector<8x128xf32> to vector<8x32xf32>
    %504 = vector.extract_strided_slice %500 {offsets = [0, 96], sizes = [8, 32], strides = [1, 1]} : vector<8x128xf32> to vector<8x32xf32>
    %505 = arith.mulf %502, %461 : vector<8x32xf32>
    %506 = arith.mulf %501, %503 : vector<8x32xf32>
    %507 = arith.addf %505, %506 : vector<8x32xf32>
    %508 = math.tanh %507 : vector<8x32xf32>
    %509 = arith.mulf %504, %508 : vector<8x32xf32>
    %c8_212 = arith.constant 8 : index
    %c0_213 = arith.constant 0 : index
    %510 = vector.load %arg7[%c8_212, %c0_213] : memref<64x32xf32, #tpu.memory_space<vmem>>, vector<8x32xf32>
    tpu.vector_store %arg7[%c8_212, %c0_213], %491 {strides = array<i32>} : memref<64x32xf32, #tpu.memory_space<vmem>>, vector<8x32xf32>,
    %c48_214 = arith.constant 48 : index
    %c0_215 = arith.constant 0 : index
    %511 = vector.load %arg8[%c48_214, %c0_215] : memref<64x32xf32, #tpu.memory_space<vmem>>, vector<8x32xf32>
    tpu.vector_store %arg8[%c48_214, %c0_215], %509 {strides = array<i32>} : memref<64x32xf32, #tpu.memory_space<vmem>>, vector<8x32xf32>,
    %c16_216 = arith.constant 16 : index
    %c0_217 = arith.constant 0 : index
    %512 = vector.load %arg9[%c16_216, %c0_217] : memref<64x128xf32, #tpu.memory_space<vmem>>, vector<8x128xf32>
    %513 = arith.truncf %491 : vector<8x32xf32> to vector<8x32xbf16>
    %cst_218 = arith.constant dense<0.000000e+00> : vector<8x128xf32>
    %514 = tpu.matmul %513, %421, %cst_218 {dimension_numbers = #tpu.dot_dimension_numbers<[1], [0], [0], [1], [0, 0, 1, 1], [], []>} : vector<8x32xbf16>, vector<32x128xbf16>, vector<8x128xf32> -> vector<8x128xf32>
    %515 = arith.addf %512, %514 : vector<8x128xf32>
    %c40_219 = arith.constant 40 : index
    %c0_220 = arith.constant 0 : index
    %516 = vector.load %arg10[%c40_219, %c0_220] : memref<64x128xf32, #tpu.memory_space<vmem>>, vector<8x128xf32>
    %517 = arith.truncf %509 : vector<8x32xf32> to vector<8x32xbf16>
    %cst_221 = arith.constant dense<0.000000e+00> : vector<8x128xf32>
    %518 = tpu.matmul %517, %423, %cst_221 {dimension_numbers = #tpu.dot_dimension_numbers<[1], [0], [0], [1], [0, 0, 1, 1], [], []>} : vector<8x32xbf16>, vector<32x128xbf16>, vector<8x128xf32> -> vector<8x128xf32>
    %519 = arith.addf %516, %518 : vector<8x128xf32>
    %cst_222 = arith.constant 5.000000e-01 : f32
    %520 = vector.broadcast %cst_222 : f32 to vector<8x128xf32>
    %521 = arith.mulf %520, %515 : vector<8x128xf32>
    %522 = arith.select %5, %515, %521 : vector<8x128xi1>, vector<8x128xf32>
    %523 = math.tanh %522 : vector<8x128xf32>
    %cst_223 = arith.constant 5.000000e-01 : f32
    %524 = vector.broadcast %cst_223 : f32 to vector<8x128xf32>
    %525 = arith.mulf %524, %523 : vector<8x128xf32>
    %cst_224 = arith.constant 5.000000e-01 : f32
    %526 = vector.broadcast %cst_224 : f32 to vector<8x128xf32>
    %527 = arith.addf %525, %526 : vector<8x128xf32>
    %528 = arith.select %5, %523, %527 : vector<8x128xi1>, vector<8x128xf32>
    %529 = vector.extract_strided_slice %528 {offsets = [0, 0], sizes = [8, 32], strides = [1, 1]} : vector<8x128xf32> to vector<8x32xf32>
    %530 = vector.extract_strided_slice %528 {offsets = [0, 32], sizes = [8, 32], strides = [1, 1]} : vector<8x128xf32> to vector<8x32xf32>
    %531 = vector.extract_strided_slice %528 {offsets = [0, 64], sizes = [8, 32], strides = [1, 1]} : vector<8x128xf32> to vector<8x32xf32>
    %532 = vector.extract_strided_slice %528 {offsets = [0, 96], sizes = [8, 32], strides = [1, 1]} : vector<8x128xf32> to vector<8x32xf32>
    %533 = arith.mulf %530, %489 : vector<8x32xf32>
    %534 = arith.mulf %529, %531 : vector<8x32xf32>
    %535 = arith.addf %533, %534 : vector<8x32xf32>
    %536 = math.tanh %535 : vector<8x32xf32>
    %537 = arith.mulf %532, %536 : vector<8x32xf32>
    %cst_225 = arith.constant 5.000000e-01 : f32
    %538 = vector.broadcast %cst_225 : f32 to vector<8x128xf32>
    %539 = arith.mulf %538, %519 : vector<8x128xf32>
    %540 = arith.select %5, %519, %539 : vector<8x128xi1>, vector<8x128xf32>
    %541 = math.tanh %540 : vector<8x128xf32>
    %cst_226 = arith.constant 5.000000e-01 : f32
    %542 = vector.broadcast %cst_226 : f32 to vector<8x128xf32>
    %543 = arith.mulf %542, %541 : vector<8x128xf32>
    %cst_227 = arith.constant 5.000000e-01 : f32
    %544 = vector.broadcast %cst_227 : f32 to vector<8x128xf32>
    %545 = arith.addf %543, %544 : vector<8x128xf32>
    %546 = arith.select %5, %541, %545 : vector<8x128xi1>, vector<8x128xf32>
    %547 = vector.extract_strided_slice %546 {offsets = [0, 0], sizes = [8, 32], strides = [1, 1]} : vector<8x128xf32> to vector<8x32xf32>
    %548 = vector.extract_strided_slice %546 {offsets = [0, 32], sizes = [8, 32], strides = [1, 1]} : vector<8x128xf32> to vector<8x32xf32>
    %549 = vector.extract_strided_slice %546 {offsets = [0, 64], sizes = [8, 32], strides = [1, 1]} : vector<8x128xf32> to vector<8x32xf32>
    %550 = vector.extract_strided_slice %546 {offsets = [0, 96], sizes = [8, 32], strides = [1, 1]} : vector<8x128xf32> to vector<8x32xf32>
    %551 = arith.mulf %548, %507 : vector<8x32xf32>
    %552 = arith.mulf %547, %549 : vector<8x32xf32>
    %553 = arith.addf %551, %552 : vector<8x32xf32>
    %554 = math.tanh %553 : vector<8x32xf32>
    %555 = arith.mulf %550, %554 : vector<8x32xf32>
    %c16_228 = arith.constant 16 : index
    %c0_229 = arith.constant 0 : index
    %556 = vector.load %arg7[%c16_228, %c0_229] : memref<64x32xf32, #tpu.memory_space<vmem>>, vector<8x32xf32>
    tpu.vector_store %arg7[%c16_228, %c0_229], %537 {strides = array<i32>} : memref<64x32xf32, #tpu.memory_space<vmem>>, vector<8x32xf32>,
    %c40_230 = arith.constant 40 : index
    %c0_231 = arith.constant 0 : index
    %557 = vector.load %arg8[%c40_230, %c0_231] : memref<64x32xf32, #tpu.memory_space<vmem>>, vector<8x32xf32>
    tpu.vector_store %arg8[%c40_230, %c0_231], %555 {strides = array<i32>} : memref<64x32xf32, #tpu.memory_space<vmem>>, vector<8x32xf32>,
    %c24_232 = arith.constant 24 : index
    %c0_233 = arith.constant 0 : index
    %558 = vector.load %arg9[%c24_232, %c0_233] : memref<64x128xf32, #tpu.memory_space<vmem>>, vector<8x128xf32>
    %559 = arith.truncf %537 : vector<8x32xf32> to vector<8x32xbf16>
    %cst_234 = arith.constant dense<0.000000e+00> : vector<8x128xf32>
    %560 = tpu.matmul %559, %421, %cst_234 {dimension_numbers = #tpu.dot_dimension_numbers<[1], [0], [0], [1], [0, 0, 1, 1], [], []>} : vector<8x32xbf16>, vector<32x128xbf16>, vector<8x128xf32> -> vector<8x128xf32>
    %561 = arith.addf %558, %560 : vector<8x128xf32>
    %c32_235 = arith.constant 32 : index
    %c0_236 = arith.constant 0 : index
    %562 = vector.load %arg10[%c32_235, %c0_236] : memref<64x128xf32, #tpu.memory_space<vmem>>, vector<8x128xf32>
    %563 = arith.truncf %555 : vector<8x32xf32> to vector<8x32xbf16>
    %cst_237 = arith.constant dense<0.000000e+00> : vector<8x128xf32>
    %564 = tpu.matmul %563, %423, %cst_237 {dimension_numbers = #tpu.dot_dimension_numbers<[1], [0], [0], [1], [0, 0, 1, 1], [], []>} : vector<8x32xbf16>, vector<32x128xbf16>, vector<8x128xf32> -> vector<8x128xf32>
    %565 = arith.addf %562, %564 : vector<8x128xf32>
    %cst_238 = arith.constant 5.000000e-01 : f32
    %566 = vector.broadcast %cst_238 : f32 to vector<8x128xf32>
    %567 = arith.mulf %566, %561 : vector<8x128xf32>
    %568 = arith.select %5, %561, %567 : vector<8x128xi1>, vector<8x128xf32>
    %569 = math.tanh %568 : vector<8x128xf32>
    %cst_239 = arith.constant 5.000000e-01 : f32
    %570 = vector.broadcast %cst_239 : f32 to vector<8x128xf32>
    %571 = arith.mulf %570, %569 : vector<8x128xf32>
    %cst_240 = arith.constant 5.000000e-01 : f32
    %572 = vector.broadcast %cst_240 : f32 to vector<8x128xf32>
    %573 = arith.addf %571, %572 : vector<8x128xf32>
    %574 = arith.select %5, %569, %573 : vector<8x128xi1>, vector<8x128xf32>
    %575 = vector.extract_strided_slice %574 {offsets = [0, 0], sizes = [8, 32], strides = [1, 1]} : vector<8x128xf32> to vector<8x32xf32>
    %576 = vector.extract_strided_slice %574 {offsets = [0, 32], sizes = [8, 32], strides = [1, 1]} : vector<8x128xf32> to vector<8x32xf32>
    %577 = vector.extract_strided_slice %574 {offsets = [0, 64], sizes = [8, 32], strides = [1, 1]} : vector<8x128xf32> to vector<8x32xf32>
    %578 = vector.extract_strided_slice %574 {offsets = [0, 96], sizes = [8, 32], strides = [1, 1]} : vector<8x128xf32> to vector<8x32xf32>
    %579 = arith.mulf %576, %535 : vector<8x32xf32>
    %580 = arith.mulf %575, %577 : vector<8x32xf32>
    %581 = arith.addf %579, %580 : vector<8x32xf32>
    %582 = math.tanh %581 : vector<8x32xf32>
    %583 = arith.mulf %578, %582 : vector<8x32xf32>
    %cst_241 = arith.constant 5.000000e-01 : f32
    %584 = vector.broadcast %cst_241 : f32 to vector<8x128xf32>
    %585 = arith.mulf %584, %565 : vector<8x128xf32>
    %586 = arith.select %5, %565, %585 : vector<8x128xi1>, vector<8x128xf32>
    %587 = math.tanh %586 : vector<8x128xf32>
    %cst_242 = arith.constant 5.000000e-01 : f32
    %588 = vector.broadcast %cst_242 : f32 to vector<8x128xf32>
    %589 = arith.mulf %588, %587 : vector<8x128xf32>
    %cst_243 = arith.constant 5.000000e-01 : f32
    %590 = vector.broadcast %cst_243 : f32 to vector<8x128xf32>
    %591 = arith.addf %589, %590 : vector<8x128xf32>
    %592 = arith.select %5, %587, %591 : vector<8x128xi1>, vector<8x128xf32>
    %593 = vector.extract_strided_slice %592 {offsets = [0, 0], sizes = [8, 32], strides = [1, 1]} : vector<8x128xf32> to vector<8x32xf32>
    %594 = vector.extract_strided_slice %592 {offsets = [0, 32], sizes = [8, 32], strides = [1, 1]} : vector<8x128xf32> to vector<8x32xf32>
    %595 = vector.extract_strided_slice %592 {offsets = [0, 64], sizes = [8, 32], strides = [1, 1]} : vector<8x128xf32> to vector<8x32xf32>
    %596 = vector.extract_strided_slice %592 {offsets = [0, 96], sizes = [8, 32], strides = [1, 1]} : vector<8x128xf32> to vector<8x32xf32>
    %597 = arith.mulf %594, %553 : vector<8x32xf32>
    %598 = arith.mulf %593, %595 : vector<8x32xf32>
    %599 = arith.addf %597, %598 : vector<8x32xf32>
    %600 = math.tanh %599 : vector<8x32xf32>
    %601 = arith.mulf %596, %600 : vector<8x32xf32>
    %c24_244 = arith.constant 24 : index
    %c0_245 = arith.constant 0 : index
    %602 = vector.load %arg7[%c24_244, %c0_245] : memref<64x32xf32, #tpu.memory_space<vmem>>, vector<8x32xf32>
    tpu.vector_store %arg7[%c24_244, %c0_245], %583 {strides = array<i32>} : memref<64x32xf32, #tpu.memory_space<vmem>>, vector<8x32xf32>,
    %c32_246 = arith.constant 32 : index
    %c0_247 = arith.constant 0 : index
    %603 = vector.load %arg8[%c32_246, %c0_247] : memref<64x32xf32, #tpu.memory_space<vmem>>, vector<8x32xf32>
    tpu.vector_store %arg8[%c32_246, %c0_247], %601 {strides = array<i32>} : memref<64x32xf32, #tpu.memory_space<vmem>>, vector<8x32xf32>,
    %c32_248 = arith.constant 32 : index
    %c0_249 = arith.constant 0 : index
    %604 = vector.load %arg9[%c32_248, %c0_249] : memref<64x128xf32, #tpu.memory_space<vmem>>, vector<8x128xf32>
    %605 = arith.truncf %583 : vector<8x32xf32> to vector<8x32xbf16>
    %cst_250 = arith.constant dense<0.000000e+00> : vector<8x128xf32>
    %606 = tpu.matmul %605, %421, %cst_250 {dimension_numbers = #tpu.dot_dimension_numbers<[1], [0], [0], [1], [0, 0, 1, 1], [], []>} : vector<8x32xbf16>, vector<32x128xbf16>, vector<8x128xf32> -> vector<8x128xf32>
    %607 = arith.addf %604, %606 : vector<8x128xf32>
    %c24_251 = arith.constant 24 : index
    %c0_252 = arith.constant 0 : index
    %608 = vector.load %arg10[%c24_251, %c0_252] : memref<64x128xf32, #tpu.memory_space<vmem>>, vector<8x128xf32>
    %609 = arith.truncf %601 : vector<8x32xf32> to vector<8x32xbf16>
    %cst_253 = arith.constant dense<0.000000e+00> : vector<8x128xf32>
    %610 = tpu.matmul %609, %423, %cst_253 {dimension_numbers = #tpu.dot_dimension_numbers<[1], [0], [0], [1], [0, 0, 1, 1], [], []>} : vector<8x32xbf16>, vector<32x128xbf16>, vector<8x128xf32> -> vector<8x128xf32>
    %611 = arith.addf %608, %610 : vector<8x128xf32>
    %cst_254 = arith.constant 5.000000e-01 : f32
    %612 = vector.broadcast %cst_254 : f32 to vector<8x128xf32>
    %613 = arith.mulf %612, %607 : vector<8x128xf32>
    %614 = arith.select %5, %607, %613 : vector<8x128xi1>, vector<8x128xf32>
    %615 = math.tanh %614 : vector<8x128xf32>
    %cst_255 = arith.constant 5.000000e-01 : f32
    %616 = vector.broadcast %cst_255 : f32 to vector<8x128xf32>
    %617 = arith.mulf %616, %615 : vector<8x128xf32>
    %cst_256 = arith.constant 5.000000e-01 : f32
    %618 = vector.broadcast %cst_256 : f32 to vector<8x128xf32>
    %619 = arith.addf %617, %618 : vector<8x128xf32>
    %620 = arith.select %5, %615, %619 : vector<8x128xi1>, vector<8x128xf32>
    %621 = vector.extract_strided_slice %620 {offsets = [0, 0], sizes = [8, 32], strides = [1, 1]} : vector<8x128xf32> to vector<8x32xf32>
    %622 = vector.extract_strided_slice %620 {offsets = [0, 32], sizes = [8, 32], strides = [1, 1]} : vector<8x128xf32> to vector<8x32xf32>
    %623 = vector.extract_strided_slice %620 {offsets = [0, 64], sizes = [8, 32], strides = [1, 1]} : vector<8x128xf32> to vector<8x32xf32>
    %624 = vector.extract_strided_slice %620 {offsets = [0, 96], sizes = [8, 32], strides = [1, 1]} : vector<8x128xf32> to vector<8x32xf32>
    %625 = arith.mulf %622, %581 : vector<8x32xf32>
    %626 = arith.mulf %621, %623 : vector<8x32xf32>
    %627 = arith.addf %625, %626 : vector<8x32xf32>
    %628 = math.tanh %627 : vector<8x32xf32>
    %629 = arith.mulf %624, %628 : vector<8x32xf32>
    %cst_257 = arith.constant 5.000000e-01 : f32
    %630 = vector.broadcast %cst_257 : f32 to vector<8x128xf32>
    %631 = arith.mulf %630, %611 : vector<8x128xf32>
    %632 = arith.select %5, %611, %631 : vector<8x128xi1>, vector<8x128xf32>
    %633 = math.tanh %632 : vector<8x128xf32>
    %cst_258 = arith.constant 5.000000e-01 : f32
    %634 = vector.broadcast %cst_258 : f32 to vector<8x128xf32>
    %635 = arith.mulf %634, %633 : vector<8x128xf32>
    %cst_259 = arith.constant 5.000000e-01 : f32
    %636 = vector.broadcast %cst_259 : f32 to vector<8x128xf32>
    %637 = arith.addf %635, %636 : vector<8x128xf32>
    %638 = arith.select %5, %633, %637 : vector<8x128xi1>, vector<8x128xf32>
    %639 = vector.extract_strided_slice %638 {offsets = [0, 0], sizes = [8, 32], strides = [1, 1]} : vector<8x128xf32> to vector<8x32xf32>
    %640 = vector.extract_strided_slice %638 {offsets = [0, 32], sizes = [8, 32], strides = [1, 1]} : vector<8x128xf32> to vector<8x32xf32>
    %641 = vector.extract_strided_slice %638 {offsets = [0, 64], sizes = [8, 32], strides = [1, 1]} : vector<8x128xf32> to vector<8x32xf32>
    %642 = vector.extract_strided_slice %638 {offsets = [0, 96], sizes = [8, 32], strides = [1, 1]} : vector<8x128xf32> to vector<8x32xf32>
    %643 = arith.mulf %640, %599 : vector<8x32xf32>
    %644 = arith.mulf %639, %641 : vector<8x32xf32>
    %645 = arith.addf %643, %644 : vector<8x32xf32>
    %646 = math.tanh %645 : vector<8x32xf32>
    %647 = arith.mulf %642, %646 : vector<8x32xf32>
    %c32_260 = arith.constant 32 : index
    %c0_261 = arith.constant 0 : index
    %648 = vector.load %arg7[%c32_260, %c0_261] : memref<64x32xf32, #tpu.memory_space<vmem>>, vector<8x32xf32>
    tpu.vector_store %arg7[%c32_260, %c0_261], %629 {strides = array<i32>} : memref<64x32xf32, #tpu.memory_space<vmem>>, vector<8x32xf32>,
    %c24_262 = arith.constant 24 : index
    %c0_263 = arith.constant 0 : index
    %649 = vector.load %arg8[%c24_262, %c0_263] : memref<64x32xf32, #tpu.memory_space<vmem>>, vector<8x32xf32>
    tpu.vector_store %arg8[%c24_262, %c0_263], %647 {strides = array<i32>} : memref<64x32xf32, #tpu.memory_space<vmem>>, vector<8x32xf32>,
    %c40_264 = arith.constant 40 : index
    %c0_265 = arith.constant 0 : index
    %650 = vector.load %arg9[%c40_264, %c0_265] : memref<64x128xf32, #tpu.memory_space<vmem>>, vector<8x128xf32>
    %651 = arith.truncf %629 : vector<8x32xf32> to vector<8x32xbf16>
    %cst_266 = arith.constant dense<0.000000e+00> : vector<8x128xf32>
    %652 = tpu.matmul %651, %421, %cst_266 {dimension_numbers = #tpu.dot_dimension_numbers<[1], [0], [0], [1], [0, 0, 1, 1], [], []>} : vector<8x32xbf16>, vector<32x128xbf16>, vector<8x128xf32> -> vector<8x128xf32>
    %653 = arith.addf %650, %652 : vector<8x128xf32>
    %c16_267 = arith.constant 16 : index
    %c0_268 = arith.constant 0 : index
    %654 = vector.load %arg10[%c16_267, %c0_268] : memref<64x128xf32, #tpu.memory_space<vmem>>, vector<8x128xf32>
    %655 = arith.truncf %647 : vector<8x32xf32> to vector<8x32xbf16>
    %cst_269 = arith.constant dense<0.000000e+00> : vector<8x128xf32>
    %656 = tpu.matmul %655, %423, %cst_269 {dimension_numbers = #tpu.dot_dimension_numbers<[1], [0], [0], [1], [0, 0, 1, 1], [], []>} : vector<8x32xbf16>, vector<32x128xbf16>, vector<8x128xf32> -> vector<8x128xf32>
    %657 = arith.addf %654, %656 : vector<8x128xf32>
    %cst_270 = arith.constant 5.000000e-01 : f32
    %658 = vector.broadcast %cst_270 : f32 to vector<8x128xf32>
    %659 = arith.mulf %658, %653 : vector<8x128xf32>
    %660 = arith.select %5, %653, %659 : vector<8x128xi1>, vector<8x128xf32>
    %661 = math.tanh %660 : vector<8x128xf32>
    %cst_271 = arith.constant 5.000000e-01 : f32
    %662 = vector.broadcast %cst_271 : f32 to vector<8x128xf32>
    %663 = arith.mulf %662, %661 : vector<8x128xf32>
    %cst_272 = arith.constant 5.000000e-01 : f32
    %664 = vector.broadcast %cst_272 : f32 to vector<8x128xf32>
    %665 = arith.addf %663, %664 : vector<8x128xf32>
    %666 = arith.select %5, %661, %665 : vector<8x128xi1>, vector<8x128xf32>
    %667 = vector.extract_strided_slice %666 {offsets = [0, 0], sizes = [8, 32], strides = [1, 1]} : vector<8x128xf32> to vector<8x32xf32>
    %668 = vector.extract_strided_slice %666 {offsets = [0, 32], sizes = [8, 32], strides = [1, 1]} : vector<8x128xf32> to vector<8x32xf32>
    %669 = vector.extract_strided_slice %666 {offsets = [0, 64], sizes = [8, 32], strides = [1, 1]} : vector<8x128xf32> to vector<8x32xf32>
    %670 = vector.extract_strided_slice %666 {offsets = [0, 96], sizes = [8, 32], strides = [1, 1]} : vector<8x128xf32> to vector<8x32xf32>
    %671 = arith.mulf %668, %627 : vector<8x32xf32>
    %672 = arith.mulf %667, %669 : vector<8x32xf32>
    %673 = arith.addf %671, %672 : vector<8x32xf32>
    %674 = math.tanh %673 : vector<8x32xf32>
    %675 = arith.mulf %670, %674 : vector<8x32xf32>
    %cst_273 = arith.constant 5.000000e-01 : f32
    %676 = vector.broadcast %cst_273 : f32 to vector<8x128xf32>
    %677 = arith.mulf %676, %657 : vector<8x128xf32>
    %678 = arith.select %5, %657, %677 : vector<8x128xi1>, vector<8x128xf32>
    %679 = math.tanh %678 : vector<8x128xf32>
    %cst_274 = arith.constant 5.000000e-01 : f32
    %680 = vector.broadcast %cst_274 : f32 to vector<8x128xf32>
    %681 = arith.mulf %680, %679 : vector<8x128xf32>
    %cst_275 = arith.constant 5.000000e-01 : f32
    %682 = vector.broadcast %cst_275 : f32 to vector<8x128xf32>
    %683 = arith.addf %681, %682 : vector<8x128xf32>
    %684 = arith.select %5, %679, %683 : vector<8x128xi1>, vector<8x128xf32>
    %685 = vector.extract_strided_slice %684 {offsets = [0, 0], sizes = [8, 32], strides = [1, 1]} : vector<8x128xf32> to vector<8x32xf32>
    %686 = vector.extract_strided_slice %684 {offsets = [0, 32], sizes = [8, 32], strides = [1, 1]} : vector<8x128xf32> to vector<8x32xf32>
    %687 = vector.extract_strided_slice %684 {offsets = [0, 64], sizes = [8, 32], strides = [1, 1]} : vector<8x128xf32> to vector<8x32xf32>
    %688 = vector.extract_strided_slice %684 {offsets = [0, 96], sizes = [8, 32], strides = [1, 1]} : vector<8x128xf32> to vector<8x32xf32>
    %689 = arith.mulf %686, %645 : vector<8x32xf32>
    %690 = arith.mulf %685, %687 : vector<8x32xf32>
    %691 = arith.addf %689, %690 : vector<8x32xf32>
    %692 = math.tanh %691 : vector<8x32xf32>
    %693 = arith.mulf %688, %692 : vector<8x32xf32>
    %c40_276 = arith.constant 40 : index
    %c0_277 = arith.constant 0 : index
    %694 = vector.load %arg7[%c40_276, %c0_277] : memref<64x32xf32, #tpu.memory_space<vmem>>, vector<8x32xf32>
    tpu.vector_store %arg7[%c40_276, %c0_277], %675 {strides = array<i32>} : memref<64x32xf32, #tpu.memory_space<vmem>>, vector<8x32xf32>,
    %c16_278 = arith.constant 16 : index
    %c0_279 = arith.constant 0 : index
    %695 = vector.load %arg8[%c16_278, %c0_279] : memref<64x32xf32, #tpu.memory_space<vmem>>, vector<8x32xf32>
    tpu.vector_store %arg8[%c16_278, %c0_279], %693 {strides = array<i32>} : memref<64x32xf32, #tpu.memory_space<vmem>>, vector<8x32xf32>,
    %c48_280 = arith.constant 48 : index
    %c0_281 = arith.constant 0 : index
    %696 = vector.load %arg9[%c48_280, %c0_281] : memref<64x128xf32, #tpu.memory_space<vmem>>, vector<8x128xf32>
    %697 = arith.truncf %675 : vector<8x32xf32> to vector<8x32xbf16>
    %cst_282 = arith.constant dense<0.000000e+00> : vector<8x128xf32>
    %698 = tpu.matmul %697, %421, %cst_282 {dimension_numbers = #tpu.dot_dimension_numbers<[1], [0], [0], [1], [0, 0, 1, 1], [], []>} : vector<8x32xbf16>, vector<32x128xbf16>, vector<8x128xf32> -> vector<8x128xf32>
    %699 = arith.addf %696, %698 : vector<8x128xf32>
    %c8_283 = arith.constant 8 : index
    %c0_284 = arith.constant 0 : index
    %700 = vector.load %arg10[%c8_283, %c0_284] : memref<64x128xf32, #tpu.memory_space<vmem>>, vector<8x128xf32>
    %701 = arith.truncf %693 : vector<8x32xf32> to vector<8x32xbf16>
    %cst_285 = arith.constant dense<0.000000e+00> : vector<8x128xf32>
    %702 = tpu.matmul %701, %423, %cst_285 {dimension_numbers = #tpu.dot_dimension_numbers<[1], [0], [0], [1], [0, 0, 1, 1], [], []>} : vector<8x32xbf16>, vector<32x128xbf16>, vector<8x128xf32> -> vector<8x128xf32>
    %703 = arith.addf %700, %702 : vector<8x128xf32>
    %cst_286 = arith.constant 5.000000e-01 : f32
    %704 = vector.broadcast %cst_286 : f32 to vector<8x128xf32>
    %705 = arith.mulf %704, %699 : vector<8x128xf32>
    %706 = arith.select %5, %699, %705 : vector<8x128xi1>, vector<8x128xf32>
    %707 = math.tanh %706 : vector<8x128xf32>
    %cst_287 = arith.constant 5.000000e-01 : f32
    %708 = vector.broadcast %cst_287 : f32 to vector<8x128xf32>
    %709 = arith.mulf %708, %707 : vector<8x128xf32>
    %cst_288 = arith.constant 5.000000e-01 : f32
    %710 = vector.broadcast %cst_288 : f32 to vector<8x128xf32>
    %711 = arith.addf %709, %710 : vector<8x128xf32>
    %712 = arith.select %5, %707, %711 : vector<8x128xi1>, vector<8x128xf32>
    %713 = vector.extract_strided_slice %712 {offsets = [0, 0], sizes = [8, 32], strides = [1, 1]} : vector<8x128xf32> to vector<8x32xf32>
    %714 = vector.extract_strided_slice %712 {offsets = [0, 32], sizes = [8, 32], strides = [1, 1]} : vector<8x128xf32> to vector<8x32xf32>
    %715 = vector.extract_strided_slice %712 {offsets = [0, 64], sizes = [8, 32], strides = [1, 1]} : vector<8x128xf32> to vector<8x32xf32>
    %716 = vector.extract_strided_slice %712 {offsets = [0, 96], sizes = [8, 32], strides = [1, 1]} : vector<8x128xf32> to vector<8x32xf32>
    %717 = arith.mulf %714, %673 : vector<8x32xf32>
    %718 = arith.mulf %713, %715 : vector<8x32xf32>
    %719 = arith.addf %717, %718 : vector<8x32xf32>
    %720 = math.tanh %719 : vector<8x32xf32>
    %721 = arith.mulf %716, %720 : vector<8x32xf32>
    %cst_289 = arith.constant 5.000000e-01 : f32
    %722 = vector.broadcast %cst_289 : f32 to vector<8x128xf32>
    %723 = arith.mulf %722, %703 : vector<8x128xf32>
    %724 = arith.select %5, %703, %723 : vector<8x128xi1>, vector<8x128xf32>
    %725 = math.tanh %724 : vector<8x128xf32>
    %cst_290 = arith.constant 5.000000e-01 : f32
    %726 = vector.broadcast %cst_290 : f32 to vector<8x128xf32>
    %727 = arith.mulf %726, %725 : vector<8x128xf32>
    %cst_291 = arith.constant 5.000000e-01 : f32
    %728 = vector.broadcast %cst_291 : f32 to vector<8x128xf32>
    %729 = arith.addf %727, %728 : vector<8x128xf32>
    %730 = arith.select %5, %725, %729 : vector<8x128xi1>, vector<8x128xf32>
    %731 = vector.extract_strided_slice %730 {offsets = [0, 0], sizes = [8, 32], strides = [1, 1]} : vector<8x128xf32> to vector<8x32xf32>
    %732 = vector.extract_strided_slice %730 {offsets = [0, 32], sizes = [8, 32], strides = [1, 1]} : vector<8x128xf32> to vector<8x32xf32>
    %733 = vector.extract_strided_slice %730 {offsets = [0, 64], sizes = [8, 32], strides = [1, 1]} : vector<8x128xf32> to vector<8x32xf32>
    %734 = vector.extract_strided_slice %730 {offsets = [0, 96], sizes = [8, 32], strides = [1, 1]} : vector<8x128xf32> to vector<8x32xf32>
    %735 = arith.mulf %732, %691 : vector<8x32xf32>
    %736 = arith.mulf %731, %733 : vector<8x32xf32>
    %737 = arith.addf %735, %736 : vector<8x32xf32>
    %738 = math.tanh %737 : vector<8x32xf32>
    %739 = arith.mulf %734, %738 : vector<8x32xf32>
    %c48_292 = arith.constant 48 : index
    %c0_293 = arith.constant 0 : index
    %740 = vector.load %arg7[%c48_292, %c0_293] : memref<64x32xf32, #tpu.memory_space<vmem>>, vector<8x32xf32>
    tpu.vector_store %arg7[%c48_292, %c0_293], %721 {strides = array<i32>} : memref<64x32xf32, #tpu.memory_space<vmem>>, vector<8x32xf32>,
    %c8_294 = arith.constant 8 : index
    %c0_295 = arith.constant 0 : index
    %741 = vector.load %arg8[%c8_294, %c0_295] : memref<64x32xf32, #tpu.memory_space<vmem>>, vector<8x32xf32>
    tpu.vector_store %arg8[%c8_294, %c0_295], %739 {strides = array<i32>} : memref<64x32xf32, #tpu.memory_space<vmem>>, vector<8x32xf32>,
    %c56_296 = arith.constant 56 : index
    %c0_297 = arith.constant 0 : index
    %742 = vector.load %arg9[%c56_296, %c0_297] : memref<64x128xf32, #tpu.memory_space<vmem>>, vector<8x128xf32>
    %743 = arith.truncf %721 : vector<8x32xf32> to vector<8x32xbf16>
    %cst_298 = arith.constant dense<0.000000e+00> : vector<8x128xf32>
    %744 = tpu.matmul %743, %421, %cst_298 {dimension_numbers = #tpu.dot_dimension_numbers<[1], [0], [0], [1], [0, 0, 1, 1], [], []>} : vector<8x32xbf16>, vector<32x128xbf16>, vector<8x128xf32> -> vector<8x128xf32>
    %745 = arith.addf %742, %744 : vector<8x128xf32>
    %c0_299 = arith.constant 0 : index
    %c0_300 = arith.constant 0 : index
    %746 = vector.load %arg10[%c0_299, %c0_300] : memref<64x128xf32, #tpu.memory_space<vmem>>, vector<8x128xf32>
    %747 = arith.truncf %739 : vector<8x32xf32> to vector<8x32xbf16>
    %cst_301 = arith.constant dense<0.000000e+00> : vector<8x128xf32>
    %748 = tpu.matmul %747, %423, %cst_301 {dimension_numbers = #tpu.dot_dimension_numbers<[1], [0], [0], [1], [0, 0, 1, 1], [], []>} : vector<8x32xbf16>, vector<32x128xbf16>, vector<8x128xf32> -> vector<8x128xf32>
    %749 = arith.addf %746, %748 : vector<8x128xf32>
    %cst_302 = arith.constant 5.000000e-01 : f32
    %750 = vector.broadcast %cst_302 : f32 to vector<8x128xf32>
    %751 = arith.mulf %750, %745 : vector<8x128xf32>
    %752 = arith.select %5, %745, %751 : vector<8x128xi1>, vector<8x128xf32>
    %753 = math.tanh %752 : vector<8x128xf32>
    %cst_303 = arith.constant 5.000000e-01 : f32
    %754 = vector.broadcast %cst_303 : f32 to vector<8x128xf32>
    %755 = arith.mulf %754, %753 : vector<8x128xf32>
    %cst_304 = arith.constant 5.000000e-01 : f32
    %756 = vector.broadcast %cst_304 : f32 to vector<8x128xf32>
    %757 = arith.addf %755, %756 : vector<8x128xf32>
    %758 = arith.select %5, %753, %757 : vector<8x128xi1>, vector<8x128xf32>
    %759 = vector.extract_strided_slice %758 {offsets = [0, 0], sizes = [8, 32], strides = [1, 1]} : vector<8x128xf32> to vector<8x32xf32>
    %760 = vector.extract_strided_slice %758 {offsets = [0, 32], sizes = [8, 32], strides = [1, 1]} : vector<8x128xf32> to vector<8x32xf32>
    %761 = vector.extract_strided_slice %758 {offsets = [0, 64], sizes = [8, 32], strides = [1, 1]} : vector<8x128xf32> to vector<8x32xf32>
    %762 = vector.extract_strided_slice %758 {offsets = [0, 96], sizes = [8, 32], strides = [1, 1]} : vector<8x128xf32> to vector<8x32xf32>
    %763 = arith.mulf %760, %719 : vector<8x32xf32>
    %764 = arith.mulf %759, %761 : vector<8x32xf32>
    %765 = arith.addf %763, %764 : vector<8x32xf32>
    %766 = math.tanh %765 : vector<8x32xf32>
    %767 = arith.mulf %762, %766 : vector<8x32xf32>
    %cst_305 = arith.constant 5.000000e-01 : f32
    %768 = vector.broadcast %cst_305 : f32 to vector<8x128xf32>
    %769 = arith.mulf %768, %749 : vector<8x128xf32>
    %770 = arith.select %5, %749, %769 : vector<8x128xi1>, vector<8x128xf32>
    %771 = math.tanh %770 : vector<8x128xf32>
    %cst_306 = arith.constant 5.000000e-01 : f32
    %772 = vector.broadcast %cst_306 : f32 to vector<8x128xf32>
    %773 = arith.mulf %772, %771 : vector<8x128xf32>
    %cst_307 = arith.constant 5.000000e-01 : f32
    %774 = vector.broadcast %cst_307 : f32 to vector<8x128xf32>
    %775 = arith.addf %773, %774 : vector<8x128xf32>
    %776 = arith.select %5, %771, %775 : vector<8x128xi1>, vector<8x128xf32>
    %777 = vector.extract_strided_slice %776 {offsets = [0, 0], sizes = [8, 32], strides = [1, 1]} : vector<8x128xf32> to vector<8x32xf32>
    %778 = vector.extract_strided_slice %776 {offsets = [0, 32], sizes = [8, 32], strides = [1, 1]} : vector<8x128xf32> to vector<8x32xf32>
    %779 = vector.extract_strided_slice %776 {offsets = [0, 64], sizes = [8, 32], strides = [1, 1]} : vector<8x128xf32> to vector<8x32xf32>
    %780 = vector.extract_strided_slice %776 {offsets = [0, 96], sizes = [8, 32], strides = [1, 1]} : vector<8x128xf32> to vector<8x32xf32>
    %781 = arith.mulf %778, %737 : vector<8x32xf32>
    %782 = arith.mulf %777, %779 : vector<8x32xf32>
    %783 = arith.addf %781, %782 : vector<8x32xf32>
    %784 = math.tanh %783 : vector<8x32xf32>
    %785 = arith.mulf %780, %784 : vector<8x32xf32>
    %c56_308 = arith.constant 56 : index
    %c0_309 = arith.constant 0 : index
    %786 = vector.load %arg7[%c56_308, %c0_309] : memref<64x32xf32, #tpu.memory_space<vmem>>, vector<8x32xf32>
    tpu.vector_store %arg7[%c56_308, %c0_309], %767 {strides = array<i32>} : memref<64x32xf32, #tpu.memory_space<vmem>>, vector<8x32xf32>,
    %c0_310 = arith.constant 0 : index
    %c0_311 = arith.constant 0 : index
    %787 = vector.load %arg8[%c0_310, %c0_311] : memref<64x32xf32, #tpu.memory_space<vmem>>, vector<8x32xf32>
    tpu.vector_store %arg8[%c0_310, %c0_311], %785 {strides = array<i32>} : memref<64x32xf32, #tpu.memory_space<vmem>>, vector<8x32xf32>,
    %c0_312 = arith.constant 0 : index
    %c0_313 = arith.constant 0 : index
    %788 = vector.load %arg7[%c0_312, %c0_313] : memref<64x32xf32, #tpu.memory_space<vmem>>, vector<64x32xf32>
    %789 = arith.truncf %788 : vector<64x32xf32> to vector<64x32xbf16>
    %c0_314 = arith.constant 0 : index
    %c0_315 = arith.constant 0 : index
    %790 = vector.load %arg8[%c0_314, %c0_315] : memref<64x32xf32, #tpu.memory_space<vmem>>, vector<64x32xf32>
    %791 = arith.truncf %790 : vector<64x32xf32> to vector<64x32xbf16>
    %c4 = arith.constant 4 : index
    %c0_316 = arith.constant 0 : index
    %c0_317 = arith.constant 0 : index
    %c0_318 = arith.constant 0 : index
    %792 = vector.load %arg1[%c4, %c0_316, %c0_317, %c0_318] : memref<6x2x32x128xbf16, #tpu.memory_space<vmem>>, vector<1x1x32x128xbf16>
    %793 = vector.shape_cast %792 : vector<1x1x32x128xbf16> to vector<32x128xbf16>
    %cst_319 = arith.constant dense<0.000000e+00> : vector<64x128xf32>
    %794 = tpu.matmul %789, %793, %cst_319 {dimension_numbers = #tpu.dot_dimension_numbers<[1], [0], [0], [1], [0, 0, 1, 1], [], []>} : vector<64x32xbf16>, vector<32x128xbf16>, vector<64x128xf32> -> vector<64x128xf32>
    %c4_320 = arith.constant 4 : index
    %c1_321 = arith.constant 1 : index
    %c0_322 = arith.constant 0 : index
    %c0_323 = arith.constant 0 : index
    %795 = vector.load %arg1[%c4_320, %c1_321, %c0_322, %c0_323] : memref<6x2x32x128xbf16, #tpu.memory_space<vmem>>, vector<1x1x32x128xbf16>
    %796 = vector.shape_cast %795 : vector<1x1x32x128xbf16> to vector<32x128xbf16>
    %cst_324 = arith.constant dense<0.000000e+00> : vector<64x128xf32>
    %797 = tpu.matmul %791, %796, %cst_324 {dimension_numbers = #tpu.dot_dimension_numbers<[1], [0], [0], [1], [0, 0, 1, 1], [], []>} : vector<64x32xbf16>, vector<32x128xbf16>, vector<64x128xf32> -> vector<64x128xf32>
    %798 = arith.addf %794, %797 : vector<64x128xf32>
    %c4_325 = arith.constant 4 : index
    %c0_326 = arith.constant 0 : index
    %c0_327 = arith.constant 0 : index
    %799 = vector.load %arg3[%c4_325, %c0_326, %c0_327] : memref<6x1x128xf32, #tpu.memory_space<vmem>>, vector<1x1x128xf32>
    %800 = vector.shape_cast %799 : vector<1x1x128xf32> to vector<1x128xf32>
    %801 = vector.broadcast %800 : vector<1x128xf32> to vector<64x128xf32>
    %802 = arith.addf %798, %801 : vector<64x128xf32>
    %c0_328 = arith.constant 0 : index
    %c0_329 = arith.constant 0 : index
    %803 = vector.load %arg9[%c0_328, %c0_329] : memref<64x128xf32, #tpu.memory_space<vmem>>, vector<64x128xf32>
    tpu.vector_store %arg9[%c0_328, %c0_329], %802 {strides = array<i32>} : memref<64x128xf32, #tpu.memory_space<vmem>>, vector<64x128xf32>,
    %c56_330 = arith.constant 56 : index
    %c0_331 = arith.constant 0 : index
    %804 = vector.load %arg7[%c56_330, %c0_331] : memref<64x32xf32, #tpu.memory_space<vmem>>, vector<8x32xf32>
    %805 = arith.truncf %804 : vector<8x32xf32> to vector<8x32xbf16>
    %c56_332 = arith.constant 56 : index
    %c0_333 = arith.constant 0 : index
    %806 = vector.load %arg8[%c56_332, %c0_333] : memref<64x32xf32, #tpu.memory_space<vmem>>, vector<8x32xf32>
    %807 = arith.truncf %806 : vector<8x32xf32> to vector<8x32xbf16>
    %c5 = arith.constant 5 : index
    %c0_334 = arith.constant 0 : index
    %c0_335 = arith.constant 0 : index
    %c0_336 = arith.constant 0 : index
    %808 = vector.load %arg1[%c5, %c0_334, %c0_335, %c0_336] : memref<6x2x32x128xbf16, #tpu.memory_space<vmem>>, vector<1x1x32x128xbf16>
    %809 = vector.shape_cast %808 : vector<1x1x32x128xbf16> to vector<32x128xbf16>
    %cst_337 = arith.constant dense<0.000000e+00> : vector<8x128xf32>
    %810 = tpu.matmul %805, %809, %cst_337 {dimension_numbers = #tpu.dot_dimension_numbers<[1], [0], [0], [1], [0, 0, 1, 1], [], []>} : vector<8x32xbf16>, vector<32x128xbf16>, vector<8x128xf32> -> vector<8x128xf32>
    %c5_338 = arith.constant 5 : index
    %c1_339 = arith.constant 1 : index
    %c0_340 = arith.constant 0 : index
    %c0_341 = arith.constant 0 : index
    %811 = vector.load %arg1[%c5_338, %c1_339, %c0_340, %c0_341] : memref<6x2x32x128xbf16, #tpu.memory_space<vmem>>, vector<1x1x32x128xbf16>
    %812 = vector.shape_cast %811 : vector<1x1x32x128xbf16> to vector<32x128xbf16>
    %cst_342 = arith.constant dense<0.000000e+00> : vector<8x128xf32>
    %813 = tpu.matmul %807, %812, %cst_342 {dimension_numbers = #tpu.dot_dimension_numbers<[1], [0], [0], [1], [0, 0, 1, 1], [], []>} : vector<8x32xbf16>, vector<32x128xbf16>, vector<8x128xf32> -> vector<8x128xf32>
    %814 = arith.addf %810, %813 : vector<8x128xf32>
    %c5_343 = arith.constant 5 : index
    %c0_344 = arith.constant 0 : index
    %c0_345 = arith.constant 0 : index
    %815 = vector.load %arg3[%c5_343, %c0_344, %c0_345] : memref<6x1x128xf32, #tpu.memory_space<vmem>>, vector<1x1x128xf32>
    %816 = vector.shape_cast %815 : vector<1x1x128xf32> to vector<1x128xf32>
    %817 = vector.broadcast %816 : vector<1x128xf32> to vector<8x128xf32>
    %818 = arith.addf %814, %817 : vector<8x128xf32>
    %c56_346 = arith.constant 56 : index
    %c0_347 = arith.constant 0 : index
    %819 = vector.load %arg10[%c56_346, %c0_347] : memref<64x128xf32, #tpu.memory_space<vmem>>, vector<8x128xf32>
    tpu.vector_store %arg10[%c56_346, %c0_347], %818 {strides = array<i32>} : memref<64x128xf32, #tpu.memory_space<vmem>>, vector<8x128xf32>,
    %c4_348 = arith.constant 4 : index
    %c0_349 = arith.constant 0 : index
    %c0_350 = arith.constant 0 : index
    %820 = vector.load %arg2[%c4_348, %c0_349, %c0_350] : memref<6x32x128xbf16, #tpu.memory_space<vmem>>, vector<1x32x128xbf16>
    %821 = vector.shape_cast %820 : vector<1x32x128xbf16> to vector<32x128xbf16>
    %cst_351 = arith.constant 0.000000e+00 : f32
    %822 = vector.broadcast %cst_351 : f32 to vector<8x32xf32>
    %cst_352 = arith.constant 0.000000e+00 : f32
    %823 = vector.broadcast %cst_352 : f32 to vector<8x32xf32>
    %c0_353 = arith.constant 0 : index
    %c0_354 = arith.constant 0 : index
    %824 = vector.load %arg9[%c0_353, %c0_354] : memref<64x128xf32, #tpu.memory_space<vmem>>, vector<8x128xf32>
    %c56_355 = arith.constant 56 : index
    %c0_356 = arith.constant 0 : index
    %825 = vector.load %arg10[%c56_355, %c0_356] : memref<64x128xf32, #tpu.memory_space<vmem>>, vector<8x128xf32>
    %cst_357 = arith.constant 5.000000e-01 : f32
    %826 = vector.broadcast %cst_357 : f32 to vector<8x128xf32>
    %827 = arith.mulf %826, %824 : vector<8x128xf32>
    %828 = arith.select %5, %824, %827 : vector<8x128xi1>, vector<8x128xf32>
    %829 = math.tanh %828 : vector<8x128xf32>
    %cst_358 = arith.constant 5.000000e-01 : f32
    %830 = vector.broadcast %cst_358 : f32 to vector<8x128xf32>
    %831 = arith.mulf %830, %829 : vector<8x128xf32>
    %cst_359 = arith.constant 5.000000e-01 : f32
    %832 = vector.broadcast %cst_359 : f32 to vector<8x128xf32>
    %833 = arith.addf %831, %832 : vector<8x128xf32>
    %834 = arith.select %5, %829, %833 : vector<8x128xi1>, vector<8x128xf32>
    %835 = vector.extract_strided_slice %834 {offsets = [0, 0], sizes = [8, 32], strides = [1, 1]} : vector<8x128xf32> to vector<8x32xf32>
    %836 = vector.extract_strided_slice %834 {offsets = [0, 32], sizes = [8, 32], strides = [1, 1]} : vector<8x128xf32> to vector<8x32xf32>
    %837 = vector.extract_strided_slice %834 {offsets = [0, 64], sizes = [8, 32], strides = [1, 1]} : vector<8x128xf32> to vector<8x32xf32>
    %838 = vector.extract_strided_slice %834 {offsets = [0, 96], sizes = [8, 32], strides = [1, 1]} : vector<8x128xf32> to vector<8x32xf32>
    %839 = arith.mulf %836, %822 : vector<8x32xf32>
    %840 = arith.mulf %835, %837 : vector<8x32xf32>
    %841 = arith.addf %839, %840 : vector<8x32xf32>
    %842 = math.tanh %841 : vector<8x32xf32>
    %843 = arith.mulf %838, %842 : vector<8x32xf32>
    %cst_360 = arith.constant 5.000000e-01 : f32
    %844 = vector.broadcast %cst_360 : f32 to vector<8x128xf32>
    %845 = arith.mulf %844, %825 : vector<8x128xf32>
    %846 = arith.select %5, %825, %845 : vector<8x128xi1>, vector<8x128xf32>
    %847 = math.tanh %846 : vector<8x128xf32>
    %cst_361 = arith.constant 5.000000e-01 : f32
    %848 = vector.broadcast %cst_361 : f32 to vector<8x128xf32>
    %849 = arith.mulf %848, %847 : vector<8x128xf32>
    %cst_362 = arith.constant 5.000000e-01 : f32
    %850 = vector.broadcast %cst_362 : f32 to vector<8x128xf32>
    %851 = arith.addf %849, %850 : vector<8x128xf32>
    %852 = arith.select %5, %847, %851 : vector<8x128xi1>, vector<8x128xf32>
    %853 = vector.extract_strided_slice %852 {offsets = [0, 0], sizes = [8, 32], strides = [1, 1]} : vector<8x128xf32> to vector<8x32xf32>
    %854 = vector.extract_strided_slice %852 {offsets = [0, 32], sizes = [8, 32], strides = [1, 1]} : vector<8x128xf32> to vector<8x32xf32>
    %855 = vector.extract_strided_slice %852 {offsets = [0, 64], sizes = [8, 32], strides = [1, 1]} : vector<8x128xf32> to vector<8x32xf32>
    %856 = vector.extract_strided_slice %852 {offsets = [0, 96], sizes = [8, 32], strides = [1, 1]} : vector<8x128xf32> to vector<8x32xf32>
    %857 = arith.mulf %854, %823 : vector<8x32xf32>
    %858 = arith.mulf %853, %855 : vector<8x32xf32>
    %859 = arith.addf %857, %858 : vector<8x32xf32>
    %860 = math.tanh %859 : vector<8x32xf32>
    %861 = arith.mulf %856, %860 : vector<8x32xf32>
    %c8_363 = arith.constant 8 : index
    %c0_364 = arith.constant 0 : index
    %862 = vector.load %arg9[%c8_363, %c0_364] : memref<64x128xf32, #tpu.memory_space<vmem>>, vector<8x128xf32>
    %863 = arith.truncf %843 : vector<8x32xf32> to vector<8x32xbf16>
    %cst_365 = arith.constant dense<0.000000e+00> : vector<8x128xf32>
    %864 = tpu.matmul %863, %821, %cst_365 {dimension_numbers = #tpu.dot_dimension_numbers<[1], [0], [0], [1], [0, 0, 1, 1], [], []>} : vector<8x32xbf16>, vector<32x128xbf16>, vector<8x128xf32> -> vector<8x128xf32>
    %865 = arith.addf %862, %864 : vector<8x128xf32>
    %cst_366 = arith.constant 5.000000e-01 : f32
    %866 = vector.broadcast %cst_366 : f32 to vector<8x128xf32>
    %867 = arith.mulf %866, %865 : vector<8x128xf32>
    %868 = arith.select %5, %865, %867 : vector<8x128xi1>, vector<8x128xf32>
    %869 = math.tanh %868 : vector<8x128xf32>
    %cst_367 = arith.constant 5.000000e-01 : f32
    %870 = vector.broadcast %cst_367 : f32 to vector<8x128xf32>
    %871 = arith.mulf %870, %869 : vector<8x128xf32>
    %cst_368 = arith.constant 5.000000e-01 : f32
    %872 = vector.broadcast %cst_368 : f32 to vector<8x128xf32>
    %873 = arith.addf %871, %872 : vector<8x128xf32>
    %874 = arith.select %5, %869, %873 : vector<8x128xi1>, vector<8x128xf32>
    %875 = vector.extract_strided_slice %874 {offsets = [0, 0], sizes = [8, 32], strides = [1, 1]} : vector<8x128xf32> to vector<8x32xf32>
    %876 = vector.extract_strided_slice %874 {offsets = [0, 32], sizes = [8, 32], strides = [1, 1]} : vector<8x128xf32> to vector<8x32xf32>
    %877 = vector.extract_strided_slice %874 {offsets = [0, 64], sizes = [8, 32], strides = [1, 1]} : vector<8x128xf32> to vector<8x32xf32>
    %878 = vector.extract_strided_slice %874 {offsets = [0, 96], sizes = [8, 32], strides = [1, 1]} : vector<8x128xf32> to vector<8x32xf32>
    %879 = arith.mulf %876, %841 : vector<8x32xf32>
    %880 = arith.mulf %875, %877 : vector<8x32xf32>
    %881 = arith.addf %879, %880 : vector<8x32xf32>
    %882 = math.tanh %881 : vector<8x32xf32>
    %883 = arith.mulf %878, %882 : vector<8x32xf32>
    %c16_369 = arith.constant 16 : index
    %c0_370 = arith.constant 0 : index
    %884 = vector.load %arg9[%c16_369, %c0_370] : memref<64x128xf32, #tpu.memory_space<vmem>>, vector<8x128xf32>
    %885 = arith.truncf %883 : vector<8x32xf32> to vector<8x32xbf16>
    %cst_371 = arith.constant dense<0.000000e+00> : vector<8x128xf32>
    %886 = tpu.matmul %885, %821, %cst_371 {dimension_numbers = #tpu.dot_dimension_numbers<[1], [0], [0], [1], [0, 0, 1, 1], [], []>} : vector<8x32xbf16>, vector<32x128xbf16>, vector<8x128xf32> -> vector<8x128xf32>
    %887 = arith.addf %884, %886 : vector<8x128xf32>
    %cst_372 = arith.constant 5.000000e-01 : f32
    %888 = vector.broadcast %cst_372 : f32 to vector<8x128xf32>
    %889 = arith.mulf %888, %887 : vector<8x128xf32>
    %890 = arith.select %5, %887, %889 : vector<8x128xi1>, vector<8x128xf32>
    %891 = math.tanh %890 : vector<8x128xf32>
    %cst_373 = arith.constant 5.000000e-01 : f32
    %892 = vector.broadcast %cst_373 : f32 to vector<8x128xf32>
    %893 = arith.mulf %892, %891 : vector<8x128xf32>
    %cst_374 = arith.constant 5.000000e-01 : f32
    %894 = vector.broadcast %cst_374 : f32 to vector<8x128xf32>
    %895 = arith.addf %893, %894 : vector<8x128xf32>
    %896 = arith.select %5, %891, %895 : vector<8x128xi1>, vector<8x128xf32>
    %897 = vector.extract_strided_slice %896 {offsets = [0, 0], sizes = [8, 32], strides = [1, 1]} : vector<8x128xf32> to vector<8x32xf32>
    %898 = vector.extract_strided_slice %896 {offsets = [0, 32], sizes = [8, 32], strides = [1, 1]} : vector<8x128xf32> to vector<8x32xf32>
    %899 = vector.extract_strided_slice %896 {offsets = [0, 64], sizes = [8, 32], strides = [1, 1]} : vector<8x128xf32> to vector<8x32xf32>
    %900 = vector.extract_strided_slice %896 {offsets = [0, 96], sizes = [8, 32], strides = [1, 1]} : vector<8x128xf32> to vector<8x32xf32>
    %901 = arith.mulf %898, %881 : vector<8x32xf32>
    %902 = arith.mulf %897, %899 : vector<8x32xf32>
    %903 = arith.addf %901, %902 : vector<8x32xf32>
    %904 = math.tanh %903 : vector<8x32xf32>
    %905 = arith.mulf %900, %904 : vector<8x32xf32>
    %c24_375 = arith.constant 24 : index
    %c0_376 = arith.constant 0 : index
    %906 = vector.load %arg9[%c24_375, %c0_376] : memref<64x128xf32, #tpu.memory_space<vmem>>, vector<8x128xf32>
    %907 = arith.truncf %905 : vector<8x32xf32> to vector<8x32xbf16>
    %cst_377 = arith.constant dense<0.000000e+00> : vector<8x128xf32>
    %908 = tpu.matmul %907, %821, %cst_377 {dimension_numbers = #tpu.dot_dimension_numbers<[1], [0], [0], [1], [0, 0, 1, 1], [], []>} : vector<8x32xbf16>, vector<32x128xbf16>, vector<8x128xf32> -> vector<8x128xf32>
    %909 = arith.addf %906, %908 : vector<8x128xf32>
    %cst_378 = arith.constant 5.000000e-01 : f32
    %910 = vector.broadcast %cst_378 : f32 to vector<8x128xf32>
    %911 = arith.mulf %910, %909 : vector<8x128xf32>
    %912 = arith.select %5, %909, %911 : vector<8x128xi1>, vector<8x128xf32>
    %913 = math.tanh %912 : vector<8x128xf32>
    %cst_379 = arith.constant 5.000000e-01 : f32
    %914 = vector.broadcast %cst_379 : f32 to vector<8x128xf32>
    %915 = arith.mulf %914, %913 : vector<8x128xf32>
    %cst_380 = arith.constant 5.000000e-01 : f32
    %916 = vector.broadcast %cst_380 : f32 to vector<8x128xf32>
    %917 = arith.addf %915, %916 : vector<8x128xf32>
    %918 = arith.select %5, %913, %917 : vector<8x128xi1>, vector<8x128xf32>
    %919 = vector.extract_strided_slice %918 {offsets = [0, 0], sizes = [8, 32], strides = [1, 1]} : vector<8x128xf32> to vector<8x32xf32>
    %920 = vector.extract_strided_slice %918 {offsets = [0, 32], sizes = [8, 32], strides = [1, 1]} : vector<8x128xf32> to vector<8x32xf32>
    %921 = vector.extract_strided_slice %918 {offsets = [0, 64], sizes = [8, 32], strides = [1, 1]} : vector<8x128xf32> to vector<8x32xf32>
    %922 = vector.extract_strided_slice %918 {offsets = [0, 96], sizes = [8, 32], strides = [1, 1]} : vector<8x128xf32> to vector<8x32xf32>
    %923 = arith.mulf %920, %903 : vector<8x32xf32>
    %924 = arith.mulf %919, %921 : vector<8x32xf32>
    %925 = arith.addf %923, %924 : vector<8x32xf32>
    %926 = math.tanh %925 : vector<8x32xf32>
    %927 = arith.mulf %922, %926 : vector<8x32xf32>
    %c32_381 = arith.constant 32 : index
    %c0_382 = arith.constant 0 : index
    %928 = vector.load %arg9[%c32_381, %c0_382] : memref<64x128xf32, #tpu.memory_space<vmem>>, vector<8x128xf32>
    %929 = arith.truncf %927 : vector<8x32xf32> to vector<8x32xbf16>
    %cst_383 = arith.constant dense<0.000000e+00> : vector<8x128xf32>
    %930 = tpu.matmul %929, %821, %cst_383 {dimension_numbers = #tpu.dot_dimension_numbers<[1], [0], [0], [1], [0, 0, 1, 1], [], []>} : vector<8x32xbf16>, vector<32x128xbf16>, vector<8x128xf32> -> vector<8x128xf32>
    %931 = arith.addf %928, %930 : vector<8x128xf32>
    %cst_384 = arith.constant 5.000000e-01 : f32
    %932 = vector.broadcast %cst_384 : f32 to vector<8x128xf32>
    %933 = arith.mulf %932, %931 : vector<8x128xf32>
    %934 = arith.select %5, %931, %933 : vector<8x128xi1>, vector<8x128xf32>
    %935 = math.tanh %934 : vector<8x128xf32>
    %cst_385 = arith.constant 5.000000e-01 : f32
    %936 = vector.broadcast %cst_385 : f32 to vector<8x128xf32>
    %937 = arith.mulf %936, %935 : vector<8x128xf32>
    %cst_386 = arith.constant 5.000000e-01 : f32
    %938 = vector.broadcast %cst_386 : f32 to vector<8x128xf32>
    %939 = arith.addf %937, %938 : vector<8x128xf32>
    %940 = arith.select %5, %935, %939 : vector<8x128xi1>, vector<8x128xf32>
    %941 = vector.extract_strided_slice %940 {offsets = [0, 0], sizes = [8, 32], strides = [1, 1]} : vector<8x128xf32> to vector<8x32xf32>
    %942 = vector.extract_strided_slice %940 {offsets = [0, 32], sizes = [8, 32], strides = [1, 1]} : vector<8x128xf32> to vector<8x32xf32>
    %943 = vector.extract_strided_slice %940 {offsets = [0, 64], sizes = [8, 32], strides = [1, 1]} : vector<8x128xf32> to vector<8x32xf32>
    %944 = vector.extract_strided_slice %940 {offsets = [0, 96], sizes = [8, 32], strides = [1, 1]} : vector<8x128xf32> to vector<8x32xf32>
    %945 = arith.mulf %942, %925 : vector<8x32xf32>
    %946 = arith.mulf %941, %943 : vector<8x32xf32>
    %947 = arith.addf %945, %946 : vector<8x32xf32>
    %948 = math.tanh %947 : vector<8x32xf32>
    %949 = arith.mulf %944, %948 : vector<8x32xf32>
    %c40_387 = arith.constant 40 : index
    %c0_388 = arith.constant 0 : index
    %950 = vector.load %arg9[%c40_387, %c0_388] : memref<64x128xf32, #tpu.memory_space<vmem>>, vector<8x128xf32>
    %951 = arith.truncf %949 : vector<8x32xf32> to vector<8x32xbf16>
    %cst_389 = arith.constant dense<0.000000e+00> : vector<8x128xf32>
    %952 = tpu.matmul %951, %821, %cst_389 {dimension_numbers = #tpu.dot_dimension_numbers<[1], [0], [0], [1], [0, 0, 1, 1], [], []>} : vector<8x32xbf16>, vector<32x128xbf16>, vector<8x128xf32> -> vector<8x128xf32>
    %953 = arith.addf %950, %952 : vector<8x128xf32>
    %cst_390 = arith.constant 5.000000e-01 : f32
    %954 = vector.broadcast %cst_390 : f32 to vector<8x128xf32>
    %955 = arith.mulf %954, %953 : vector<8x128xf32>
    %956 = arith.select %5, %953, %955 : vector<8x128xi1>, vector<8x128xf32>
    %957 = math.tanh %956 : vector<8x128xf32>
    %cst_391 = arith.constant 5.000000e-01 : f32
    %958 = vector.broadcast %cst_391 : f32 to vector<8x128xf32>
    %959 = arith.mulf %958, %957 : vector<8x128xf32>
    %cst_392 = arith.constant 5.000000e-01 : f32
    %960 = vector.broadcast %cst_392 : f32 to vector<8x128xf32>
    %961 = arith.addf %959, %960 : vector<8x128xf32>
    %962 = arith.select %5, %957, %961 : vector<8x128xi1>, vector<8x128xf32>
    %963 = vector.extract_strided_slice %962 {offsets = [0, 0], sizes = [8, 32], strides = [1, 1]} : vector<8x128xf32> to vector<8x32xf32>
    %964 = vector.extract_strided_slice %962 {offsets = [0, 32], sizes = [8, 32], strides = [1, 1]} : vector<8x128xf32> to vector<8x32xf32>
    %965 = vector.extract_strided_slice %962 {offsets = [0, 64], sizes = [8, 32], strides = [1, 1]} : vector<8x128xf32> to vector<8x32xf32>
    %966 = vector.extract_strided_slice %962 {offsets = [0, 96], sizes = [8, 32], strides = [1, 1]} : vector<8x128xf32> to vector<8x32xf32>
    %967 = arith.mulf %964, %947 : vector<8x32xf32>
    %968 = arith.mulf %963, %965 : vector<8x32xf32>
    %969 = arith.addf %967, %968 : vector<8x32xf32>
    %970 = math.tanh %969 : vector<8x32xf32>
    %971 = arith.mulf %966, %970 : vector<8x32xf32>
    %c48_393 = arith.constant 48 : index
    %c0_394 = arith.constant 0 : index
    %972 = vector.load %arg9[%c48_393, %c0_394] : memref<64x128xf32, #tpu.memory_space<vmem>>, vector<8x128xf32>
    %973 = arith.truncf %971 : vector<8x32xf32> to vector<8x32xbf16>
    %cst_395 = arith.constant dense<0.000000e+00> : vector<8x128xf32>
    %974 = tpu.matmul %973, %821, %cst_395 {dimension_numbers = #tpu.dot_dimension_numbers<[1], [0], [0], [1], [0, 0, 1, 1], [], []>} : vector<8x32xbf16>, vector<32x128xbf16>, vector<8x128xf32> -> vector<8x128xf32>
    %975 = arith.addf %972, %974 : vector<8x128xf32>
    %cst_396 = arith.constant 5.000000e-01 : f32
    %976 = vector.broadcast %cst_396 : f32 to vector<8x128xf32>
    %977 = arith.mulf %976, %975 : vector<8x128xf32>
    %978 = arith.select %5, %975, %977 : vector<8x128xi1>, vector<8x128xf32>
    %979 = math.tanh %978 : vector<8x128xf32>
    %cst_397 = arith.constant 5.000000e-01 : f32
    %980 = vector.broadcast %cst_397 : f32 to vector<8x128xf32>
    %981 = arith.mulf %980, %979 : vector<8x128xf32>
    %cst_398 = arith.constant 5.000000e-01 : f32
    %982 = vector.broadcast %cst_398 : f32 to vector<8x128xf32>
    %983 = arith.addf %981, %982 : vector<8x128xf32>
    %984 = arith.select %5, %979, %983 : vector<8x128xi1>, vector<8x128xf32>
    %985 = vector.extract_strided_slice %984 {offsets = [0, 0], sizes = [8, 32], strides = [1, 1]} : vector<8x128xf32> to vector<8x32xf32>
    %986 = vector.extract_strided_slice %984 {offsets = [0, 32], sizes = [8, 32], strides = [1, 1]} : vector<8x128xf32> to vector<8x32xf32>
    %987 = vector.extract_strided_slice %984 {offsets = [0, 64], sizes = [8, 32], strides = [1, 1]} : vector<8x128xf32> to vector<8x32xf32>
    %988 = vector.extract_strided_slice %984 {offsets = [0, 96], sizes = [8, 32], strides = [1, 1]} : vector<8x128xf32> to vector<8x32xf32>
    %989 = arith.mulf %986, %969 : vector<8x32xf32>
    %990 = arith.mulf %985, %987 : vector<8x32xf32>
    %991 = arith.addf %989, %990 : vector<8x32xf32>
    %992 = math.tanh %991 : vector<8x32xf32>
    %993 = arith.mulf %988, %992 : vector<8x32xf32>
    %c56_399 = arith.constant 56 : index
    %c0_400 = arith.constant 0 : index
    %994 = vector.load %arg9[%c56_399, %c0_400] : memref<64x128xf32, #tpu.memory_space<vmem>>, vector<8x128xf32>
    %995 = arith.truncf %993 : vector<8x32xf32> to vector<8x32xbf16>
    %cst_401 = arith.constant dense<0.000000e+00> : vector<8x128xf32>
    %996 = tpu.matmul %995, %821, %cst_401 {dimension_numbers = #tpu.dot_dimension_numbers<[1], [0], [0], [1], [0, 0, 1, 1], [], []>} : vector<8x32xbf16>, vector<32x128xbf16>, vector<8x128xf32> -> vector<8x128xf32>
    %997 = arith.addf %994, %996 : vector<8x128xf32>
    %cst_402 = arith.constant 5.000000e-01 : f32
    %998 = vector.broadcast %cst_402 : f32 to vector<8x128xf32>
    %999 = arith.mulf %998, %997 : vector<8x128xf32>
    %1000 = arith.select %5, %997, %999 : vector<8x128xi1>, vector<8x128xf32>
    %1001 = math.tanh %1000 : vector<8x128xf32>
    %cst_403 = arith.constant 5.000000e-01 : f32
    %1002 = vector.broadcast %cst_403 : f32 to vector<8x128xf32>
    %1003 = arith.mulf %1002, %1001 : vector<8x128xf32>
    %cst_404 = arith.constant 5.000000e-01 : f32
    %1004 = vector.broadcast %cst_404 : f32 to vector<8x128xf32>
    %1005 = arith.addf %1003, %1004 : vector<8x128xf32>
    %1006 = arith.select %5, %1001, %1005 : vector<8x128xi1>, vector<8x128xf32>
    %1007 = vector.extract_strided_slice %1006 {offsets = [0, 0], sizes = [8, 32], strides = [1, 1]} : vector<8x128xf32> to vector<8x32xf32>
    %1008 = vector.extract_strided_slice %1006 {offsets = [0, 32], sizes = [8, 32], strides = [1, 1]} : vector<8x128xf32> to vector<8x32xf32>
    %1009 = vector.extract_strided_slice %1006 {offsets = [0, 64], sizes = [8, 32], strides = [1, 1]} : vector<8x128xf32> to vector<8x32xf32>
    %1010 = vector.extract_strided_slice %1006 {offsets = [0, 96], sizes = [8, 32], strides = [1, 1]} : vector<8x128xf32> to vector<8x32xf32>
    %1011 = arith.mulf %1008, %991 : vector<8x32xf32>
    %1012 = arith.mulf %1007, %1009 : vector<8x32xf32>
    %1013 = arith.addf %1011, %1012 : vector<8x32xf32>
    %1014 = math.tanh %1013 : vector<8x32xf32>
    %1015 = arith.mulf %1010, %1014 : vector<8x32xf32>
    %1016 = arith.truncf %1015 : vector<8x32xf32> to vector<8x32xbf16>
    %c0_405 = arith.constant 0 : index
    %c0_406 = arith.constant 0 : index
    %c0_407 = arith.constant 0 : index
    %1017 = vector.load %arg4[%c0_405, %c0_406, %c0_407] : memref<2x32x128xbf16, #tpu.memory_space<vmem>>, vector<1x32x128xbf16>
    %1018 = vector.shape_cast %1017 : vector<1x32x128xbf16> to vector<32x128xbf16>
    %cst_408 = arith.constant dense<0.000000e+00> : vector<8x128xf32>
    %1019 = tpu.matmul %1016, %1018, %cst_408 {dimension_numbers = #tpu.dot_dimension_numbers<[1], [0], [0], [1], [0, 0, 1, 1], [], []>} : vector<8x32xbf16>, vector<32x128xbf16>, vector<8x128xf32> -> vector<8x128xf32>
    %1020 = arith.truncf %861 : vector<8x32xf32> to vector<8x32xbf16>
    %c1_409 = arith.constant 1 : index
    %c0_410 = arith.constant 0 : index
    %c0_411 = arith.constant 0 : index
    %1021 = vector.load %arg4[%c1_409, %c0_410, %c0_411] : memref<2x32x128xbf16, #tpu.memory_space<vmem>>, vector<1x32x128xbf16>
    %1022 = vector.shape_cast %1021 : vector<1x32x128xbf16> to vector<32x128xbf16>
    %cst_412 = arith.constant dense<0.000000e+00> : vector<8x128xf32>
    %1023 = tpu.matmul %1020, %1022, %cst_412 {dimension_numbers = #tpu.dot_dimension_numbers<[1], [0], [0], [1], [0, 0, 1, 1], [], []>} : vector<8x32xbf16>, vector<32x128xbf16>, vector<8x128xf32> -> vector<8x128xf32>
    %1024 = arith.addf %1019, %1023 : vector<8x128xf32>
    %c0_413 = arith.constant 0 : index
    %c0_414 = arith.constant 0 : index
    %1025 = vector.load %arg5[%c0_413, %c0_414] : memref<1x128xf32, #tpu.memory_space<vmem>>, vector<1x128xf32>
    %1026 = vector.broadcast %1025 : vector<1x128xf32> to vector<8x128xf32>
    %1027 = arith.addf %1024, %1026 : vector<8x128xf32>
    %c0_415 = arith.constant 0 : index
    %c0_416 = arith.constant 0 : index
    %1028 = vector.load %arg6[%c0_415, %c0_416] : memref<8x128xf32, #tpu.memory_space<vmem>>, vector<8x128xf32>
    tpu.vector_store %arg6[%c0_415, %c0_416], %1027 {strides = array<i32>} : memref<8x128xf32, #tpu.memory_space<vmem>>, vector<8x128xf32>,
    return
  }
}

</mosaic_0001>

<bundles_post_ra>
// kernel: bilstm_forward.1
= control target key start
LH: loop header
LB: loop body
LE: loop exit
PB: predicated region body
PF: predicated region fallthrough
CT: control target
= control target key end

     0   :  { %11 = vsyncpa [#allocation7], 0  ;;  %s6330_s0 = inlined_call_operand.vmem [shape: f32[64,32], index: 0, kind: input, shape index: {}]   ;;  %s6331_s1 = inlined_call_operand.hbm [shape: bf16[6,2,32,128], index: 1, kind: input, shape index: {}]   ;;  %s6332_s2 = inlined_call_operand.vmem [shape: bf16[6,32,128], index: 2, kind: input, shape index: {}]   ;;  %s6333_s3 = inlined_call_operand.vmem [shape: f32[6,1,128], index: 3, kind: input, shape index: {}]   ;;  %s6334_s4 = inlined_call_operand.hbm [shape: bf16[2,32,128], index: 4, kind: input, shape index: {}]   ;;  %s6335_s5 = inlined_call_operand.vmem [shape: f32[1,128], index: 5, kind: input, shape index: {}]   ;;  %s6336_s6 = inlined_call_operand.vmem [shape: f32[8,128], index: 6, kind: output, shape index: {}]  }
   0x1   :  { %12 = vsyncpa [#allocation9], 0  ;;  %s5075_s21 = smov [#allocation6]  }
   0x2   :  { %s20_s22 = sshll.u32 %s5075_s21, 4  ;;  %s21_s22 = int_to_ptr.vmem [resolvable:$true] %s20_s22 }
   0x3   :  { %s5039_s23 = scalar_lea.vmem %s21_s22, 3072  ;;  %p5044_p1 = scmp.lt.s32.totalorder %s21_s22, %s21_s22 }
   0x4   :  { %p5040_p0 = scmp.ne.s32.totalorder %s21_s22, %s5039_s23  ;;  %p5045_p2 = scmp.lt.s32.totalorder %s5039_s23, %s5039_s23 }
   0x6   :  { %p5046_p3 = por %p5045_p2, %p5044_p1 }
   0x8   :  { %p5047_p4 = pnand %p5046_p3, %p5040_p0 }
   0xa   :  { %5050 = shalt.err (!%p5047_p4)
}
   0xb   :  { %s5076_s24 = smov 64   ;;  %s5077_s25 = smov 4  }
   0xc   :  { %26 = dma.hbm_to_vmem [thread:$0]  %s6331_s1, 3072, %s21_s22, [#allocation7], %s5076_s24, %s5076_s24, %s5077_s25  }
   0xd   :  { %s5078_s28 = smov [#allocation8]  }
   0xe   :  { %s36_s29 = sshll.u32 %s5078_s28, 4  ;;  %s37_s29 = int_to_ptr.vmem [resolvable:$true] %s36_s29 }
   0xf   :  { %s5059_s30 = scalar_lea.vmem %s37_s29, 512  ;;  %p5064_p6 = scmp.lt.s32.totalorder %s37_s29, %s37_s29 }
  0x10   :  { %p5060_p5 = scmp.ne.s32.totalorder %s37_s29, %s5059_s30  ;;  %p5065_p7 = scmp.lt.s32.totalorder %s5059_s30, %s5059_s30 }
  0x12   :  { %p5066_p8 = por %p5065_p7, %p5064_p6 }
  0x14   :  { %p5067_p9 = pnand %p5066_p8, %p5060_p5 }
  0x16   :  { %5070 = shalt.err (!%p5067_p9)
}
  0x17   :  { %42 = dma.hbm_to_vmem [thread:$0]  %s6334_s4, 512, %s37_s29, [#allocation9], %s5076_s24, %s5076_s24, %s5077_s25  }
  0x18   :  { %5071 = dma.done.wait [#allocation7], 3072  }
  0x19   :  { %5072 = vsyncadd [#allocation7], 4294964224 }
  0x1a   :  { %5073 = dma.done.wait [#allocation9], 512  }
  0x1b   :  { %5074 = vsyncadd [#allocation9], 4294966784  ;;  %v4833_v0 = vld [vmem:[#allocation6 + $0x28] sm:$0xff]   ;;  %v4834_v1 = vld [vmem:[#allocation6 + $0x20] sm:$0xff]   ;;  %vm92_vm0 = vcmask 261120   ;;  %v52_v17 = vlaneseq  ;;  %s5079_s27 = smov 32  }
  0x1c   :  { %4430 = vmatprep.subr.bf16.mxu1 %v4833_v0  ;;  %v57_v2 = vld [vmem:[%s6330_s0] sm:$0xff]  ;;  %v58_v3 = vld [vmem:[%s6330_s0 + $0x8] sm:$0xff]  ;;  %v59_v4 = vld [vmem:[%s6330_s0 + $0x10] sm:$0xff]  ;;  %v5080_v62 = vmov 0.0   ;;  %vm5081_vm4 = vmmov 0  }
  0x1d   :  { %4431 = vmatpush3.bf16.msra.mxu1 %v4833_v0  ;;  %v65_v5 = vpack.c.bf16 %v58_v3, %v57_v2  ;;  %v60_v6 = vld [vmem:[%s6330_s0 + $0x18] sm:$0xff]  ;;  %v4835_v7 = vld [vmem:[#allocation6 + $0x8] sm:$0xff]   ;;  %v61_v8 = vld [vmem:[%s6330_s0 + $0x20] sm:$0xff]  ;;  %v53_v22 = vand.u32 127, %v52_v17 }
  0x1e   :  { %4432 = vmatprep.subr.bf16.mxu1 %v4834_v1  ;;  %v62_v9 = vld [vmem:[%s6330_s0 + $0x28] sm:$0xff]  ;;  %v66_v10 = vpack.c.bf16 %v60_v6, %v59_v4  ;;  %4418 = vmatprep.subr.bf16.mxu0 %v4835_v7  ;;  %v4836_v11 = vld [vmem:[#allocation6] sm:$0xff]   ;;  %v63_v13 = vld [vmem:[%s6330_s0 + $0x30] sm:$0xff] }
  0x1f   :  { %4434 = vmatprep.mubr.msk.bf16.mxu1 %vm92_vm0, %v65_v5  ;;  %4422 = vmatprep.mubr.msk.bf16.mxu0 %vm92_vm0, %v65_v5  ;;  %v67_v12 = vpack.c.bf16 %v62_v9, %v61_v8  ;;  %v64_v14 = vld [vmem:[%s6330_s0 + $0x38] sm:$0xff]  ;;  %v5162_v16 = vld [vmem:[%s6333_s3 + $0x1] ss:$0 sm:$0xff]  ;;  %v5175_v25 = vld [vmem:[%s6333_s3] ss:$0 sm:$0xff]  ;;  %vm54_vm1 = vcmp.ge.s32.totalorder %v53_v22, 64 }
  0x20   :  { %4419 = vmatpush3.bf16.msra.mxu0 %v4835_v7  ;;  %v68_v15 = vpack.c.bf16 %v64_v14, %v63_v13  ;;  %vm55_vm2 = vcmp.lt.s32.totalorder %v53_v22, 96  ;;  %v5216_v60 = vld [vmem:[%s6332_s2 + $0x18] sm:$0xff]   ;;  %v5221_v61 = vld [vmem:[%s6332_s2 + $0x8] sm:$0xff]   ;;  %v5229_v63 = vld [vmem:[%s6332_s2 + $0x10] sm:$0xff]  }
  0x21   :  { %4433 = vmatpush3.bf16.msra.mxu1 %v4834_v1  ;;  %4420 = vmatprep.subr.bf16.mxu0 %v4836_v11  ;;  %vm5187_vm3 = vmand %vm54_vm1, %vm55_vm2  ;;  %v5245_v2 = vld [vmem:[%s6332_s2] sm:$0xff]  }
  0x22   :  { %4450 = vmatprep.subr.bf16.mxu1 %v5080_v62  ;;  %v4866_v35 = vld [vmem:[#allocation8] sm:$0xff]  }
  0x24   :  { %4435 = vmatmul.mubr.msk.bf16.vlgmr.msra.gmra.mxu1 %vm92_vm0, %v66_v10  ;;  %4421 = vmatpush3.bf16.msra.mxu0 %v4836_v11 }
  0x25   :  { %4438 = vmatprep.mubr.msk.bf16.mxu1 %vm92_vm0, %v67_v12  ;;  %4442 = vmatprep.subr.bf16.mxu0 %v5080_v62 }
  0x26   :  { %4451 = vmatpush3.bf16.msra.mxu1 %v5216_v60 }
  0x27   :  { %4423 = vmatmul.mubr.msk.bf16.vlgmr.msra.gmra.mxu0 %vm92_vm0, %v66_v10  ;;  %4452 = vmatprep.subr.bf16.mxu1 %v5080_v62 }
  0x28   :  { %4426 = vmatprep.mubr.msk.bf16.mxu0 %vm92_vm0, %v67_v12  ;;  %4443 = vmatpush3.bf16.msra.mxu0 %v5221_v61 }
  0x29   :  { %4444 = vmatprep.subr.bf16.mxu0 %v5080_v62 }
  0x2a   :  { %4453 = vmatpush3.bf16.msra.mxu1 %v5229_v63 }
  0x2b   :  { %4466 = vmatprep.subr.bf16.mxu1 %v5080_v62 }
  0x2c   :  { %4439 = vmatmul.mubr.msk.bf16.gmra.mxu1 %vm92_vm0, %v68_v15  ;;  %4445 = vmatpush3.bf16.msra.mxu0 %v5245_v2 }
  0x2d   :  { %4454 = vmatprep.mubr.msk.bf16.mxu1 %vm5081_vm4, %v5080_v62  ;;  %4458 = vmatprep.subr.bf16.mxu0 %v5080_v62 }
  0x2f   :  { %4427 = vmatmul.mubr.msk.bf16.gmra.mxu0 %vm92_vm0, %v68_v15 }
  0x30   :  { %4446 = vmatprep.mubr.msk.bf16.mxu0 %vm5081_vm4, %v5080_v62 }
  0xe4   :  { %v4436_v18 = vpop.f32.mrf.mxu1 }
  0xe5   :  { %v5165_v19 = vadd.f32 %v4436_v18, %v5162_v16 }
  0xe6   :  { %v237_v20 = vpop.f32.mrf.mxu1 }
  0xe7   :  { %v5168_v21 = vadd.f32 %v5162_v16, %v237_v20  ;;  %v5170_v24 = vpop.f32.mrf.mxu0 }
  0xe8   :  { %v4437_v23 = vpop.f32.mrf.mxu1 }
  0xe9   :  { %v5178_v26 = vadd.f32 %v4437_v23, %v5162_v16  ;;  %v139_v28 = vpop.f32.mrf.mxu0 }
  0xea   :  { %v240_v27 = vpop.f32.mrf.mxu1  ;;  %v140_v30 = vadd.f32 %v5175_v25, %v139_v28 }
  0xeb   :  { %v5181_v29 = vadd.f32 %v5162_v16, %v240_v27  ;;  %v5273_v11 = vpop.f32.mrf.mxu0 }
  0xec   :  { %v4440_v31 = vpop.f32.mrf.mxu1  ;;  %v287_v33 = vmul.f32 0.5, %v140_v30 }
  0xed   :  { %v5185_v32 = vadd.f32 %v4440_v31, %v5162_v16  ;;  %v142_v12 = vpop.f32.mrf.mxu0 }
  0xee   :  { %v253_v34 = vpop.f32.mrf.mxu1  ;;  %v288_v37 = vsel %vm5187_vm3, %v140_v30, %v287_v33  ;;  %v143_v27 = vadd.f32 %v5175_v25, %v142_v12 }
  0xef   :  { %v5192_v36 = vadd.f32 %v5162_v16, %v253_v34  ;;  %4867 = vtanh.f32 %v288_v37  ;;  %v5275_v13 = vpop.f32.mrf.mxu0 }
  0xf0   :  { %v4441_v38 = vpop.f32.mrf.mxu1 }
  0xf1   :  { %v265_v39 = vadd.f32 %v4441_v38, %v5162_v16  ;;  %v5277_v14 = vpop.f32.mrf.mxu0 }
  0xf2   :  { %v5281_v17 = vpop.f32.mrf.mxu1 }
  0xf3   :  { %v310_v40 = vmul.f32 0.5, %v265_v39  ;;  %v5279_v15 = vpop.f32.mrf.mxu0 }
  0xf5   :  { %v311_v41 = vsel %vm5187_vm3, %v265_v39, %v310_v40  ;;  %v5283_v20 = vpop.f32.mrf.mxu0 }
  0xf6   :  { %4869 = vtanh.f32 %v311_v41 }
  0xfc   :  { %v4868_v42 = vpop.eup %4867 }
  0xfd   :  { %v290_v43 = vmul.f32 0.5, %v4868_v42 }
  0xff   :  { %v291_v47 = vadd.f32 0.5, %v290_v43 }
 0x101   :  { %v292_v49 = vsel %vm5187_vm3, %v4868_v42, %v291_v47 }
 0x102   :  { %v293_v57 = vmul.f32 0.0, %v292_v49 }
 0x103   :  { %v4870_v44 = vpop.eup %4869 }
 0x104   :  { %v313_v45 = vmul.f32 0.5, %v4870_v44 }
 0x106   :  { %v314_v46 = vadd.f32 0.5, %v313_v45 }
 0x108   :  { %v315_v48 = vsel %vm5187_vm3, %v4870_v44, %v314_v46 }
 0x109   :  { %318 = vrot.lane.b32.xlu0 %v315_v48, %s5076_s24  ;;  %v316_v54 = vmul.f32 0.0, %v315_v48 }
 0x10d   :  { %295 = vrot.lane.b32.xlu0 %v292_v49, %s5076_s24 }
 0x17b   :  { %v319_v50 = vpop.permute.xlu0 %318 }
 0x17c   :  { %v321_v51 = vmul.f32 %v319_v50, %v315_v48 }
 0x17e   :  { %323 = vrot.lane.b32.xlu1 %v321_v51, %s5079_s27 }
 0x17f   :  { %v296_v52 = vpop.permute.xlu0 %295 }
 0x180   :  { %v298_v53 = vmul.f32 %v296_v52, %v292_v49 }
 0x182   :  { %300 = vrot.lane.b32.xlu1 %v298_v53, %s5079_s27 }
 0x1f0   :  { %v324_v55 = vpop.permute.xlu1 %323 }
 0x1f1   :  { %v5207_v56 = vadd.f32 %v324_v55, %v316_v54 }
 0x1f3   :  { %4871 = vtanh.f32 %v5207_v56 }
 0x1f4   :  { %v301_v58 = vpop.permute.xlu1 %300 }
 0x1f5   :  { %v5210_v59 = vadd.f32 %v301_v58, %v293_v57 }
 0x1f7   :  { %4873 = vtanh.f32 %v5210_v59 }
 0x200   :  { %v4872_v0 = vpop.eup %4871 }
 0x201   :  { %329 = vrot.lane.b32.xlu0 %v4872_v0, %s5076_s24 }
 0x204   :  { %v4874_v1 = vpop.eup %4873 }
 0x205   :  { %306 = vrot.lane.b32.xlu1 %v4874_v1, %s5076_s24 }
 0x273   :  { %v330_v3 = vpop.permute.xlu0 %329 }
 0x274   :  { %v5249_v4 = vmul.f32 %v330_v3, %v315_v48 }
 0x276   :  { %v405_v5 = vpack.c.bf16 %v5249_v4, %v5249_v4 }
 0x277   :  { %v307_v6 = vpop.permute.xlu1 %306 }
 0x278   :  { %v5253_v7 = vmul.f32 %v307_v6, %v292_v49  ;;  %407 = vrot.lane.b32.xlu0 %v405_v5, %s5079_s27 }
 0x27a   :  { %v344_v8 = vpack.c.bf16 %v5253_v7, %v5253_v7 }
 0x27c   :  { %346 = vrot.lane.b32.xlu1 %v344_v8, %s5079_s27 }
 0x2ea   :  { %v408_v9 = vpop.permute.xlu0 %407 }
 0x2eb   :  { %4455 = vmatmul.mubr.msk.bf16.vlgmr.msra.gmra.mxu1 %vm92_vm0, %v408_v9 }
 0x2ec   :  { %4467 = vmatpush3.bf16.msra.mxu1 %v5216_v60  ;;  %4470 = vmatprep.mubr.msk.bf16.mxu1 %vm5081_vm4, %v5080_v62 }
 0x2ed   :  { %4468 = vmatprep.subr.bf16.mxu1 %v5080_v62 }
 0x2ee   :  { %v347_v10 = vpop.permute.xlu1 %346 }
 0x2ef   :  { %4447 = vmatmul.mubr.msk.bf16.vlgmr.msra.gmra.mxu0 %vm92_vm0, %v347_v10 }
 0x2f0   :  { %4469 = vmatpush3.bf16.msra.mxu1 %v5229_v63  ;;  %4459 = vmatpush3.bf16.msra.mxu0 %v5221_v61 }
 0x2f1   :  { %4460 = vmatprep.subr.bf16.mxu0 %v5080_v62  ;;  %4462 = vmatprep.mubr.msk.bf16.mxu0 %vm5081_vm4, %v5080_v62 }
 0x2f2   :  { %4482 = vmatprep.subr.bf16.mxu1 %v5080_v62 }
 0x2f4   :  { %4461 = vmatpush3.bf16.msra.mxu0 %v5245_v2 }
 0x2f5   :  { %4474 = vmatprep.subr.bf16.mxu0 %v5080_v62 }
 0x3ab   :  { %v458_v18 = vpop.f32.mrf.mxu1 }
 0x3ac   :  { %v464_v22 = vadd.f32 %v458_v18, %v5185_v32 }
 0x3ad   :  { %v4456_v23 = vpop.f32.mrf.mxu1 }
 0x3ae   :  { %v488_v28 = vmul.f32 0.5, %v464_v22 }
 0x3af   :  { %v397_v30 = vpop.f32.mrf.mxu0  ;;  %v461_v31 = vpop.f32.mrf.mxu1 }
 0x3b0   :  { %v489_v33 = vsel %vm5187_vm3, %v464_v22, %v488_v28  ;;  %v403_v34 = vadd.f32 %v397_v30, %v143_v27  ;;  %v257_v22 = vadd.f32 %v5162_v16, %v5281_v17  ;;  %v148_v30 = vadd.f32 %v5170_v24, %v5175_v25 }
 0x3b1   :  { %4875 = vtanh.f32 %v489_v33  ;;  %v4448_v37 = vpop.f32.mrf.mxu0  ;;  %v4457_v38 = vpop.f32.mrf.mxu1 }
 0x3b2   :  { %v465_v39 = vmul.f32 0.5, %v403_v34 }
 0x3b3   :  { %v400_v40 = vpop.f32.mrf.mxu0 }
 0x3b4   :  { %v466_v41 = vsel %vm5187_vm3, %v403_v34, %v465_v39 }
 0x3b5   :  { %4877 = vtanh.f32 %v466_v41  ;;  %v4449_v32 = vpop.f32.mrf.mxu0 }
 0x3be   :  { %v4876_v42 = vpop.eup %4875 }
 0x3bf   :  { %v491_v43 = vmul.f32 0.5, %v4876_v42 }
 0x3c1   :  { %v492_v44 = vadd.f32 0.5, %v491_v43 }
 0x3c2   :  { %v4878_v45 = vpop.eup %4877 }
 0x3c3   :  { %v493_v46 = vsel %vm5187_vm3, %v4876_v42, %v492_v44  ;;  %v468_v47 = vmul.f32 0.5, %v4878_v45 }
 0x3c4   :  { %496 = vrot.lane.b32.xlu0 %v493_v46, %s5076_s24  ;;  %v494_v54 = vmul.f32 %v493_v46, %v5207_v56 }
 0x3c5   :  { %v469_v48 = vadd.f32 0.5, %v468_v47 }
 0x3c7   :  { %v470_v49 = vsel %vm5187_vm3, %v4878_v45, %v469_v48 }
 0x3c8   :  { %473 = vrot.lane.b32.xlu1 %v470_v49, %s5076_s24  ;;  %v471_v58 = vmul.f32 %v470_v49, %v5210_v59 }
 0x436   :  { %v497_v50 = vpop.permute.xlu0 %496 }
 0x437   :  { %v499_v51 = vmul.f32 %v497_v50, %v493_v46 }
 0x439   :  { %501 = vrot.lane.b32.xlu0 %v499_v51, %s5079_s27 }
 0x43a   :  { %v474_v52 = vpop.permute.xlu1 %473 }
 0x43b   :  { %v476_v53 = vmul.f32 %v474_v52, %v470_v49 }
 0x43d   :  { %478 = vrot.lane.b32.xlu1 %v476_v53, %s5079_s27 }
 0x4ab   :  { %v502_v55 = vpop.permute.xlu0 %501 }
 0x4ac   :  { %v5300_v57 = vadd.f32 %v502_v55, %v494_v54 }
 0x4ae   :  { %4879 = vtanh.f32 %v5300_v57 }
 0x4af   :  { %v479_v0 = vpop.permute.xlu1 %478 }
 0x4b0   :  { %v5304_v1 = vadd.f32 %v479_v0, %v471_v58 }
 0x4b2   :  { %4881 = vtanh.f32 %v5304_v1 }
 0x4bb   :  { %v4880_v3 = vpop.eup %4879 }
 0x4bc   :  { %507 = vrot.lane.b32.xlu0 %v4880_v3, %s5076_s24 }
 0x4bf   :  { %v4882_v5 = vpop.eup %4881 }
 0x4c0   :  { %484 = vrot.lane.b32.xlu1 %v4882_v5, %s5076_s24 }
 0x52e   :  { %v508_v6 = vpop.permute.xlu0 %507 }
 0x52f   :  { %v5309_v56 = vmul.f32 %v508_v6, %v493_v46 }
 0x531   :  { %v571_v8 = vpack.c.bf16 %v5309_v56, %v5309_v56 }
 0x532   :  { %v485_v9 = vpop.permute.xlu1 %484 }
 0x533   :  { %v5313_v10 = vmul.f32 %v485_v9, %v470_v49  ;;  %573 = vrot.lane.b32.xlu0 %v571_v8, %s5079_s27 }
 0x535   :  { %v522_v59 = vpack.c.bf16 %v5313_v10, %v5313_v10 }
 0x537   :  { %524 = vrot.lane.b32.xlu1 %v522_v59, %s5079_s27 }
 0x5a5   :  { %v574_v12 = vpop.permute.xlu0 %573 }
 0x5a6   :  { %4471 = vmatmul.mubr.msk.bf16.vlgmr.msra.gmra.mxu1 %vm92_vm0, %v574_v12 }
 0x5a7   :  { %4483 = vmatpush3.bf16.msra.mxu1 %v5216_v60  ;;  %4486 = vmatprep.mubr.msk.bf16.mxu1 %vm5081_vm4, %v5080_v62 }
 0x5a8   :  { %4484 = vmatprep.subr.bf16.mxu1 %v5080_v62 }
 0x5a9   :  { %v525_v18 = vpop.permute.xlu1 %524 }
 0x5aa   :  { %4463 = vmatmul.mubr.msk.bf16.vlgmr.msra.gmra.mxu0 %vm92_vm0, %v525_v18 }
 0x5ab   :  { %4485 = vmatpush3.bf16.msra.mxu1 %v5229_v63  ;;  %4475 = vmatpush3.bf16.msra.mxu0 %v5221_v61 }
 0x5ac   :  { %4476 = vmatprep.subr.bf16.mxu0 %v5080_v62  ;;  %4478 = vmatprep.mubr.msk.bf16.mxu0 %vm5081_vm4, %v5080_v62 }
 0x5ad   :  { %4498 = vmatprep.subr.bf16.mxu1 %v5080_v62 }
 0x5af   :  { %4477 = vmatpush3.bf16.msra.mxu0 %v5245_v2 }
 0x5b0   :  { %4490 = vmatprep.subr.bf16.mxu0 %v5080_v62 }
 0x666   :  { %v612_v23 = vpop.f32.mrf.mxu1 }
 0x667   :  { %v618_v27 = vadd.f32 %v612_v23, %v257_v22 }
 0x668   :  { %v4472_v28 = vpop.f32.mrf.mxu1 }
 0x669   :  { %v642_v31 = vmul.f32 0.5, %v618_v27 }
 0x66a   :  { %v563_v33 = vpop.f32.mrf.mxu0  ;;  %v615_v34 = vpop.f32.mrf.mxu1 }
 0x66b   :  { %v643_v37 = vsel %vm5187_vm3, %v618_v27, %v642_v31  ;;  %v569_v38 = vadd.f32 %v563_v33, %v148_v30  ;;  %v151_v30 = vadd.f32 %v5273_v11, %v5175_v25 }
 0x66c   :  { %4883 = vtanh.f32 %v643_v37  ;;  %v4464_v39 = vpop.f32.mrf.mxu0  ;;  %v4473_v40 = vpop.f32.mrf.mxu1 }
 0x66d   :  { %v619_v41 = vmul.f32 0.5, %v569_v38 }
 0x66e   :  { %v566_v32 = vpop.f32.mrf.mxu0 }
 0x66f   :  { %v620_v16 = vsel %vm5187_vm3, %v569_v38, %v619_v41 }
 0x670   :  { %4885 = vtanh.f32 %v620_v16  ;;  %v4465_v17 = vpop.f32.mrf.mxu0 }
 0x679   :  { %v4884_v42 = vpop.eup %4883 }
 0x67a   :  { %v645_v43 = vmul.f32 0.5, %v4884_v42 }
 0x67c   :  { %v646_v24 = vadd.f32 0.5, %v645_v43 }
 0x67d   :  { %v4886_v44 = vpop.eup %4885 }
 0x67e   :  { %v647_v45 = vsel %vm5187_vm3, %v4884_v42, %v646_v24  ;;  %v622_v46 = vmul.f32 0.5, %v4886_v44 }
 0x67f   :  { %650 = vrot.lane.b32.xlu0 %v647_v45, %s5076_s24  ;;  %v648_v53 = vmul.f32 %v647_v45, %v5300_v57 }
 0x680   :  { %v623_v47 = vadd.f32 0.5, %v622_v46 }
 0x682   :  { %v624_v48 = vsel %vm5187_vm3, %v4886_v44, %v623_v47 }
 0x683   :  { %627 = vrot.lane.b32.xlu1 %v624_v48, %s5076_s24  ;;  %v625_v58 = vmul.f32 %v624_v48, %v5304_v1 }
 0x6f1   :  { %v651_v49 = vpop.permute.xlu0 %650 }
 0x6f2   :  { %v653_v50 = vmul.f32 %v651_v49, %v647_v45 }
 0x6f4   :  { %655 = vrot.lane.b32.xlu0 %v653_v50, %s5079_s27 }
 0x6f5   :  { %v628_v51 = vpop.permute.xlu1 %627 }
 0x6f6   :  { %v630_v52 = vmul.f32 %v628_v51, %v624_v48 }
 0x6f8   :  { %632 = vrot.lane.b32.xlu1 %v630_v52, %s5079_s27 }
 0x766   :  { %v656_v54 = vpop.permute.xlu0 %655 }
 0x767   :  { %v5350_v55 = vadd.f32 %v656_v54, %v648_v53 }
 0x769   :  { %4887 = vtanh.f32 %v5350_v55 }
 0x76a   :  { %v633_v0 = vpop.permute.xlu1 %632 }
 0x76b   :  { %v5354_v3 = vadd.f32 %v633_v0, %v625_v58 }
 0x76d   :  { %4889 = vtanh.f32 %v5354_v3 }
 0x776   :  { %v4888_v5 = vpop.eup %4887 }
 0x777   :  { %661 = vrot.lane.b32.xlu0 %v4888_v5, %s5076_s24 }
 0x77a   :  { %v4890_v6 = vpop.eup %4889 }
 0x77b   :  { %638 = vrot.lane.b32.xlu1 %v4890_v6, %s5076_s24 }
 0x7e9   :  { %v662_v8 = vpop.permute.xlu0 %661 }
 0x7ea   :  { %v5359_v57 = vmul.f32 %v662_v8, %v647_v45 }
 0x7ec   :  { %v725_v9 = vpack.c.bf16 %v5359_v57, %v5359_v57 }
 0x7ed   :  { %v639_v59 = vpop.permute.xlu1 %638 }
 0x7ee   :  { %v5363_v12 = vmul.f32 %v639_v59, %v624_v48  ;;  %727 = vrot.lane.b32.xlu0 %v725_v9, %s5079_s27 }
 0x7f0   :  { %v676_v1 = vpack.c.bf16 %v5363_v12, %v5363_v12 }
 0x7f2   :  { %678 = vrot.lane.b32.xlu1 %v676_v1, %s5079_s27 }
 0x860   :  { %v728_v18 = vpop.permute.xlu0 %727 }
 0x861   :  { %4487 = vmatmul.mubr.msk.bf16.vlgmr.msra.gmra.mxu1 %vm92_vm0, %v728_v18 }
 0x862   :  { %4499 = vmatpush3.bf16.msra.mxu1 %v5216_v60  ;;  %4502 = vmatprep.mubr.msk.bf16.mxu1 %vm5081_vm4, %v5080_v62 }
 0x863   :  { %4500 = vmatprep.subr.bf16.mxu1 %v5080_v62 }
 0x864   :  { %v679_v22 = vpop.permute.xlu1 %678 }
 0x865   :  { %4479 = vmatmul.mubr.msk.bf16.vlgmr.msra.gmra.mxu0 %vm92_vm0, %v679_v22 }
 0x866   :  { %4501 = vmatpush3.bf16.msra.mxu1 %v5229_v63  ;;  %4491 = vmatpush3.bf16.msra.mxu0 %v5221_v61 }
 0x867   :  { %4492 = vmatprep.subr.bf16.mxu0 %v5080_v62  ;;  %4494 = vmatprep.mubr.msk.bf16.mxu0 %vm5081_vm4, %v5080_v62 }
 0x868   :  { %4514 = vmatprep.subr.bf16.mxu1 %v5080_v62 }
 0x86a   :  { %4493 = vmatpush3.bf16.msra.mxu0 %v5245_v2 }
 0x86b   :  { %4506 = vmatprep.subr.bf16.mxu0 %v5080_v62 }
 0x921   :  { %v766_v23 = vpop.f32.mrf.mxu1 }
 0x922   :  { %v772_v27 = vadd.f32 %v766_v23, %v5192_v36 }
 0x923   :  { %v4488_v28 = vpop.f32.mrf.mxu1 }
 0x924   :  { %v796_v31 = vmul.f32 0.5, %v772_v27 }
 0x925   :  { %v717_v33 = vpop.f32.mrf.mxu0  ;;  %v769_v34 = vpop.f32.mrf.mxu1 }
 0x926   :  { %v797_v37 = vsel %vm5187_vm3, %v772_v27, %v796_v31  ;;  %v723_v38 = vadd.f32 %v717_v33, %v151_v30  ;;  %v156_v30 = vadd.f32 %v5175_v25, %v5277_v14 }
 0x927   :  { %4891 = vtanh.f32 %v797_v37  ;;  %v4480_v39 = vpop.f32.mrf.mxu0  ;;  %v4489_v40 = vpop.f32.mrf.mxu1 }
 0x928   :  { %v773_v41 = vmul.f32 0.5, %v723_v38 }
 0x929   :  { %v720_v32 = vpop.f32.mrf.mxu0 }
 0x92a   :  { %v774_v16 = vsel %vm5187_vm3, %v723_v38, %v773_v41 }
 0x92b   :  { %4893 = vtanh.f32 %v774_v16  ;;  %v4481_v36 = vpop.f32.mrf.mxu0 }
 0x934   :  { %v4892_v17 = vpop.eup %4891 }
 0x935   :  { %v799_v42 = vmul.f32 0.5, %v4892_v17 }
 0x937   :  { %v800_v11 = vadd.f32 0.5, %v799_v42 }
 0x938   :  { %v4894_v43 = vpop.eup %4893 }
 0x939   :  { %v801_v24 = vsel %vm5187_vm3, %v4892_v17, %v800_v11  ;;  %v776_v44 = vmul.f32 0.5, %v4894_v43 }
 0x93a   :  { %804 = vrot.lane.b32.xlu0 %v801_v24, %s5076_s24  ;;  %v802_v51 = vmul.f32 %v801_v24, %v5350_v55 }
 0x93b   :  { %v777_v45 = vadd.f32 0.5, %v776_v44 }
 0x93d   :  { %v778_v46 = vsel %vm5187_vm3, %v4894_v43, %v777_v45 }
 0x93e   :  { %781 = vrot.lane.b32.xlu1 %v778_v46, %s5076_s24  ;;  %v779_v54 = vmul.f32 %v778_v46, %v5354_v3 }
 0x9ac   :  { %v805_v47 = vpop.permute.xlu0 %804 }
 0x9ad   :  { %v807_v48 = vmul.f32 %v805_v47, %v801_v24 }
 0x9af   :  { %809 = vrot.lane.b32.xlu0 %v807_v48, %s5079_s27 }
 0x9b0   :  { %v782_v49 = vpop.permute.xlu1 %781 }
 0x9b1   :  { %v784_v50 = vmul.f32 %v782_v49, %v778_v46 }
 0x9b3   :  { %786 = vrot.lane.b32.xlu1 %v784_v50, %s5079_s27 }
 0xa21   :  { %v810_v52 = vpop.permute.xlu0 %809 }
 0xa22   :  { %v5399_v53 = vadd.f32 %v810_v52, %v802_v51 }
 0xa24   :  { %4895 = vtanh.f32 %v5399_v53 }
 0xa25   :  { %v787_v58 = vpop.permute.xlu1 %786 }
 0xa26   :  { %v5403_v0 = vadd.f32 %v787_v58, %v779_v54 }
 0xa28   :  { %4897 = vtanh.f32 %v5403_v0 }
 0xa31   :  { %v4896_v5 = vpop.eup %4895 }
 0xa32   :  { %815 = vrot.lane.b32.xlu0 %v4896_v5, %s5076_s24 }
 0xa35   :  { %v4898_v6 = vpop.eup %4897 }
 0xa36   :  { %792 = vrot.lane.b32.xlu1 %v4898_v6, %s5076_s24 }
 0xaa4   :  { %v816_v8 = vpop.permute.xlu0 %815 }
 0xaa5   :  { %v5408_v55 = vmul.f32 %v816_v8, %v801_v24 }
 0xaa7   :  { %v879_v9 = vpack.c.bf16 %v5408_v55, %v5408_v55 }
 0xaa8   :  { %v793_v59 = vpop.permute.xlu1 %792 }
 0xaa9   :  { %v5412_v1 = vmul.f32 %v793_v59, %v778_v46  ;;  %881 = vrot.lane.b32.xlu0 %v879_v9, %s5079_s27 }
 0xaab   :  { %v830_v3 = vpack.c.bf16 %v5412_v1, %v5412_v1 }
 0xaad   :  { %832 = vrot.lane.b32.xlu1 %v830_v3, %s5079_s27 }
 0xb1b   :  { %v882_v18 = vpop.permute.xlu0 %881 }
 0xb1c   :  { %4503 = vmatmul.mubr.msk.bf16.vlgmr.msra.gmra.mxu1 %vm92_vm0, %v882_v18 }
 0xb1d   :  { %4515 = vmatpush3.bf16.msra.mxu1 %v5216_v60  ;;  %4518 = vmatprep.mubr.msk.bf16.mxu1 %vm5081_vm4, %v5080_v62 }
 0xb1e   :  { %4516 = vmatprep.subr.bf16.mxu1 %v5080_v62 }
 0xb1f   :  { %v833_v22 = vpop.permute.xlu1 %832 }
 0xb20   :  { %4495 = vmatmul.mubr.msk.bf16.vlgmr.msra.gmra.mxu0 %vm92_vm0, %v833_v22 }
 0xb21   :  { %4517 = vmatpush3.bf16.msra.mxu1 %v5229_v63  ;;  %4507 = vmatpush3.bf16.msra.mxu0 %v5221_v61 }
 0xb22   :  { %4508 = vmatprep.subr.bf16.mxu0 %v5080_v62  ;;  %4510 = vmatprep.mubr.msk.bf16.mxu0 %vm5081_vm4, %v5080_v62 }
 0xb23   :  { %4530 = vmatprep.subr.bf16.mxu1 %v5080_v62 }
 0xb25   :  { %4509 = vmatpush3.bf16.msra.mxu0 %v5245_v2 }
 0xb26   :  { %4522 = vmatprep.subr.bf16.mxu0 %v5080_v62 }
 0xbdc   :  { %v920_v23 = vpop.f32.mrf.mxu1 }
 0xbdd   :  { %v926_v27 = vadd.f32 %v920_v23, %v5178_v26 }
 0xbde   :  { %v4504_v28 = vpop.f32.mrf.mxu1 }
 0xbdf   :  { %v950_v31 = vmul.f32 0.5, %v926_v27 }
 0xbe0   :  { %v871_v33 = vpop.f32.mrf.mxu0  ;;  %v923_v34 = vpop.f32.mrf.mxu1 }
 0xbe1   :  { %v951_v37 = vsel %vm5187_vm3, %v926_v27, %v950_v31  ;;  %v877_v38 = vadd.f32 %v871_v33, %v156_v30  ;;  %v159_v30 = vadd.f32 %v5175_v25, %v5283_v20 }
 0xbe2   :  { %4899 = vtanh.f32 %v951_v37  ;;  %v4496_v39 = vpop.f32.mrf.mxu0  ;;  %v4505_v40 = vpop.f32.mrf.mxu1 }
 0xbe3   :  { %v927_v41 = vmul.f32 0.5, %v877_v38 }
 0xbe4   :  { %v874_v32 = vpop.f32.mrf.mxu0 }
 0xbe5   :  { %v928_v16 = vsel %vm5187_vm3, %v877_v38, %v927_v41 }
 0xbe6   :  { %4901 = vtanh.f32 %v928_v16  ;;  %v4497_v26 = vpop.f32.mrf.mxu0 }
 0xbef   :  { %v4900_v36 = vpop.eup %4899 }
 0xbf0   :  { %v953_v17 = vmul.f32 0.5, %v4900_v36 }
 0xbf2   :  { %v954_v14 = vadd.f32 0.5, %v953_v17 }
 0xbf3   :  { %v4902_v42 = vpop.eup %4901 }
 0xbf4   :  { %v955_v11 = vsel %vm5187_vm3, %v4900_v36, %v954_v14  ;;  %v930_v43 = vmul.f32 0.5, %v4902_v42 }
 0xbf5   :  { %958 = vrot.lane.b32.xlu0 %v955_v11, %s5076_s24  ;;  %v956_v49 = vmul.f32 %v955_v11, %v5399_v53 }
 0xbf6   :  { %v931_v24 = vadd.f32 0.5, %v930_v43 }
 0xbf8   :  { %v932_v44 = vsel %vm5187_vm3, %v4902_v42, %v931_v24 }
 0xbf9   :  { %935 = vrot.lane.b32.xlu1 %v932_v44, %s5076_s24  ;;  %v933_v52 = vmul.f32 %v932_v44, %v5403_v0 }
 0xc67   :  { %v959_v45 = vpop.permute.xlu0 %958 }
 0xc68   :  { %v961_v46 = vmul.f32 %v959_v45, %v955_v11 }
 0xc6a   :  { %963 = vrot.lane.b32.xlu0 %v961_v46, %s5079_s27 }
 0xc6b   :  { %v936_v47 = vpop.permute.xlu1 %935 }
 0xc6c   :  { %v938_v48 = vmul.f32 %v936_v47, %v932_v44 }
 0xc6e   :  { %940 = vrot.lane.b32.xlu1 %v938_v48, %s5079_s27 }
 0xcdc   :  { %v964_v50 = vpop.permute.xlu0 %963 }
 0xcdd   :  { %v5448_v51 = vadd.f32 %v964_v50, %v956_v49 }
 0xcdf   :  { %4903 = vtanh.f32 %v5448_v51 }
 0xce0   :  { %v941_v54 = vpop.permute.xlu1 %940 }
 0xce1   :  { %v5452_v58 = vadd.f32 %v941_v54, %v933_v52 }
 0xce3   :  { %4905 = vtanh.f32 %v5452_v58 }
 0xcec   :  { %v4904_v5 = vpop.eup %4903 }
 0xced   :  { %969 = vrot.lane.b32.xlu0 %v4904_v5, %s5076_s24 }
 0xcf0   :  { %v4906_v6 = vpop.eup %4905 }
 0xcf1   :  { %946 = vrot.lane.b32.xlu1 %v4906_v6, %s5076_s24 }
 0xd5f   :  { %v970_v8 = vpop.permute.xlu0 %969 }
 0xd60   :  { %v5457_v53 = vmul.f32 %v970_v8, %v955_v11 }
 0xd62   :  { %v1033_v9 = vpack.c.bf16 %v5457_v53, %v5457_v53 }
 0xd63   :  { %v947_v59 = vpop.permute.xlu1 %946 }
 0xd64   :  { %v5461_v3 = vmul.f32 %v947_v59, %v932_v44  ;;  %1035 = vrot.lane.b32.xlu0 %v1033_v9, %s5079_s27 }
 0xd66   :  { %v984_v0 = vpack.c.bf16 %v5461_v3, %v5461_v3 }
 0xd68   :  { %986 = vrot.lane.b32.xlu1 %v984_v0, %s5079_s27 }
 0xdd6   :  { %v1036_v18 = vpop.permute.xlu0 %1035 }
 0xdd7   :  { %4519 = vmatmul.mubr.msk.bf16.vlgmr.msra.gmra.mxu1 %vm92_vm0, %v1036_v18 }
 0xdd8   :  { %4531 = vmatpush3.bf16.msra.mxu1 %v5216_v60  ;;  %4534 = vmatprep.mubr.msk.bf16.mxu1 %vm5081_vm4, %v5080_v62 }
 0xdd9   :  { %4532 = vmatprep.subr.bf16.mxu1 %v5080_v62 }
 0xdda   :  { %v987_v22 = vpop.permute.xlu1 %986 }
 0xddb   :  { %4511 = vmatmul.mubr.msk.bf16.vlgmr.msra.gmra.mxu0 %vm92_vm0, %v987_v22 }
 0xddc   :  { %4533 = vmatpush3.bf16.msra.mxu1 %v5229_v63  ;;  %4523 = vmatpush3.bf16.msra.mxu0 %v5221_v61 }
 0xddd   :  { %4524 = vmatprep.subr.bf16.mxu0 %v5080_v62  ;;  %4526 = vmatprep.mubr.msk.bf16.mxu0 %vm5081_vm4, %v5080_v62 }
 0xdde   :  { %4546 = vmatprep.subr.bf16.mxu1 %v5080_v62 }
 0xde0   :  { %4525 = vmatpush3.bf16.msra.mxu0 %v5245_v2 }
 0xde1   :  { %4538 = vmatprep.subr.bf16.mxu0 %v5080_v62 }
 0xe97   :  { %v1074_v23 = vpop.f32.mrf.mxu1 }
 0xe98   :  { %v1080_v27 = vadd.f32 %v1074_v23, %v5165_v19 }
 0xe99   :  { %v4520_v28 = vpop.f32.mrf.mxu1 }
 0xe9a   :  { %v1104_v31 = vmul.f32 0.5, %v1080_v27  ;;  %v164_v28 = vadd.f32 %v5275_v13, %v5175_v25 }
 0xe9b   :  { %v1025_v33 = vpop.f32.mrf.mxu0  ;;  %v1077_v34 = vpop.f32.mrf.mxu1 }
 0xe9c   :  { %v1105_v37 = vsel %vm5187_vm3, %v1080_v27, %v1104_v31  ;;  %v1031_v38 = vadd.f32 %v1025_v33, %v159_v30 }
 0xe9d   :  { %4907 = vtanh.f32 %v1105_v37  ;;  %v4512_v39 = vpop.f32.mrf.mxu0  ;;  %v4521_v40 = vpop.f32.mrf.mxu1 }
 0xe9e   :  { %v1081_v41 = vmul.f32 0.5, %v1031_v38 }
 0xe9f   :  { %v1028_v32 = vpop.f32.mrf.mxu0 }
 0xea0   :  { %v1082_v16 = vsel %vm5187_vm3, %v1031_v38, %v1081_v41 }
 0xea1   :  { %4909 = vtanh.f32 %v1082_v16  ;;  %v4513_v19 = vpop.f32.mrf.mxu0 }
 0xeaa   :  { %v4908_v26 = vpop.eup %4907 }
 0xeab   :  { %v1107_v36 = vmul.f32 0.5, %v4908_v26 }
 0xead   :  { %v1108_v20 = vadd.f32 0.5, %v1107_v36 }
 0xeae   :  { %v4910_v17 = vpop.eup %4909 }
 0xeaf   :  { %v1109_v14 = vsel %vm5187_vm3, %v4908_v26, %v1108_v20  ;;  %v1084_v42 = vmul.f32 0.5, %v4910_v17 }
 0xeb0   :  { %1112 = vrot.lane.b32.xlu0 %v1109_v14, %s5076_s24  ;;  %v1110_v47 = vmul.f32 %v1109_v14, %v5448_v51 }
 0xeb1   :  { %v1085_v11 = vadd.f32 0.5, %v1084_v42 }
 0xeb3   :  { %v1086_v43 = vsel %vm5187_vm3, %v4910_v17, %v1085_v11 }
 0xeb4   :  { %1089 = vrot.lane.b32.xlu1 %v1086_v43, %s5076_s24  ;;  %v1087_v50 = vmul.f32 %v1086_v43, %v5452_v58 }
 0xf22   :  { %v1113_v24 = vpop.permute.xlu0 %1112 }
 0xf23   :  { %v1115_v44 = vmul.f32 %v1113_v24, %v1109_v14 }
 0xf25   :  { %1117 = vrot.lane.b32.xlu0 %v1115_v44, %s5079_s27 }
 0xf26   :  { %v1090_v45 = vpop.permute.xlu1 %1089 }
 0xf27   :  { %v1092_v46 = vmul.f32 %v1090_v45, %v1086_v43 }
 0xf29   :  { %1094 = vrot.lane.b32.xlu1 %v1092_v46, %s5079_s27 }
 0xf97   :  { %v1118_v48 = vpop.permute.xlu0 %1117 }
 0xf98   :  { %v5497_v49 = vadd.f32 %v1118_v48, %v1110_v47 }
 0xf9a   :  { %4911 = vtanh.f32 %v5497_v49 }
 0xf9b   :  { %v1095_v52 = vpop.permute.xlu1 %1094 }
 0xf9c   :  { %v5501_v54 = vadd.f32 %v1095_v52, %v1087_v50 }
 0xf9e   :  { %4913 = vtanh.f32 %v5501_v54 }
 0xfa7   :  { %v4912_v5 = vpop.eup %4911 }
 0xfa8   :  { %1123 = vrot.lane.b32.xlu0 %v4912_v5, %s5076_s24 }
 0xfab   :  { %v4914_v6 = vpop.eup %4913 }
 0xfac   :  { %1100 = vrot.lane.b32.xlu1 %v4914_v6, %s5076_s24 }
0x101a   :  { %v1124_v8 = vpop.permute.xlu0 %1123 }
0x101b   :  { %v5506_v51 = vmul.f32 %v1124_v8, %v1109_v14 }
0x101d   :  { %v1187_v9 = vpack.c.bf16 %v5506_v51, %v5506_v51 }
0x101e   :  { %v1101_v59 = vpop.permute.xlu1 %1100 }
0x101f   :  { %v5510_v0 = vmul.f32 %v1101_v59, %v1086_v43  ;;  %1189 = vrot.lane.b32.xlu0 %v1187_v9, %s5079_s27 }
0x1021   :  { %v1138_v58 = vpack.c.bf16 %v5510_v0, %v5510_v0 }
0x1023   :  { %1140 = vrot.lane.b32.xlu1 %v1138_v58, %s5079_s27 }
0x1091   :  { %v1190_v18 = vpop.permute.xlu0 %1189 }
0x1092   :  { %4535 = vmatmul.mubr.msk.bf16.vlgmr.msra.gmra.mxu1 %vm92_vm0, %v1190_v18 }
0x1093   :  { %4547 = vmatpush3.bf16.msra.mxu1 %v5216_v60  ;;  %4550 = vmatprep.mubr.msk.bf16.mxu1 %vm5081_vm4, %v5080_v62 }
0x1094   :  { %4548 = vmatprep.subr.bf16.mxu1 %v5080_v62 }
0x1095   :  { %v1141_v22 = vpop.permute.xlu1 %1140 }
0x1096   :  { %4527 = vmatmul.mubr.msk.bf16.vlgmr.msra.gmra.mxu0 %vm92_vm0, %v1141_v22  ;;  %v167_v22 = vadd.f32 %v5279_v15, %v5175_v25 }
0x1097   :  { %4549 = vmatpush3.bf16.msra.mxu1 %v5229_v63  ;;  %4539 = vmatpush3.bf16.msra.mxu0 %v5221_v61 }
0x1098   :  { %4540 = vmatprep.subr.bf16.mxu0 %v5080_v62  ;;  %4542 = vmatprep.mubr.msk.bf16.mxu0 %vm5081_vm4, %v5080_v62 }
0x109b   :  { %4541 = vmatpush3.bf16.msra.mxu0 %v5245_v2 }
0x1152   :  { %v1228_v60 = vpop.f32.mrf.mxu1 }
0x1153   :  { %v1234_v23 = vadd.f32 %v1228_v60, %v5181_v29 }
0x1154   :  { %v4536_v27 = vpop.f32.mrf.mxu1 }
0x1155   :  { %v1258_v30 = vmul.f32 0.5, %v1234_v23 }
0x1156   :  { %v1179_v31 = vpop.f32.mrf.mxu0  ;;  %v1231_v33 = vpop.f32.mrf.mxu1 }
0x1157   :  { %v1259_v61 = vsel %vm5187_vm3, %v1234_v23, %v1258_v30  ;;  %v1185_v63 = vadd.f32 %v1179_v31, %v164_v28 }
0x1158   :  { %4915 = vtanh.f32 %v1259_v61  ;;  %v4528_v34 = vpop.f32.mrf.mxu0  ;;  %v4537_v37 = vpop.f32.mrf.mxu1 }
0x1159   :  { %v1235_v38 = vmul.f32 0.5, %v1185_v63 }
0x115a   :  { %v1182_v39 = vpop.f32.mrf.mxu0 }
0x115b   :  { %v1236_v2 = vsel %vm5187_vm3, %v1185_v63, %v1235_v38 }
0x115c   :  { %4917 = vtanh.f32 %v1236_v2  ;;  %v4529_v29 = vpop.f32.mrf.mxu0 }
0x1165   :  { %v4916_v40 = vpop.eup %4915 }
0x1166   :  { %v1261_v41 = vmul.f32 0.5, %v4916_v40 }
0x1168   :  { %v1262_v13 = vadd.f32 0.5, %v1261_v41 }
0x1169   :  { %v4918_v32 = vpop.eup %4917 }
0x116a   :  { %v1263_v16 = vsel %vm5187_vm3, %v4916_v40, %v1262_v13  ;;  %v1238_v19 = vmul.f32 0.5, %v4918_v32 }
0x116b   :  { %1266 = vrot.lane.b32.xlu0 %v1263_v16, %s5076_s24  ;;  %v1264_v11 = vmul.f32 %v1263_v16, %v5497_v49 }
0x116c   :  { %v1239_v26 = vadd.f32 0.5, %v1238_v19 }
0x116e   :  { %v1240_v36 = vsel %vm5187_vm3, %v4918_v32, %v1239_v26 }
0x116f   :  { %1243 = vrot.lane.b32.xlu1 %v1240_v36, %s5076_s24  ;;  %v1241_v44 = vmul.f32 %v1240_v36, %v5501_v54 }
0x11dd   :  { %v1267_v20 = vpop.permute.xlu0 %1266 }
0x11de   :  { %v1269_v17 = vmul.f32 %v1267_v20, %v1263_v16 }
0x11e0   :  { %1271 = vrot.lane.b32.xlu0 %v1269_v17, %s5079_s27 }
0x11e1   :  { %v1244_v14 = vpop.permute.xlu1 %1243 }
0x11e2   :  { %v1246_v42 = vmul.f32 %v1244_v14, %v1240_v36 }
0x11e4   :  { %1248 = vrot.lane.b32.xlu1 %v1246_v42, %s5079_s27 }
0x1252   :  { %v1272_v43 = vpop.permute.xlu0 %1271 }
0x1253   :  { %v1274_v24 = vadd.f32 %v1272_v43, %v1264_v11  ;;  %v4841_v11 = vld [vmem:[#allocation6 + $0x48] sm:$0xff]  }
0x1254   :  { %4566 = vmatprep.subr.bf16.mxu1 %v4841_v11 }
0x1255   :  { %4919 = vtanh.f32 %v1274_v24 }
0x1256   :  { %v1249_v45 = vpop.permute.xlu1 %1248 }
0x1257   :  { %v1251_v46 = vadd.f32 %v1249_v45, %v1241_v44  ;;  %v4842_v44 = vld [vmem:[#allocation6 + $0x40] sm:$0xff]  }
0x1259   :  { %4921 = vtanh.f32 %v1251_v46 }
0x1262   :  { %v4920_v47 = vpop.eup %4919 }
0x1263   :  { %1277 = vrot.lane.b32.xlu0 %v4920_v47, %s5076_s24 }
0x1266   :  { %v4922_v48 = vpop.eup %4921 }
0x1267   :  { %1254 = vrot.lane.b32.xlu1 %v4922_v48, %s5076_s24 }
0x12d5   :  { %v1278_v50 = vpop.permute.xlu0 %1277 }
0x12d6   :  { %v1280_v52 = vmul.f32 %v1278_v50, %v1263_v16 }
0x12d8   :  { %v1341_v5 = vpack.c.bf16 %v1280_v52, %v1280_v52 }
0x12d9   :  { %v1255_v6 = vpop.permute.xlu1 %1254 }
0x12da   :  { %v5547_v8 = vmul.f32 %v1255_v6, %v1240_v36  ;;  %1343 = vrot.lane.b32.xlu0 %v1341_v5, %s5079_s27 }
0x12dc   :  { %v1292_v49 = vpack.c.bf16 %v5547_v8, %v5547_v8 }
0x12de   :  { %1294 = vrot.lane.b32.xlu1 %v1292_v49, %s5079_s27 }
0x134c   :  { %v1344_v54 = vpop.permute.xlu0 %1343 }
0x134d   :  { %4551 = vmatmul.mubr.msk.bf16.vlgmr.msra.gmra.mxu1 %vm92_vm0, %v1344_v54  ;;  %v4848_v54 = vld [vmem:[#allocation6 + $0x60] sm:$0xff]  }
0x134e   :  { %4567 = vmatpush3.bf16.msra.mxu1 %v4841_v11 }
0x134f   :  { %4568 = vmatprep.subr.bf16.mxu1 %v4842_v44 }
0x1350   :  { %v1295_v9 = vpop.permute.xlu1 %1294 }
0x1351   :  { %4543 = vmatmul.mubr.msk.bf16.vlgmr.msra.gmra.mxu0 %vm92_vm0, %v1295_v9 }
0x1352   :  { %4569 = vmatpush3.bf16.msra.mxu1 %v4842_v44 }
0x140d   :  { %v1382_v59 = vpop.f32.mrf.mxu1 }
0x140e   :  { %v1388_v58 = vadd.f32 %v1382_v59, %v5168_v21 }
0x140f   :  { %v4552_v18 = vpop.f32.mrf.mxu1 }
0x1410   :  { %v1412_v60 = vmul.f32 0.5, %v1388_v58 }
0x1411   :  { %v1333_v23 = vpop.f32.mrf.mxu0  ;;  %v1385_v27 = vpop.f32.mrf.mxu1 }
0x1412   :  { %v1413_v28 = vsel %vm5187_vm3, %v1388_v58, %v1412_v60  ;;  %v1339_v30 = vadd.f32 %v1333_v23, %v167_v22 }
0x1413   :  { %4923 = vtanh.f32 %v1413_v28  ;;  %v4544_v31 = vpop.f32.mrf.mxu0  ;;  %v4553_v33 = vpop.f32.mrf.mxu1 }
0x1414   :  { %v1389_v61 = vmul.f32 0.5, %v1339_v30 }
0x1415   :  { %v1336_v63 = vpop.f32.mrf.mxu0 }
0x1416   :  { %v1390_v34 = vsel %vm5187_vm3, %v1339_v30, %v1389_v61 }
0x1417   :  { %4925 = vtanh.f32 %v1390_v34  ;;  %v4545_v21 = vpop.f32.mrf.mxu0  ;;  %v4847_v34 = vld [vmem:[#allocation6 + $0x70] sm:$0xff]  }
0x1420   :  { %v4924_v37 = vpop.eup %4923 }
0x1421   :  { %v1415_v38 = vmul.f32 0.5, %v4924_v37 }
0x1423   :  { %v1416_v25 = vadd.f32 0.5, %v1415_v38 }
0x1424   :  { %v4926_v15 = vpop.eup %4925 }
0x1425   :  { %v1417_v39 = vsel %vm5187_vm3, %v4924_v37, %v1416_v25  ;;  %v1392_v2 = vmul.f32 0.5, %v4926_v15 }
0x1426   :  { %1420 = vrot.lane.b32.xlu0 %v1417_v39, %s5076_s24  ;;  %v1418_v19 = vmul.f32 %v1417_v39, %v1274_v24 }
0x1427   :  { %v1393_v29 = vadd.f32 0.5, %v1392_v2 }
0x1429   :  { %v1394_v40 = vsel %vm5187_vm3, %v4926_v15, %v1393_v29 }
0x142a   :  { %1397 = vrot.lane.b32.xlu1 %v1394_v40, %s5076_s24  ;;  %v1395_v20 = vmul.f32 %v1394_v40, %v1251_v46 }
0x1498   :  { %v1421_v41 = vpop.permute.xlu0 %1420 }
0x1499   :  { %v1423_v13 = vmul.f32 %v1421_v41, %v1417_v39 }
0x149b   :  { %1425 = vrot.lane.b32.xlu0 %v1423_v13, %s5079_s27 }
0x149c   :  { %v1398_v32 = vpop.permute.xlu1 %1397 }
0x149d   :  { %v1400_v16 = vmul.f32 %v1398_v32, %v1394_v40 }
0x149f   :  { %1402 = vrot.lane.b32.xlu1 %v1400_v16, %s5079_s27 }
0x150d   :  { %v1426_v26 = vpop.permute.xlu0 %1425 }
0x150e   :  { %v1428_v36 = vadd.f32 %v1426_v26, %v1418_v19  ;;  %v5648_v26 = vld [vmem:[%s6333_s3 + $0x2] ss:$0 sm:$0xff] }
0x1510   :  { %4927 = vtanh.f32 %v1428_v36 }
0x1511   :  { %v1403_v17 = vpop.permute.xlu1 %1402 }
0x1512   :  { %v1405_v14 = vadd.f32 %v1403_v17, %v1395_v20 }
0x1514   :  { %4929 = vtanh.f32 %v1405_v14 }
0x151d   :  { %v4928_v42 = vpop.eup %4927 }
0x151e   :  { %1431 = vrot.lane.b32.xlu0 %v4928_v42, %s5076_s24 }
0x1521   :  { %v4930_v43 = vpop.eup %4929 }
0x1522   :  { %334 = vrot.lane.b32.xlu0 %v5253_v7, %s5079_s27  ;;  %1408 = vrot.lane.b32.xlu1 %v4930_v43, %s5076_s24  ;;  %v4843_v7 = vld [vmem:[#allocation6 + $0x58] sm:$0xff]  }
0x1523   :  { %4554 = vmatprep.subr.bf16.mxu0 %v4843_v7 }
0x1524   :  { %4555 = vmatpush3.bf16.msra.mxu0 %v4843_v7 }
0x1526   :  { %1287 = vrot.lane.b32.xlu0 %v1280_v52, %s5079_s27  ;;  %512 = vrot.lane.b32.xlu1 %v5313_v10, %s5079_s27  ;;  %v4844_v10 = vld [vmem:[#allocation6 + $0x50] sm:$0xff]  }
0x1527   :  { %4556 = vmatprep.subr.bf16.mxu0 %v4844_v10 }
0x1528   :  { %4557 = vmatpush3.bf16.msra.mxu0 %v4844_v10 }
0x152a   :  { %666 = vrot.lane.b32.xlu0 %v5363_v12, %s5079_s27  ;;  %820 = vrot.lane.b32.xlu1 %v5412_v1, %s5079_s27  ;;  %v5595_v1 = vld [vmem:[#allocation6 + $0x78] sm:$0xff]  }
0x152b   :  { %4578 = vmatprep.subr.bf16.mxu0 %v5595_v1 }
0x152e   :  { %979 = vrot.lane.b32.xlu0 %v5457_v53, %s5079_s27  ;;  %1133 = vrot.lane.b32.xlu1 %v5506_v51, %s5079_s27 }
0x1532   :  { %671 = vrot.lane.b32.xlu0 %v5359_v57, %s5079_s27  ;;  %825 = vrot.lane.b32.xlu1 %v5408_v55, %s5079_s27  ;;  %v4846_v55 = vld [vmem:[#allocation6 + $0x68] sm:$0xff]  }
0x1533   :  { %4590 = vmatprep.subr.bf16.mxu1 %v4846_v55 }
0x1536   :  { %974 = vrot.lane.b32.xlu0 %v5461_v3, %s5079_s27 }
0x153a   :  { %339 = vrot.lane.b32.xlu0 %v5249_v4, %s5079_s27 }
0x153e   :  { %1282 = vrot.lane.b32.xlu0 %v5547_v8, %s5079_s27 }
0x1590   :  { %v1432_v12 = vpop.permute.xlu0 %1431 }
0x1591   :  { %v1434_v57 = vmul.f32 %v1432_v12, %v1417_v39 }
0x1593   :  { %1441 = vrot.lane.b32.xlu1 %v1434_v57, %s5079_s27 }
0x1594   :  { %v335_v53 = vpop.permute.xlu0 %334  ;;  %v1409_v3 = vpop.permute.xlu1 %1408 }
0x1595   :  { %337 = vst.msk [vmem:[#allocation2] sm:$0xff] %vm92_vm0, %v335_v53  ;;  %v1411_v46 = vmul.f32 %v1409_v3, %v1394_v40 }
0x1597   :  { %1128 = vrot.lane.b32.xlu1 %v5510_v0, %s5079_s27 }
0x1598   :  { %v1288_v4 = vpop.permute.xlu0 %1287  ;;  %v513_v51 = vpop.permute.xlu1 %512 }
0x1599   :  { %1290 = vst.msk [vmem:[#allocation3 + $0x8] sm:$0xff] %vm92_vm0, %v1288_v4  ;;  %515 = vst.msk [vmem:[#allocation2 + $0x8] sm:$0xff] %vm92_vm0, %v513_v51 }
0x159b   :  { %517 = vrot.lane.b32.xlu1 %v5309_v56, %s5079_s27 }
0x159c   :  { %v667_v24 = vpop.permute.xlu0 %666  ;;  %v821_v45 = vpop.permute.xlu1 %820  ;;  %v1445_v48 = vld [vmem:[#allocation2] sm:$0xff] }
0x159d   :  { %669 = vst.msk [vmem:[#allocation2 + $0x10] sm:$0xff] %vm92_vm0, %v667_v24  ;;  %823 = vst.msk [vmem:[#allocation2 + $0x18] sm:$0xff] %vm92_vm0, %v821_v45 }
0x159f   :  { %1436 = vrot.lane.b32.xlu1 %v1411_v46, %s5079_s27 }
0x15a0   :  { %v980_v47 = vpop.permute.xlu0 %979  ;;  %v1134_v0 = vpop.permute.xlu1 %1133  ;;  %v1446_v50 = vld [vmem:[#allocation2 + $0x8] sm:$0xff] }
0x15a1   :  { %982 = vst.msk [vmem:[#allocation3 + $0x18] sm:$0xff] %vm92_vm0, %v980_v47  ;;  %1136 = vst.msk [vmem:[#allocation3 + $0x10] sm:$0xff] %vm92_vm0, %v1134_v0  ;;  %v1453_v52 = vpack.c.bf16 %v1446_v50, %v1445_v48  ;;  %v1458_v60 = vld [vmem:[#allocation3 + $0x8] sm:$0xff] }
0x15a3   :  { %4570 = vmatprep.mubr.msk.bf16.mxu1 %vm92_vm0, %v1453_v52 }
0x15a4   :  { %v672_v56 = vpop.permute.xlu0 %671  ;;  %v826_v5 = vpop.permute.xlu1 %825  ;;  %v1447_v6 = vld [vmem:[#allocation2 + $0x10] sm:$0xff]  ;;  %v1448_v8 = vld [vmem:[#allocation2 + $0x18] sm:$0xff] }
0x15a5   :  { %674 = vst.msk [vmem:[#allocation3 + $0x28] sm:$0xff] %vm92_vm0, %v672_v56  ;;  %828 = vst.msk [vmem:[#allocation3 + $0x20] sm:$0xff] %vm92_vm0, %v826_v5  ;;  %v1454_v49 = vpack.c.bf16 %v1448_v8, %v1447_v6  ;;  %v5673_v8 = vld [vmem:[%s6333_s3 + $0x3] ss:$0 sm:$0xff] }
0x15a7   :  { %4571 = vmatmul.mubr.msk.bf16.vlgmr.msra.gmra.mxu1 %vm92_vm0, %v1454_v49 }
0x15a8   :  { %v975_v9 = vpop.permute.xlu0 %974  ;;  %4591 = vmatpush3.bf16.msra.mxu1 %v4846_v55  ;;  %v1459_v23 = vld [vmem:[#allocation3 + $0x10] sm:$0xff]  ;;  %v1460_v27 = vld [vmem:[#allocation3 + $0x18] sm:$0xff] }
0x15a9   :  { %977 = vst.msk [vmem:[#allocation2 + $0x20] sm:$0xff] %vm92_vm0, %v975_v9  ;;  %4592 = vmatprep.subr.bf16.mxu1 %v4848_v54  ;;  %v1466_v63 = vpack.c.bf16 %v1460_v27, %v1459_v23 }
0x15ac   :  { %v340_v59 = vpop.permute.xlu0 %339  ;;  %4593 = vmatpush3.bf16.msra.mxu1 %v4848_v54  ;;  %v1461_v31 = vld [vmem:[#allocation3 + $0x20] sm:$0xff]  ;;  %v1462_v33 = vld [vmem:[#allocation3 + $0x28] sm:$0xff] }
0x15ad   :  { %342 = vst.msk [vmem:[#allocation3 + $0x38] sm:$0xff] %vm92_vm0, %v340_v59  ;;  %4610 = vmatprep.subr.bf16.mxu1 %v5080_v62  ;;  %v1467_v21 = vpack.c.bf16 %v1462_v33, %v1461_v31 }
0x15b0   :  { %v1283_v58 = vpop.permute.xlu0 %1282  ;;  %v1449_v38 = vld [vmem:[#allocation2 + $0x20] sm:$0xff] }
0x15b1   :  { %1285 = vst.msk [vmem:[#allocation2 + $0x30] sm:$0xff] %vm92_vm0, %v1283_v58 }
0x15b4   :  { %v1464_v2 = vld [vmem:[#allocation3 + $0x38] sm:$0xff] }
0x15b8   :  { %v1451_v40 = vld [vmem:[#allocation2 + $0x30] sm:$0xff] }
0x1605   :  { %v1442_v18 = vpop.permute.xlu1 %1441 }
0x1606   :  { %1444 = vst.msk [vmem:[#allocation3] sm:$0xff] %vm92_vm0, %v1442_v18 }
0x1609   :  { %v1129_v22 = vpop.permute.xlu1 %1128 }
0x160a   :  { %1131 = vst.msk [vmem:[#allocation2 + $0x28] sm:$0xff] %vm92_vm0, %v1129_v22 }
0x160d   :  { %v518_v28 = vpop.permute.xlu1 %517  ;;  %v1457_v30 = vld [vmem:[#allocation3] sm:$0xff] }
0x160e   :  { %520 = vst.msk [vmem:[#allocation3 + $0x30] sm:$0xff] %vm92_vm0, %v518_v28  ;;  %v1465_v61 = vpack.c.bf16 %v1458_v60, %v1457_v30 }
0x1610   :  { %4558 = vmatprep.mubr.msk.bf16.mxu0 %vm92_vm0, %v1465_v61 }
0x1611   :  { %4559 = vmatmul.mubr.msk.bf16.vlgmr.msra.gmra.mxu0 %vm92_vm0, %v1466_v63  ;;  %v1437_v37 = vpop.permute.xlu1 %1436  ;;  %v1450_v25 = vld [vmem:[#allocation2 + $0x28] sm:$0xff] }
0x1612   :  { %1439 = vst.msk [vmem:[#allocation2 + $0x38] sm:$0xff] %vm92_vm0, %v1437_v37  ;;  %4562 = vmatprep.mubr.msk.bf16.mxu0 %vm92_vm0, %v1467_v21  ;;  %v1455_v15 = vpack.c.bf16 %v1450_v25, %v1449_v38  ;;  %4579 = vmatpush3.bf16.msra.mxu0 %v5595_v1 }
0x1613   :  { %4580 = vmatprep.subr.bf16.mxu0 %v4847_v34 }
0x1614   :  { %4574 = vmatprep.mubr.msk.bf16.mxu1 %vm92_vm0, %v1455_v15 }
0x1615   :  { %v1463_v39 = vld [vmem:[#allocation3 + $0x30] sm:$0xff] }
0x1616   :  { %v1468_v29 = vpack.c.bf16 %v1464_v2, %v1463_v39  ;;  %4581 = vmatpush3.bf16.msra.mxu0 %v4847_v34 }
0x1617   :  { %4602 = vmatprep.subr.bf16.mxu0 %v5080_v62 }
0x1619   :  { %4563 = vmatmul.mubr.msk.bf16.gmra.mxu0 %vm92_vm0, %v1468_v29  ;;  %v1452_v41 = vld [vmem:[#allocation2 + $0x38] sm:$0xff] }
0x161a   :  { %4582 = vmatprep.mubr.msk.bf16.mxu0 %vm92_vm0, %v1465_v61  ;;  %v1456_v13 = vpack.c.bf16 %v1452_v41, %v1451_v40 }
0x161c   :  { %4575 = vmatmul.mubr.msk.bf16.gmra.mxu1 %vm92_vm0, %v1456_v13 }
0x161d   :  { %4594 = vmatprep.mubr.msk.bf16.mxu1 %vm92_vm0, %v1453_v52 }
0x1621   :  { %4583 = vmatmul.mubr.msk.bf16.vlgmr.msra.gmra.mxu0 %vm92_vm0, %v1466_v63 }
0x1622   :  { %4586 = vmatprep.mubr.msk.bf16.mxu0 %vm92_vm0, %v1467_v21 }
0x1624   :  { %4595 = vmatmul.mubr.msk.bf16.vlgmr.msra.gmra.mxu1 %vm92_vm0, %v1454_v49 }
0x1625   :  { %4598 = vmatprep.mubr.msk.bf16.mxu1 %vm92_vm0, %v1455_v15 }
0x1629   :  { %4587 = vmatmul.mubr.msk.bf16.gmra.mxu0 %vm92_vm0, %v1468_v29 }
0x162a   :  { %4606 = vmatprep.mubr.msk.bf16.mxu0 %vm5081_vm4, %v5080_v62 }
0x162c   :  { %4599 = vmatmul.mubr.msk.bf16.gmra.mxu1 %vm92_vm0, %v1456_v13 }
0x162d   :  { %4614 = vmatprep.mubr.msk.bf16.mxu1 %vm5081_vm4, %v5080_v62 }
0x1667   :  { %v4572_v32 = vpop.f32.mrf.mxu1 }
0x1669   :  { %v5643_v16 = vpop.f32.mrf.mxu1 }
0x166b   :  { %v4573_v20 = vpop.f32.mrf.mxu1 }
0x166d   :  { %v1629_v43 = vpop.f32.mrf.mxu1 }
0x16d1   :  { %v4560_v19 = vpop.f32.mrf.mxu0 }
0x16d2   :  { %v1635_v36 = vadd.f32 %v4572_v32, %v4560_v19 }
0x16d3   :  { %v5650_v17 = vpop.f32.mrf.mxu0 }
0x16d4   :  { %v5653_v14 = vadd.f32 %v5648_v26, %v1635_v36 }
0x16d5   :  { %v4561_v42 = vpop.f32.mrf.mxu0 }
0x16d6   :  { %v1638_v11 = vadd.f32 %v4573_v20, %v4561_v42 }
0x16d7   :  { %v1540_v44 = vpop.f32.mrf.mxu0 }
0x16d8   :  { %v1630_v7 = vadd.f32 %v1629_v43, %v1540_v44  ;;  %v5656_v10 = vadd.f32 %v5648_v26, %v1638_v11 }
0x16d9   :  { %v4564_v12 = vpop.f32.mrf.mxu0 }
0x16da   :  { %v5659_v57 = vadd.f32 %v5648_v26, %v1630_v7 }
0x16db   :  { %v1553_v1 = vpop.f32.mrf.mxu0 }
0x16dc   :  { %v4576_v55 = vpop.f32.mrf.mxu1 }
0x16dd   :  { %v1651_v53 = vadd.f32 %v4576_v55, %v4564_v12  ;;  %v4565_v3 = vpop.f32.mrf.mxu0  ;;  %v5707_v12 = vld [vmem:[%s6332_s2 + $0x38] sm:$0xff]  }
0x16de   :  { %v1642_v4 = vpop.f32.mrf.mxu1  ;;  %4611 = vmatpush3.bf16.msra.mxu1 %v5707_v12 }
0x16df   :  { %v1643_v51 = vadd.f32 %v1642_v4, %v1553_v1  ;;  %v1556_v24 = vpop.f32.mrf.mxu0  ;;  %v5662_v45 = vadd.f32 %v5648_v26, %v1651_v53  ;;  %v5713_v1 = vld [vmem:[%s6332_s2 + $0x30] sm:$0xff]   ;;  %4612 = vmatprep.subr.bf16.mxu1 %v5080_v62  ;;  %v1627_v53 = vadd.f32 %v5643_v16, %v5650_v17 }
0x16e0   :  { %v4577_v46 = vpop.f32.mrf.mxu1 }
0x16e1   :  { %v1654_v47 = vadd.f32 %v4577_v46, %v4565_v3  ;;  %v4584_v0 = vpop.f32.mrf.mxu0  ;;  %v5665_v48 = vadd.f32 %v5648_v26, %v1643_v51  ;;  %v1665_v3 = vadd.f32 %v5648_v26, %v1627_v53 }
0x16e2   :  { %v1645_v50 = vpop.f32.mrf.mxu1  ;;  %4613 = vmatpush3.bf16.msra.mxu1 %v5713_v1 }
0x16e3   :  { %v1646_v52 = vadd.f32 %v1645_v50, %v1556_v24  ;;  %v1737_v56 = vpop.f32.mrf.mxu0  ;;  %v5668_v5 = vadd.f32 %v5648_v26, %v1654_v47  ;;  %4626 = vmatprep.subr.bf16.mxu1 %v5080_v62  ;;  %v1881_v4 = vmul.f32 0.5, %v1665_v3 }
0x16e4   :  { %v4596_v6 = vpop.f32.mrf.mxu1 }
0x16e5   :  { %v1823_v49 = vadd.f32 %v4596_v6, %v4584_v0  ;;  %v4585_v54 = vpop.f32.mrf.mxu0  ;;  %v5676_v9 = vadd.f32 %v5648_v26, %v1646_v52  ;;  %v1882_v51 = vsel %vm5187_vm3, %v1665_v3, %v1881_v4 }
0x16e6   :  { %v1814_v59 = vpop.f32.mrf.mxu1 }
0x16e7   :  { %v1815_v58 = vadd.f32 %v1814_v59, %v1737_v56  ;;  %v1740_v18 = vpop.f32.mrf.mxu0  ;;  %v5679_v22 = vadd.f32 %v5673_v8, %v1823_v49 }
0x16e8   :  { %v4597_v60 = vpop.f32.mrf.mxu1 }
0x16e9   :  { %v1826_v23 = vadd.f32 %v4597_v60, %v4585_v54  ;;  %v4588_v27 = vpop.f32.mrf.mxu0  ;;  %v5682_v28 = vadd.f32 %v5673_v8, %v1815_v58 }
0x16ea   :  { %v1817_v30 = vpop.f32.mrf.mxu1 }
0x16eb   :  { %v1818_v31 = vadd.f32 %v1817_v30, %v1740_v18  ;;  %v5685_v33 = vadd.f32 %v5673_v8, %v1826_v23  ;;  %v1753_v61 = vpop.f32.mrf.mxu0 }
0x16ec   :  { %v4600_v63 = vpop.f32.mrf.mxu1 }
0x16ed   :  { %v1839_v34 = vadd.f32 %v4600_v63, %v4588_v27  ;;  %v5688_v21 = vadd.f32 %v5673_v8, %v1818_v31  ;;  %v4589_v15 = vpop.f32.mrf.mxu0  ;;  %v5751_v63 = vld [vmem:[%s6332_s2 + $0x28] sm:$0xff]  }
0x16ee   :  { %v1830_v37 = vpop.f32.mrf.mxu1  ;;  %4603 = vmatpush3.bf16.msra.mxu0 %v5751_v63 }
0x16ef   :  { %v1831_v38 = vadd.f32 %v1830_v37, %v1753_v61  ;;  %v1859_v25 = vadd.f32 %v5673_v8, %v1839_v34  ;;  %v5757_v34 = vld [vmem:[%s6332_s2 + $0x20] sm:$0xff]   ;;  %4604 = vmatprep.subr.bf16.mxu0 %v5080_v62 }
0x16f0   :  { %v4601_v39 = vpop.f32.mrf.mxu1 }
0x16f1   :  { %v1842_v2 = vadd.f32 %v4601_v39, %v4589_v15  ;;  %v5692_v29 = vadd.f32 %v5673_v8, %v1831_v38 }
0x16f2   :  { %v5744_v58 = vpop.f32.mrf.mxu1  ;;  %4605 = vmatpush3.bf16.msra.mxu0 %v5757_v34 }
0x16f3   :  { %v1860_v40 = vadd.f32 %v5673_v8, %v1842_v2  ;;  %4618 = vmatprep.subr.bf16.mxu0 %v5080_v62 }
0x16f5   :  { %v1904_v41 = vmul.f32 0.5, %v1860_v40 }
0x16f7   :  { %v1905_v13 = vsel %vm5187_vm3, %v1860_v40, %v1904_v41 }
0x16f8   :  { %4931 = vtanh.f32 %v1905_v13 }
0x1705   :  { %v4932_v32 = vpop.eup %4931 }
0x1706   :  { %v1907_v19 = vmul.f32 0.5, %v4932_v32 }
0x1708   :  { %v1908_v36 = vadd.f32 0.5, %v1907_v19 }
0x170a   :  { %v1909_v20 = vsel %vm5187_vm3, %v4932_v32, %v1908_v36 }
0x170b   :  { %1912 = vrot.lane.b32.xlu0 %v1909_v20, %s5076_s24  ;;  %v1910_v43 = vmul.f32 0.0, %v1909_v20 }
0x177d   :  { %v1913_v42 = vpop.permute.xlu0 %1912 }
0x177e   :  { %v1915_v11 = vmul.f32 %v1913_v42, %v1909_v20 }
0x1780   :  { %1917 = vrot.lane.b32.xlu1 %v1915_v11, %s5079_s27  ;;  %v1756_v11 = vpop.f32.mrf.mxu0 }
0x17f2   :  { %v1918_v44 = vpop.permute.xlu1 %1917 }
0x17f3   :  { %v5701_v7 = vadd.f32 %v1918_v44, %v1910_v43 }
0x17f5   :  { %4933 = vtanh.f32 %v5701_v7 }
0x17f6   :  { %4935 = vtanh.f32 %v1882_v51 }
0x1802   :  { %v4934_v55 = vpop.eup %4933 }
0x1803   :  { %1923 = vrot.lane.b32.xlu0 %v4934_v55, %s5076_s24  ;;  %v4936_v24 = vpop.eup %4935 }
0x1804   :  { %v1884_v47 = vmul.f32 0.5, %v4936_v24 }
0x1806   :  { %v1885_v52 = vadd.f32 0.5, %v1884_v47 }
0x1808   :  { %v1886_v16 = vsel %vm5187_vm3, %v4936_v24, %v1885_v52 }
0x1809   :  { %v1887_v6 = vmul.f32 0.0, %v1886_v16 }
0x1875   :  { %v1924_v46 = vpop.permute.xlu0 %1923 }
0x1876   :  { %v5724_v0 = vmul.f32 %v1924_v46, %v1909_v20 }
0x1878   :  { %v1999_v50 = vpack.c.bf16 %v5724_v0, %v5724_v0 }
0x187a   :  { %2001 = vrot.lane.b32.xlu1 %v1999_v50, %s5079_s27 }
0x187e   :  { %1889 = vrot.lane.b32.xlu1 %v1886_v16, %s5076_s24 }
0x18ec   :  { %v2002_v26 = vpop.permute.xlu1 %2001 }
0x18ed   :  { %4615 = vmatmul.mubr.msk.bf16.vlgmr.msra.gmra.mxu1 %vm92_vm0, %v2002_v26 }
0x18ee   :  { %4627 = vmatpush3.bf16.msra.mxu1 %v5707_v12  ;;  %4630 = vmatprep.mubr.msk.bf16.mxu1 %vm5081_vm4, %v5080_v62 }
0x18ef   :  { %4628 = vmatprep.subr.bf16.mxu1 %v5080_v62 }
0x18f0   :  { %v1890_v17 = vpop.permute.xlu1 %1889 }
0x18f1   :  { %v1892_v56 = vmul.f32 %v1890_v17, %v1886_v16 }
0x18f2   :  { %4629 = vmatpush3.bf16.msra.mxu1 %v5713_v1 }
0x18f3   :  { %1894 = vrot.lane.b32.xlu1 %v1892_v56, %s5079_s27  ;;  %4642 = vmatprep.subr.bf16.mxu1 %v5080_v62 }
0x1965   :  { %v1895_v49 = vpop.permute.xlu1 %1894 }
0x1966   :  { %v5740_v54 = vadd.f32 %v1895_v49, %v1887_v6 }
0x1968   :  { %4937 = vtanh.f32 %v5740_v54 }
0x1975   :  { %v4938_v59 = vpop.eup %4937 }
0x1976   :  { %1900 = vrot.lane.b32.xlu1 %v4938_v59, %s5076_s24 }
0x19ad   :  { %v2052_v18 = vpop.f32.mrf.mxu1 }
0x19ae   :  { %v2058_v60 = vadd.f32 %v2052_v18, %v1859_v25  ;;  %v1834_v18 = vadd.f32 %v5744_v58, %v1756_v11 }
0x19af   :  { %v4616_v23 = vpop.f32.mrf.mxu1 }
0x19b0   :  { %v2082_v27 = vmul.f32 0.5, %v2058_v60 }
0x19b1   :  { %v2055_v30 = vpop.f32.mrf.mxu1 }
0x19b2   :  { %v2083_v31 = vsel %vm5187_vm3, %v2058_v60, %v2082_v27  ;;  %v1858_v60 = vadd.f32 %v5673_v8, %v1834_v18 }
0x19b3   :  { %4939 = vtanh.f32 %v2083_v31  ;;  %v4617_v61 = vpop.f32.mrf.mxu1 }
0x19c0   :  { %v4940_v37 = vpop.eup %4939 }
0x19c1   :  { %v2085_v38 = vmul.f32 0.5, %v4940_v37 }
0x19c3   :  { %v2086_v25 = vadd.f32 0.5, %v2085_v38 }
0x19c5   :  { %v2087_v15 = vsel %vm5187_vm3, %v4940_v37, %v2086_v25 }
0x19c6   :  { %2090 = vrot.lane.b32.xlu0 %v2087_v15, %s5076_s24  ;;  %v2088_v19 = vmul.f32 %v2087_v15, %v5701_v7 }
0x19e8   :  { %v1901_v39 = vpop.permute.xlu1 %1900 }
0x19e9   :  { %v5765_v2 = vmul.f32 %v1901_v39, %v1886_v16 }
0x19eb   :  { %v1938_v40 = vpack.c.bf16 %v5765_v2, %v5765_v2 }
0x19ed   :  { %1940 = vrot.lane.b32.xlu1 %v1938_v40, %s5079_s27 }
0x1a38   :  { %v2091_v41 = vpop.permute.xlu0 %2090 }
0x1a39   :  { %v2093_v13 = vmul.f32 %v2091_v41, %v2087_v15 }
0x1a3b   :  { %2095 = vrot.lane.b32.xlu0 %v2093_v13, %s5079_s27 }
0x1a5f   :  { %v1941_v32 = vpop.permute.xlu1 %1940 }
0x1a60   :  { %4607 = vmatmul.mubr.msk.bf16.vlgmr.msra.gmra.mxu0 %vm92_vm0, %v1941_v32 }
0x1a61   :  { %4619 = vmatpush3.bf16.msra.mxu0 %v5751_v63  ;;  %4622 = vmatprep.mubr.msk.bf16.mxu0 %vm5081_vm4, %v5080_v62 }
0x1a62   :  { %4620 = vmatprep.subr.bf16.mxu0 %v5080_v62 }
0x1a65   :  { %4621 = vmatpush3.bf16.msra.mxu0 %v5757_v34 }
0x1a66   :  { %4634 = vmatprep.subr.bf16.mxu0 %v5080_v62 }
0x1aad   :  { %v2096_v36 = vpop.permute.xlu0 %2095 }
0x1aae   :  { %v5779_v20 = vadd.f32 %v2096_v36, %v2088_v19 }
0x1ab0   :  { %4941 = vtanh.f32 %v5779_v20 }
0x1abd   :  { %v4942_v42 = vpop.eup %4941 }
0x1abe   :  { %2101 = vrot.lane.b32.xlu0 %v4942_v42, %s5076_s24 }
0x1b20   :  { %v1991_v43 = vpop.f32.mrf.mxu0 }
0x1b21   :  { %v1997_v44 = vadd.f32 %v1991_v43, %v5659_v57 }
0x1b22   :  { %v4608_v55 = vpop.f32.mrf.mxu0 }
0x1b23   :  { %v2059_v53 = vmul.f32 0.5, %v1997_v44 }
0x1b24   :  { %v1994_v3 = vpop.f32.mrf.mxu0 }
0x1b25   :  { %v2060_v4 = vsel %vm5187_vm3, %v1997_v44, %v2059_v53 }
0x1b26   :  { %4943 = vtanh.f32 %v2060_v4  ;;  %v4609_v7 = vpop.f32.mrf.mxu0 }
0x1b30   :  { %v2102_v51 = vpop.permute.xlu0 %2101 }
0x1b31   :  { %v5786_v24 = vmul.f32 %v2102_v51, %v2087_v15 }
0x1b33   :  { %v4944_v46 = vpop.eup %4943  ;;  %v2165_v47 = vpack.c.bf16 %v5786_v24, %v5786_v24 }
0x1b34   :  { %v2062_v50 = vmul.f32 0.5, %v4944_v46 }
0x1b35   :  { %2167 = vrot.lane.b32.xlu0 %v2165_v47, %s5079_s27 }
0x1b36   :  { %v2063_v52 = vadd.f32 0.5, %v2062_v50 }
0x1b38   :  { %v2064_v57 = vsel %vm5187_vm3, %v4944_v46, %v2063_v52 }
0x1b39   :  { %2067 = vrot.lane.b32.xlu1 %v2064_v57, %s5076_s24  ;;  %v2065_v56 = vmul.f32 %v2064_v57, %v5740_v54 }
0x1ba7   :  { %v2168_v16 = vpop.permute.xlu0 %2167 }
0x1ba8   :  { %4631 = vmatmul.mubr.msk.bf16.vlgmr.msra.gmra.mxu1 %vm92_vm0, %v2168_v16 }
0x1ba9   :  { %4643 = vmatpush3.bf16.msra.mxu1 %v5707_v12  ;;  %4646 = vmatprep.mubr.msk.bf16.mxu1 %vm5081_vm4, %v5080_v62 }
0x1baa   :  { %4644 = vmatprep.subr.bf16.mxu1 %v5080_v62 }
0x1bab   :  { %v2068_v26 = vpop.permute.xlu1 %2067 }
0x1bac   :  { %v2070_v17 = vmul.f32 %v2068_v26, %v2064_v57 }
0x1bad   :  { %4645 = vmatpush3.bf16.msra.mxu1 %v5713_v1 }
0x1bae   :  { %2072 = vrot.lane.b32.xlu1 %v2070_v17, %s5079_s27  ;;  %4658 = vmatprep.subr.bf16.mxu1 %v5080_v62 }
0x1c20   :  { %v2073_v6 = vpop.permute.xlu1 %2072 }
0x1c21   :  { %v5803_v49 = vadd.f32 %v2073_v6, %v2065_v56 }
0x1c23   :  { %4945 = vtanh.f32 %v5803_v49 }
0x1c30   :  { %v4946_v59 = vpop.eup %4945 }
0x1c31   :  { %2078 = vrot.lane.b32.xlu1 %v4946_v59, %s5076_s24 }
0x1c68   :  { %v2206_v23 = vpop.f32.mrf.mxu1 }
0x1c69   :  { %v2212_v27 = vadd.f32 %v2206_v23, %v1858_v60 }
0x1c6a   :  { %v4632_v30 = vpop.f32.mrf.mxu1 }
0x1c6b   :  { %v2236_v31 = vmul.f32 0.5, %v2212_v27 }
0x1c6c   :  { %v2209_v61 = vpop.f32.mrf.mxu1 }
0x1c6d   :  { %v2237_v54 = vsel %vm5187_vm3, %v2212_v27, %v2236_v31 }
0x1c6e   :  { %4947 = vtanh.f32 %v2237_v54  ;;  %v4633_v37 = vpop.f32.mrf.mxu1 }
0x1c7b   :  { %v4948_v38 = vpop.eup %4947 }
0x1c7c   :  { %v2239_v25 = vmul.f32 0.5, %v4948_v38 }
0x1c7e   :  { %v2240_v15 = vadd.f32 0.5, %v2239_v25 }
0x1c80   :  { %v2241_v39 = vsel %vm5187_vm3, %v4948_v38, %v2240_v15 }
0x1c81   :  { %2244 = vrot.lane.b32.xlu0 %v2241_v39, %s5076_s24  ;;  %v2242_v19 = vmul.f32 %v2241_v39, %v5779_v20 }
0x1ca3   :  { %v2079_v58 = vpop.permute.xlu1 %2078 }
0x1ca4   :  { %v5814_v8 = vmul.f32 %v2079_v58, %v2064_v57 }
0x1ca6   :  { %v2116_v40 = vpack.c.bf16 %v5814_v8, %v5814_v8 }
0x1ca8   :  { %2118 = vrot.lane.b32.xlu1 %v2116_v40, %s5079_s27 }
0x1cf3   :  { %v2245_v41 = vpop.permute.xlu0 %2244 }
0x1cf4   :  { %v2247_v13 = vmul.f32 %v2245_v41, %v2241_v39 }
0x1cf6   :  { %2249 = vrot.lane.b32.xlu0 %v2247_v13, %s5079_s27 }
0x1d1a   :  { %v2119_v32 = vpop.permute.xlu1 %2118 }
0x1d1b   :  { %4623 = vmatmul.mubr.msk.bf16.vlgmr.msra.gmra.mxu0 %vm92_vm0, %v2119_v32 }
0x1d1c   :  { %4635 = vmatpush3.bf16.msra.mxu0 %v5751_v63  ;;  %4638 = vmatprep.mubr.msk.bf16.mxu0 %vm5081_vm4, %v5080_v62 }
0x1d1d   :  { %4636 = vmatprep.subr.bf16.mxu0 %v5080_v62 }
0x1d20   :  { %4637 = vmatpush3.bf16.msra.mxu0 %v5757_v34 }
0x1d21   :  { %4650 = vmatprep.subr.bf16.mxu0 %v5080_v62 }
0x1d68   :  { %v2250_v36 = vpop.permute.xlu0 %2249 }
0x1d69   :  { %v5828_v42 = vadd.f32 %v2250_v36, %v2242_v19 }
0x1d6b   :  { %4949 = vtanh.f32 %v5828_v42 }
0x1d78   :  { %v4950_v11 = vpop.eup %4949 }
0x1d79   :  { %2255 = vrot.lane.b32.xlu0 %v4950_v11, %s5076_s24 }
0x1ddb   :  { %v2157_v43 = vpop.f32.mrf.mxu0 }
0x1ddc   :  { %v2163_v44 = vadd.f32 %v2157_v43, %v5653_v14 }
0x1ddd   :  { %v4624_v55 = vpop.f32.mrf.mxu0 }
0x1dde   :  { %v2213_v53 = vmul.f32 0.5, %v2163_v44 }
0x1ddf   :  { %v2160_v3 = vpop.f32.mrf.mxu0 }
0x1de0   :  { %v2214_v4 = vsel %vm5187_vm3, %v2163_v44, %v2213_v53 }
0x1de1   :  { %4951 = vtanh.f32 %v2214_v4  ;;  %v4625_v7 = vpop.f32.mrf.mxu0 }
0x1deb   :  { %v2256_v20 = vpop.permute.xlu0 %2255 }
0x1dec   :  { %v5835_v51 = vmul.f32 %v2256_v20, %v2241_v39 }
0x1dee   :  { %v4952_v46 = vpop.eup %4951  ;;  %v2319_v47 = vpack.c.bf16 %v5835_v51, %v5835_v51 }
0x1def   :  { %v2216_v50 = vmul.f32 0.5, %v4952_v46 }
0x1df0   :  { %2321 = vrot.lane.b32.xlu0 %v2319_v47, %s5079_s27 }
0x1df1   :  { %v2217_v52 = vadd.f32 0.5, %v2216_v50 }
0x1df3   :  { %v2218_v14 = vsel %vm5187_vm3, %v4952_v46, %v2217_v52 }
0x1df4   :  { %2221 = vrot.lane.b32.xlu1 %v2218_v14, %s5076_s24  ;;  %v2219_v17 = vmul.f32 %v2218_v14, %v5803_v49 }
0x1e62   :  { %v2322_v57 = vpop.permute.xlu0 %2321 }
0x1e63   :  { %4647 = vmatmul.mubr.msk.bf16.vlgmr.msra.gmra.mxu1 %vm92_vm0, %v2322_v57 }
0x1e64   :  { %4659 = vmatpush3.bf16.msra.mxu1 %v5707_v12  ;;  %4662 = vmatprep.mubr.msk.bf16.mxu1 %vm5081_vm4, %v5080_v62 }
0x1e65   :  { %4660 = vmatprep.subr.bf16.mxu1 %v5080_v62 }
0x1e66   :  { %v2222_v16 = vpop.permute.xlu1 %2221 }
0x1e67   :  { %v2224_v26 = vmul.f32 %v2222_v16, %v2218_v14 }
0x1e68   :  { %4661 = vmatpush3.bf16.msra.mxu1 %v5713_v1 }
0x1e69   :  { %2226 = vrot.lane.b32.xlu1 %v2224_v26, %s5079_s27  ;;  %4674 = vmatprep.subr.bf16.mxu1 %v5080_v62 }
0x1edb   :  { %v2227_v56 = vpop.permute.xlu1 %2226 }
0x1edc   :  { %v5852_v6 = vadd.f32 %v2227_v56, %v2219_v17 }
0x1ede   :  { %4953 = vtanh.f32 %v5852_v6 }
0x1eeb   :  { %v4954_v59 = vpop.eup %4953 }
0x1eec   :  { %2232 = vrot.lane.b32.xlu1 %v4954_v59, %s5076_s24 }
0x1f23   :  { %v2360_v18 = vpop.f32.mrf.mxu1 }
0x1f24   :  { %v2366_v60 = vadd.f32 %v2360_v18, %v5692_v29 }
0x1f25   :  { %v4648_v23 = vpop.f32.mrf.mxu1 }
0x1f26   :  { %v2390_v27 = vmul.f32 0.5, %v2366_v60 }
0x1f27   :  { %v2363_v30 = vpop.f32.mrf.mxu1 }
0x1f28   :  { %v2391_v31 = vsel %vm5187_vm3, %v2366_v60, %v2390_v27 }
0x1f29   :  { %4955 = vtanh.f32 %v2391_v31  ;;  %v4649_v61 = vpop.f32.mrf.mxu1 }
0x1f36   :  { %v4956_v49 = vpop.eup %4955 }
0x1f37   :  { %v2393_v54 = vmul.f32 0.5, %v4956_v49 }
0x1f39   :  { %v2394_v37 = vadd.f32 0.5, %v2393_v54 }
0x1f3b   :  { %v2395_v38 = vsel %vm5187_vm3, %v4956_v49, %v2394_v37 }
0x1f3c   :  { %2398 = vrot.lane.b32.xlu0 %v2395_v38, %s5076_s24  ;;  %v2396_v41 = vmul.f32 %v2395_v38, %v5828_v42 }
0x1f5e   :  { %v2233_v25 = vpop.permute.xlu1 %2232 }
0x1f5f   :  { %v5862_v15 = vmul.f32 %v2233_v25, %v2218_v14 }
0x1f61   :  { %v2270_v29 = vpack.c.bf16 %v5862_v15, %v5862_v15 }
0x1f63   :  { %2272 = vrot.lane.b32.xlu1 %v2270_v29, %s5079_s27 }
0x1fae   :  { %v2399_v39 = vpop.permute.xlu0 %2398 }
0x1faf   :  { %v2401_v58 = vmul.f32 %v2399_v39, %v2395_v38 }
0x1fb1   :  { %2403 = vrot.lane.b32.xlu0 %v2401_v58, %s5079_s27 }
0x1fd5   :  { %v2273_v40 = vpop.permute.xlu1 %2272 }
0x1fd6   :  { %4639 = vmatmul.mubr.msk.bf16.vlgmr.msra.gmra.mxu0 %vm92_vm0, %v2273_v40 }
0x1fd7   :  { %4651 = vmatpush3.bf16.msra.mxu0 %v5751_v63  ;;  %4654 = vmatprep.mubr.msk.bf16.mxu0 %vm5081_vm4, %v5080_v62 }
0x1fd8   :  { %4652 = vmatprep.subr.bf16.mxu0 %v5080_v62 }
0x1fdb   :  { %4653 = vmatpush3.bf16.msra.mxu0 %v5757_v34 }
0x1fdc   :  { %4666 = vmatprep.subr.bf16.mxu0 %v5080_v62 }
0x2023   :  { %v2404_v13 = vpop.permute.xlu0 %2403 }
0x2024   :  { %v5876_v32 = vadd.f32 %v2404_v13, %v2396_v41 }
0x2026   :  { %4957 = vtanh.f32 %v5876_v32 }
0x2033   :  { %v4958_v19 = vpop.eup %4957 }
0x2034   :  { %2409 = vrot.lane.b32.xlu0 %v4958_v19, %s5076_s24 }
0x2096   :  { %v2311_v36 = vpop.f32.mrf.mxu0 }
0x2097   :  { %v2317_v11 = vadd.f32 %v2311_v36, %v5656_v10 }
0x2098   :  { %v4640_v43 = vpop.f32.mrf.mxu0 }
0x2099   :  { %v2367_v44 = vmul.f32 0.5, %v2317_v11 }
0x209a   :  { %v2314_v55 = vpop.f32.mrf.mxu0 }
0x209b   :  { %v2368_v53 = vsel %vm5187_vm3, %v2317_v11, %v2367_v44 }
0x209c   :  { %4959 = vtanh.f32 %v2368_v53  ;;  %v4641_v3 = vpop.f32.mrf.mxu0 }
0x20a6   :  { %v2410_v42 = vpop.permute.xlu0 %2409 }
0x20a7   :  { %v5883_v4 = vmul.f32 %v2410_v42, %v2395_v38 }
0x20a9   :  { %v4960_v7 = vpop.eup %4959  ;;  %v2473_v20 = vpack.c.bf16 %v5883_v4, %v5883_v4 }
0x20aa   :  { %v2370_v46 = vmul.f32 0.5, %v4960_v7 }
0x20ab   :  { %2475 = vrot.lane.b32.xlu0 %v2473_v20, %s5079_s27 }
0x20ac   :  { %v2371_v47 = vadd.f32 0.5, %v2370_v46 }
0x20ae   :  { %v2372_v10 = vsel %vm5187_vm3, %v4960_v7, %v2371_v47 }
0x20af   :  { %2375 = vrot.lane.b32.xlu1 %v2372_v10, %s5076_s24  ;;  %v2373_v57 = vmul.f32 %v2372_v10, %v5852_v6 }
0x211d   :  { %v2476_v50 = vpop.permute.xlu0 %2475 }
0x211e   :  { %4663 = vmatmul.mubr.msk.bf16.vlgmr.msra.gmra.mxu1 %vm92_vm0, %v2476_v50 }
0x211f   :  { %4675 = vmatpush3.bf16.msra.mxu1 %v5707_v12  ;;  %4678 = vmatprep.mubr.msk.bf16.mxu1 %vm5081_vm4, %v5080_v62 }
0x2120   :  { %4676 = vmatprep.subr.bf16.mxu1 %v5080_v62 }
0x2121   :  { %v2376_v52 = vpop.permute.xlu1 %2375 }
0x2122   :  { %v2378_v14 = vmul.f32 %v2376_v52, %v2372_v10 }
0x2123   :  { %4677 = vmatpush3.bf16.msra.mxu1 %v5713_v1 }
0x2124   :  { %2380 = vrot.lane.b32.xlu1 %v2378_v14, %s5079_s27  ;;  %4690 = vmatprep.subr.bf16.mxu1 %v5080_v62 }
0x2196   :  { %v2381_v16 = vpop.permute.xlu1 %2380 }
0x2197   :  { %v5900_v26 = vadd.f32 %v2381_v16, %v2373_v57 }
0x2199   :  { %4961 = vtanh.f32 %v5900_v26 }
0x21a6   :  { %v4962_v17 = vpop.eup %4961 }
0x21a7   :  { %2386 = vrot.lane.b32.xlu1 %v4962_v17, %s5076_s24 }
0x21de   :  { %v2514_v56 = vpop.f32.mrf.mxu1 }
0x21df   :  { %v2520_v59 = vadd.f32 %v2514_v56, %v5685_v33 }
0x21e0   :  { %v4664_v18 = vpop.f32.mrf.mxu1 }
0x21e1   :  { %v2544_v60 = vmul.f32 0.5, %v2520_v59 }
0x21e2   :  { %v2517_v23 = vpop.f32.mrf.mxu1 }
0x21e3   :  { %v2545_v27 = vsel %vm5187_vm3, %v2520_v59, %v2544_v60 }
0x21e4   :  { %4963 = vtanh.f32 %v2545_v27  ;;  %v4665_v30 = vpop.f32.mrf.mxu1 }
0x21f1   :  { %v4964_v6 = vpop.eup %4963 }
0x21f2   :  { %v2547_v31 = vmul.f32 0.5, %v4964_v6 }
0x21f4   :  { %v2548_v61 = vadd.f32 0.5, %v2547_v31 }
0x21f6   :  { %v2549_v49 = vsel %vm5187_vm3, %v4964_v6, %v2548_v61 }
0x21f7   :  { %2552 = vrot.lane.b32.xlu0 %v2549_v49, %s5076_s24  ;;  %v2550_v39 = vmul.f32 %v2549_v49, %v5876_v32 }
0x2219   :  { %v2387_v54 = vpop.permute.xlu1 %2386 }
0x221a   :  { %v5910_v37 = vmul.f32 %v2387_v54, %v2372_v10 }
0x221c   :  { %v2424_v33 = vpack.c.bf16 %v5910_v37, %v5910_v37 }
0x221e   :  { %2426 = vrot.lane.b32.xlu1 %v2424_v33, %s5079_s27 }
0x2269   :  { %v2553_v38 = vpop.permute.xlu0 %2552 }
0x226a   :  { %v2555_v25 = vmul.f32 %v2553_v38, %v2549_v49 }
0x226c   :  { %2557 = vrot.lane.b32.xlu0 %v2555_v25, %s5079_s27 }
0x2290   :  { %v2427_v29 = vpop.permute.xlu1 %2426 }
0x2291   :  { %4655 = vmatmul.mubr.msk.bf16.vlgmr.msra.gmra.mxu0 %vm92_vm0, %v2427_v29 }
0x2292   :  { %4667 = vmatpush3.bf16.msra.mxu0 %v5751_v63  ;;  %4670 = vmatprep.mubr.msk.bf16.mxu0 %vm5081_vm4, %v5080_v62 }
0x2293   :  { %4668 = vmatprep.subr.bf16.mxu0 %v5080_v62 }
0x2296   :  { %4669 = vmatpush3.bf16.msra.mxu0 %v5757_v34 }
0x2297   :  { %4682 = vmatprep.subr.bf16.mxu0 %v5080_v62 }
0x22de   :  { %v2558_v58 = vpop.permute.xlu0 %2557 }
0x22df   :  { %v5924_v40 = vadd.f32 %v2558_v58, %v2550_v39 }
0x22e1   :  { %4965 = vtanh.f32 %v5924_v40 }
0x22ee   :  { %v4966_v41 = vpop.eup %4965 }
0x22ef   :  { %2563 = vrot.lane.b32.xlu0 %v4966_v41, %s5076_s24 }
0x2351   :  { %v2465_v13 = vpop.f32.mrf.mxu0 }
0x2352   :  { %v2471_v19 = vadd.f32 %v2465_v13, %v5665_v48 }
0x2353   :  { %v4656_v36 = vpop.f32.mrf.mxu0 }
0x2354   :  { %v2521_v11 = vmul.f32 0.5, %v2471_v19 }
0x2355   :  { %v2468_v43 = vpop.f32.mrf.mxu0 }
0x2356   :  { %v2522_v44 = vsel %vm5187_vm3, %v2471_v19, %v2521_v11 }
0x2357   :  { %4967 = vtanh.f32 %v2522_v44  ;;  %v4657_v55 = vpop.f32.mrf.mxu0 }
0x2361   :  { %v2564_v32 = vpop.permute.xlu0 %2563 }
0x2362   :  { %v5931_v53 = vmul.f32 %v2564_v32, %v2549_v49 }
0x2364   :  { %v4968_v3 = vpop.eup %4967  ;;  %v2627_v42 = vpack.c.bf16 %v5931_v53, %v5931_v53 }
0x2365   :  { %v2524_v7 = vmul.f32 0.5, %v4968_v3 }
0x2366   :  { %2629 = vrot.lane.b32.xlu0 %v2627_v42, %s5079_s27 }
0x2367   :  { %v2525_v20 = vadd.f32 0.5, %v2524_v7 }
0x2369   :  { %v2526_v48 = vsel %vm5187_vm3, %v4968_v3, %v2525_v20 }
0x236a   :  { %2529 = vrot.lane.b32.xlu1 %v2526_v48, %s5076_s24  ;;  %v2527_v50 = vmul.f32 %v2526_v48, %v5900_v26 }
0x23d8   :  { %v2630_v46 = vpop.permute.xlu0 %2629 }
0x23d9   :  { %4679 = vmatmul.mubr.msk.bf16.vlgmr.msra.gmra.mxu1 %vm92_vm0, %v2630_v46 }
0x23da   :  { %4691 = vmatpush3.bf16.msra.mxu1 %v5707_v12  ;;  %4694 = vmatprep.mubr.msk.bf16.mxu1 %vm5081_vm4, %v5080_v62 }
0x23db   :  { %4692 = vmatprep.subr.bf16.mxu1 %v5080_v62 }
0x23dc   :  { %v2530_v47 = vpop.permute.xlu1 %2529 }
0x23dd   :  { %v2532_v10 = vmul.f32 %v2530_v47, %v2526_v48 }
0x23de   :  { %4693 = vmatpush3.bf16.msra.mxu1 %v5713_v1 }
0x23df   :  { %2534 = vrot.lane.b32.xlu1 %v2532_v10, %s5079_s27  ;;  %4706 = vmatprep.subr.bf16.mxu1 %v5080_v62 }
0x2451   :  { %v2535_v52 = vpop.permute.xlu1 %2534 }
0x2452   :  { %v5948_v14 = vadd.f32 %v2535_v52, %v2527_v50 }
0x2454   :  { %4969 = vtanh.f32 %v5948_v14 }
0x2461   :  { %v4970_v57 = vpop.eup %4969 }
0x2462   :  { %2540 = vrot.lane.b32.xlu1 %v4970_v57, %s5076_s24 }
0x2499   :  { %v2668_v16 = vpop.f32.mrf.mxu1 }
0x249a   :  { %v2674_v17 = vadd.f32 %v2668_v16, %v5679_v22 }
0x249b   :  { %v4680_v56 = vpop.f32.mrf.mxu1 }
0x249c   :  { %v2698_v59 = vmul.f32 0.5, %v2674_v17 }
0x249d   :  { %v2671_v18 = vpop.f32.mrf.mxu1 }
0x249e   :  { %v2699_v60 = vsel %vm5187_vm3, %v2674_v17, %v2698_v59 }
0x249f   :  { %4971 = vtanh.f32 %v2699_v60  ;;  %v4681_v23 = vpop.f32.mrf.mxu1 }
0x24ac   :  { %v4972_v26 = vpop.eup %4971 }
0x24ad   :  { %v2701_v27 = vmul.f32 0.5, %v4972_v26 }
0x24af   :  { %v2702_v30 = vadd.f32 0.5, %v2701_v27 }
0x24b1   :  { %v2703_v6 = vsel %vm5187_vm3, %v4972_v26, %v2702_v30 }
0x24b2   :  { %2706 = vrot.lane.b32.xlu0 %v2703_v6, %s5076_s24  ;;  %v2704_v38 = vmul.f32 %v2703_v6, %v5924_v40 }
0x24d4   :  { %v2541_v31 = vpop.permute.xlu1 %2540 }
0x24d5   :  { %v5958_v61 = vmul.f32 %v2541_v31, %v2526_v48 }
0x24d7   :  { %v2578_v22 = vpack.c.bf16 %v5958_v61, %v5958_v61 }
0x24d9   :  { %2580 = vrot.lane.b32.xlu1 %v2578_v22, %s5079_s27 }
0x2524   :  { %v2707_v49 = vpop.permute.xlu0 %2706 }
0x2525   :  { %v2709_v54 = vmul.f32 %v2707_v49, %v2703_v6 }
0x2527   :  { %2711 = vrot.lane.b32.xlu0 %v2709_v54, %s5079_s27 }
0x254b   :  { %v2581_v33 = vpop.permute.xlu1 %2580 }
0x254c   :  { %4671 = vmatmul.mubr.msk.bf16.vlgmr.msra.gmra.mxu0 %vm92_vm0, %v2581_v33 }
0x254d   :  { %4683 = vmatpush3.bf16.msra.mxu0 %v5751_v63  ;;  %4686 = vmatprep.mubr.msk.bf16.mxu0 %vm5081_vm4, %v5080_v62 }
0x254e   :  { %4684 = vmatprep.subr.bf16.mxu0 %v5080_v62 }
0x2551   :  { %4685 = vmatpush3.bf16.msra.mxu0 %v5757_v34 }
0x2552   :  { %4698 = vmatprep.subr.bf16.mxu0 %v5080_v62 }
0x2599   :  { %v2712_v25 = vpop.permute.xlu0 %2711 }
0x259a   :  { %v2714_v29 = vadd.f32 %v2712_v25, %v2704_v38 }
0x259c   :  { %4973 = vtanh.f32 %v2714_v29 }
0x25a9   :  { %v4974_v39 = vpop.eup %4973 }
0x25aa   :  { %2717 = vrot.lane.b32.xlu0 %v4974_v39, %s5076_s24 }
0x260c   :  { %v2619_v58 = vpop.f32.mrf.mxu0 }
0x260d   :  { %v2625_v41 = vadd.f32 %v2619_v58, %v5676_v9 }
0x260e   :  { %v4672_v13 = vpop.f32.mrf.mxu0 }
0x260f   :  { %v2675_v19 = vmul.f32 0.5, %v2625_v41 }
0x2610   :  { %v2622_v36 = vpop.f32.mrf.mxu0 }
0x2611   :  { %v2676_v11 = vsel %vm5187_vm3, %v2625_v41, %v2675_v19 }
0x2612   :  { %4975 = vtanh.f32 %v2676_v11  ;;  %v4673_v43 = vpop.f32.mrf.mxu0 }
0x261c   :  { %v2718_v44 = vpop.permute.xlu0 %2717 }
0x261d   :  { %v5976_v55 = vmul.f32 %v2718_v44, %v2703_v6 }
0x261f   :  { %v4976_v40 = vpop.eup %4975  ;;  %v2781_v32 = vpack.c.bf16 %v5976_v55, %v5976_v55 }
0x2620   :  { %v2678_v3 = vmul.f32 0.5, %v4976_v40 }
0x2621   :  { %2783 = vrot.lane.b32.xlu0 %v2781_v32, %s5079_s27 }
0x2622   :  { %v2679_v42 = vadd.f32 0.5, %v2678_v3 }
0x2624   :  { %v2680_v9 = vsel %vm5187_vm3, %v4976_v40, %v2679_v42 }
0x2625   :  { %2683 = vrot.lane.b32.xlu1 %v2680_v9, %s5076_s24  ;;  %v2681_v46 = vmul.f32 %v2680_v9, %v5948_v14 }
0x2693   :  { %v2784_v7 = vpop.permute.xlu0 %2783 }
0x2694   :  { %4695 = vmatmul.mubr.msk.bf16.vlgmr.msra.gmra.mxu1 %vm92_vm0, %v2784_v7 }
0x2695   :  { %4707 = vmatpush3.bf16.msra.mxu1 %v5707_v12  ;;  %4710 = vmatprep.mubr.msk.bf16.mxu1 %vm5081_vm4, %v5080_v62 }
0x2696   :  { %4708 = vmatprep.subr.bf16.mxu1 %v5080_v62 }
0x2697   :  { %v2684_v20 = vpop.permute.xlu1 %2683 }
0x2698   :  { %v2686_v48 = vmul.f32 %v2684_v20, %v2680_v9 }
0x2699   :  { %4709 = vmatpush3.bf16.msra.mxu1 %v5713_v1 }
0x269a   :  { %2688 = vrot.lane.b32.xlu1 %v2686_v48, %s5079_s27 }
0x270c   :  { %v2689_v47 = vpop.permute.xlu1 %2688 }
0x270d   :  { %v2691_v10 = vadd.f32 %v2689_v47, %v2681_v46 }
0x270f   :  { %4977 = vtanh.f32 %v2691_v10 }
0x271c   :  { %v4978_v50 = vpop.eup %4977 }
0x271d   :  { %2694 = vrot.lane.b32.xlu1 %v4978_v50, %s5076_s24 }
0x2754   :  { %v2822_v12 = vpop.f32.mrf.mxu1 }
0x2755   :  { %v2828_v52 = vadd.f32 %v2822_v12, %v5688_v21 }
0x2756   :  { %v4696_v57 = vpop.f32.mrf.mxu1 }
0x2757   :  { %v2852_v16 = vmul.f32 0.5, %v2828_v52 }
0x2758   :  { %v2825_v17 = vpop.f32.mrf.mxu1 }
0x2759   :  { %v2853_v56 = vsel %vm5187_vm3, %v2828_v52, %v2852_v16 }
0x275a   :  { %4979 = vtanh.f32 %v2853_v56  ;;  %v4697_v1 = vpop.f32.mrf.mxu1 }
0x2767   :  { %v4980_v59 = vpop.eup %4979 }
0x2768   :  { %v2855_v18 = vmul.f32 0.5, %v4980_v59 }
0x276a   :  { %v2856_v14 = vadd.f32 0.5, %v2855_v18 }
0x276c   :  { %v2857_v60 = vsel %vm5187_vm3, %v4980_v59, %v2856_v14 }
0x276d   :  { %2860 = vrot.lane.b32.xlu0 %v2857_v60, %s5076_s24  ;;  %v2858_v31 = vmul.f32 %v2857_v60, %v2714_v29 }
0x278f   :  { %v2695_v23 = vpop.permute.xlu1 %2694 }
0x2790   :  { %v5999_v26 = vmul.f32 %v2695_v23, %v2680_v9  ;;  %v4854_v23 = vld [vmem:[#allocation6 + $0x80] sm:$0xff]  }
0x2792   :  { %v2732_v21 = vpack.c.bf16 %v5999_v26, %v5999_v26 }
0x2794   :  { %2734 = vrot.lane.b32.xlu1 %v2732_v21, %s5079_s27 }
0x27df   :  { %v2861_v27 = vpop.permute.xlu0 %2860 }
0x27e0   :  { %v2863_v30 = vmul.f32 %v2861_v27, %v2857_v60 }
0x27e2   :  { %2865 = vrot.lane.b32.xlu0 %v2863_v30, %s5079_s27 }
0x2806   :  { %v2735_v6 = vpop.permute.xlu1 %2734 }
0x2807   :  { %4687 = vmatmul.mubr.msk.bf16.vlgmr.msra.gmra.mxu0 %vm92_vm0, %v2735_v6 }
0x2808   :  { %4699 = vmatpush3.bf16.msra.mxu0 %v5751_v63  ;;  %4702 = vmatprep.mubr.msk.bf16.mxu0 %vm5081_vm4, %v5080_v62 }
0x2809   :  { %4700 = vmatprep.subr.bf16.mxu0 %v5080_v62 }
0x280c   :  { %4701 = vmatpush3.bf16.msra.mxu0 %v5757_v34 }
0x2854   :  { %v2866_v22 = vpop.permute.xlu0 %2865 }
0x2855   :  { %v2868_v49 = vadd.f32 %v2866_v22, %v2858_v31 }
0x2857   :  { %4981 = vtanh.f32 %v2868_v49 }
0x2864   :  { %v4982_v54 = vpop.eup %4981 }
0x2865   :  { %2871 = vrot.lane.b32.xlu0 %v4982_v54, %s5076_s24 }
0x28c7   :  { %v2773_v33 = vpop.f32.mrf.mxu0 }
0x28c8   :  { %v2779_v38 = vadd.f32 %v2773_v33, %v5662_v45 }
0x28c9   :  { %v4688_v25 = vpop.f32.mrf.mxu0 }
0x28ca   :  { %v2829_v39 = vmul.f32 0.5, %v2779_v38 }
0x28cb   :  { %v2776_v63 = vpop.f32.mrf.mxu0 }
0x28cc   :  { %v2830_v58 = vsel %vm5187_vm3, %v2779_v38, %v2829_v39  ;;  %v4856_v38 = vld [vmem:[#allocation6 + $0x90] sm:$0xff]  }
0x28cd   :  { %4983 = vtanh.f32 %v2830_v58  ;;  %v4689_v41 = vpop.f32.mrf.mxu0 }
0x28d7   :  { %v2872_v13 = vpop.permute.xlu0 %2871 }
0x28d8   :  { %v2874_v34 = vmul.f32 %v2872_v13, %v2857_v60  ;;  %v4853_v60 = vld [vmem:[#allocation6 + $0x88] sm:$0xff]  }
0x28d9   :  { %4726 = vmatprep.subr.bf16.mxu1 %v4853_v60 }
0x28da   :  { %v4984_v29 = vpop.eup %4983  ;;  %v2935_v19 = vpack.c.bf16 %v2874_v34, %v2874_v34 }
0x28db   :  { %v2832_v36 = vmul.f32 0.5, %v4984_v29 }
0x28dc   :  { %2937 = vrot.lane.b32.xlu0 %v2935_v19, %s5079_s27 }
0x28dd   :  { %v2833_v11 = vadd.f32 0.5, %v2832_v36 }
0x28df   :  { %v2834_v43 = vsel %vm5187_vm3, %v4984_v29, %v2833_v11 }
0x28e0   :  { %2837 = vrot.lane.b32.xlu1 %v2834_v43, %s5076_s24  ;;  %v2835_v32 = vmul.f32 %v2834_v43, %v2691_v10 }
0x294e   :  { %v2938_v45 = vpop.permute.xlu0 %2937 }
0x294f   :  { %4711 = vmatmul.mubr.msk.bf16.vlgmr.msra.gmra.mxu1 %vm92_vm0, %v2938_v45 }
0x2950   :  { %4727 = vmatpush3.bf16.msra.mxu1 %v4853_v60  ;;  %v4857_v60 = vld [vmem:[#allocation6 + $0xb8] sm:$0xff]  }
0x2951   :  { %4728 = vmatprep.subr.bf16.mxu1 %v4854_v23 }
0x2952   :  { %v2838_v44 = vpop.permute.xlu1 %2837 }
0x2953   :  { %v2840_v40 = vmul.f32 %v2838_v44, %v2834_v43 }
0x2954   :  { %4729 = vmatpush3.bf16.msra.mxu1 %v4854_v23  ;;  %v4858_v23 = vld [vmem:[#allocation6 + $0xb0] sm:$0xff]  }
0x2955   :  { %2842 = vrot.lane.b32.xlu1 %v2840_v40, %s5079_s27  ;;  %4746 = vmatprep.subr.bf16.mxu1 %v5080_v62 }
0x29c7   :  { %v2843_v3 = vpop.permute.xlu1 %2842 }
0x29c8   :  { %v6021_v42 = vadd.f32 %v2843_v3, %v2835_v32 }
0x29ca   :  { %4985 = vtanh.f32 %v6021_v42 }
0x29d7   :  { %v4986_v9 = vpop.eup %4985 }
0x29d8   :  { %2848 = vrot.lane.b32.xlu1 %v4986_v9, %s5076_s24 }
0x29dc   :  { %2106 = vrot.lane.b32.xlu1 %v5814_v8, %s5079_s27 }
0x29e0   :  { %2414 = vrot.lane.b32.xlu1 %v5910_v37, %s5079_s27 }
0x2a0f   :  { %v2976_v7 = vpop.f32.mrf.mxu1 }
0x2a10   :  { %v2982_v20 = vadd.f32 %v2976_v7, %v5682_v28 }
0x2a11   :  { %v4712_v48 = vpop.f32.mrf.mxu1 }
0x2a12   :  { %v3006_v46 = vmul.f32 0.5, %v2982_v20 }
0x2a13   :  { %v2979_v47 = vpop.f32.mrf.mxu1 }
0x2a14   :  { %v3007_v10 = vsel %vm5187_vm3, %v2982_v20, %v3006_v46  ;;  %v6075_v46 = vld [vmem:[%s6333_s3 + $0x4] ss:$0 sm:$0xff] }
0x2a15   :  { %4987 = vtanh.f32 %v3007_v10  ;;  %v4713_v50 = vpop.f32.mrf.mxu1 }
0x2a22   :  { %v4988_v12 = vpop.eup %4987 }
0x2a23   :  { %v3009_v52 = vmul.f32 0.5, %v4988_v12 }
0x2a25   :  { %v3010_v57 = vadd.f32 0.5, %v3009_v52 }
0x2a27   :  { %v3011_v8 = vsel %vm5187_vm3, %v4988_v12, %v3010_v57 }
0x2a28   :  { %3014 = vrot.lane.b32.xlu0 %v3011_v8, %s5076_s24  ;;  %v3012_v1 = vmul.f32 %v3011_v8, %v2868_v49 }
0x2a4a   :  { %v2849_v37 = vpop.permute.xlu1 %2848 }
0x2a4b   :  { %v6045_v21 = vmul.f32 %v2849_v37, %v2834_v43 }
0x2a4d   :  { %v2886_v27 = vpack.c.bf16 %v6045_v21, %v6045_v21 }
0x2a4e   :  { %v2107_v16 = vpop.permute.xlu1 %2106 }
0x2a4f   :  { %2109 = vst.msk [vmem:[#allocation2 + $0x8] sm:$0xff] %vm92_vm0, %v2107_v16 }
0x2a52   :  { %v2415_v28 = vpop.permute.xlu1 %2414 }
0x2a53   :  { %2417 = vst.msk [vmem:[#allocation2 + $0x18] sm:$0xff] %vm92_vm0, %v2415_v28 }
0x2a56   :  { %v3040_v49 = vld [vmem:[#allocation2 + $0x8] sm:$0xff] }
0x2a5a   :  { %v3042_v63 = vld [vmem:[#allocation2 + $0x18] sm:$0xff] }
0x2a9a   :  { %v3015_v17 = vpop.permute.xlu0 %3014 }
0x2a9b   :  { %v3017_v56 = vmul.f32 %v3015_v17, %v3011_v8 }
0x2a9d   :  { %3019 = vrot.lane.b32.xlu0 %v3017_v56, %s5079_s27 }
0x2b0f   :  { %v3020_v59 = vpop.permute.xlu0 %3019 }
0x2b10   :  { %v3022_v18 = vadd.f32 %v3020_v59, %v3012_v1 }
0x2b12   :  { %4989 = vtanh.f32 %v3022_v18 }
0x2b1f   :  { %v4990_v14 = vpop.eup %4989 }
0x2b20   :  { %3025 = vrot.lane.b32.xlu0 %v4990_v14, %s5076_s24 }
0x2b24   :  { %1928 = vrot.lane.b32.xlu0 %v5765_v2, %s5079_s27  ;;  %v4855_v2 = vld [vmem:[#allocation6 + $0x98] sm:$0xff]  }
0x2b25   :  { %4714 = vmatprep.subr.bf16.mxu0 %v4855_v2 }
0x2b28   :  { %2881 = vrot.lane.b32.xlu0 %v2874_v34, %s5079_s27 }
0x2b2c   :  { %2260 = vrot.lane.b32.xlu0 %v5862_v15, %s5079_s27 }
0x2b30   :  { %2573 = vrot.lane.b32.xlu0 %v5931_v53, %s5079_s27 }
0x2b34   :  { %2888 = vrot.lane.b32.xlu0 %v2886_v27, %s5079_s27 }
0x2b92   :  { %v3026_v30 = vpop.permute.xlu0 %3025 }
0x2b93   :  { %v3028_v6 = vmul.f32 %v3026_v30, %v3011_v8 }
0x2b95   :  { %3035 = vrot.lane.b32.xlu1 %v3028_v6, %s5079_s27 }
0x2b96   :  { %v1929_v31 = vpop.permute.xlu0 %1928 }
0x2b97   :  { %1931 = vst.msk [vmem:[#allocation2] sm:$0xff] %vm92_vm0, %v1929_v31 }
0x2b99   :  { %2727 = vrot.lane.b32.xlu1 %v5976_v55, %s5079_s27 }
0x2b9a   :  { %v2882_v15 = vpop.permute.xlu0 %2881 }
0x2b9b   :  { %2884 = vst.msk [vmem:[#allocation3 + $0x8] sm:$0xff] %vm92_vm0, %v2882_v15 }
0x2b9e   :  { %v2261_v53 = vpop.permute.xlu0 %2260  ;;  %v3039_v22 = vld [vmem:[#allocation2] sm:$0xff] }
0x2b9f   :  { %2263 = vst.msk [vmem:[#allocation2 + $0x10] sm:$0xff] %vm92_vm0, %v2261_v53  ;;  %v3047_v54 = vpack.c.bf16 %v3040_v49, %v3039_v22 }
0x2ba1   :  { %4730 = vmatprep.mubr.msk.bf16.mxu1 %vm92_vm0, %v3047_v54 }
0x2ba2   :  { %v2574_v33 = vpop.permute.xlu0 %2573  ;;  %v3052_v34 = vld [vmem:[#allocation3 + $0x8] sm:$0xff] }
0x2ba3   :  { %2576 = vst.msk [vmem:[#allocation3 + $0x18] sm:$0xff] %vm92_vm0, %v2574_v33 }
0x2ba6   :  { %v2889_v25 = vpop.permute.xlu0 %2888  ;;  %v3041_v39 = vld [vmem:[#allocation2 + $0x10] sm:$0xff] }
0x2ba7   :  { %4703 = vmatmul.mubr.msk.bf16.vlgmr.msra.gmra.mxu0 %vm92_vm0, %v2889_v25  ;;  %v3048_v55 = vpack.c.bf16 %v3042_v63, %v3041_v39  ;;  %v6120_v39 = vld [vmem:[%s6332_s2 + $0x48] sm:$0xff]  }
0x2ba8   :  { %4715 = vmatpush3.bf16.msra.mxu0 %v4855_v2 }
0x2ba9   :  { %4731 = vmatmul.mubr.msk.bf16.vlgmr.msra.gmra.mxu1 %vm92_vm0, %v3048_v55  ;;  %4716 = vmatprep.subr.bf16.mxu0 %v4856_v38  ;;  %v6127_v55 = vld [vmem:[%s6332_s2 + $0x40] sm:$0xff]  }
0x2baa   :  { %v3054_v36 = vld [vmem:[#allocation3 + $0x18] sm:$0xff] }
0x2bac   :  { %4717 = vmatpush3.bf16.msra.mxu0 %v4856_v38 }
0x2bad   :  { %4738 = vmatprep.subr.bf16.mxu0 %v5080_v62 }
0x2c07   :  { %v3036_v58 = vpop.permute.xlu1 %3035 }
0x2c08   :  { %3038 = vst.msk [vmem:[#allocation3] sm:$0xff] %vm92_vm0, %v3036_v58 }
0x2c0b   :  { %v2728_v41 = vpop.permute.xlu1 %2727 }
0x2c0c   :  { %2730 = vst.msk [vmem:[#allocation3 + $0x10] sm:$0xff] %vm92_vm0, %v2728_v41 }
0x2c0f   :  { %v3051_v13 = vld [vmem:[#allocation3] sm:$0xff] }
0x2c10   :  { %v3059_v29 = vpack.c.bf16 %v3052_v34, %v3051_v13 }
0x2c12   :  { %4718 = vmatprep.mubr.msk.bf16.mxu0 %vm92_vm0, %v3059_v29 }
0x2c13   :  { %v3053_v19 = vld [vmem:[#allocation3 + $0x10] sm:$0xff] }
0x2c14   :  { %v3060_v11 = vpack.c.bf16 %v3054_v36, %v3053_v19 }
0x2c16   :  { %4719 = vmatmul.mubr.msk.bf16.vlgmr.msra.gmra.mxu0 %vm92_vm0, %v3060_v11 }
0x2c17   :  { %4739 = vmatpush3.bf16.msra.mxu0 %v4857_v60 }
0x2c18   :  { %4740 = vmatprep.subr.bf16.mxu0 %v5080_v62 }
0x2c1b   :  { %4741 = vmatpush3.bf16.msra.mxu0 %v4858_v23 }
0x2c1c   :  { %4754 = vmatprep.subr.bf16.mxu0 %v5080_v62 }
0x2c67   :  { %v2927_v43 = vpop.f32.mrf.mxu0 }
0x2c68   :  { %v2933_v45 = vadd.f32 %v2927_v43, %v5668_v5 }
0x2c69   :  { %v4704_v44 = vpop.f32.mrf.mxu0  ;;  %v6068_v3 = vpop.f32.mrf.mxu1 }
0x2c6a   :  { %v2983_v16 = vmul.f32 0.5, %v2933_v45 }
0x2c6b   :  { %v2930_v40 = vpop.f32.mrf.mxu0  ;;  %v3220_v7 = vpop.f32.mrf.mxu1 }
0x2c6c   :  { %v2984_v56 = vsel %vm5187_vm3, %v2933_v45, %v2983_v16 }
0x2c6d   :  { %v4705_v32 = vpop.f32.mrf.mxu0 }
0x2cd6   :  { %v6070_v9 = vpop.f32.mrf.mxu0 }
0x2cd8   :  { %v3131_v20 = vpop.f32.mrf.mxu0 }
0x2cd9   :  { %v3221_v48 = vadd.f32 %v3220_v7, %v3131_v20 }
0x2cda   :  { %v6148_v19 = vpop.f32.mrf.mxu0 }
0x2cdb   :  { %v3259_v47 = vadd.f32 %v6075_v46, %v3221_v48  ;;  %v6162_v48 = vpop.f32.mrf.mxu1 }
0x2cdc   :  { %v3134_v36 = vpop.f32.mrf.mxu0 }
0x2cdd   :  { %v3416_v10 = vmul.f32 0.5, %v3259_v47 }
0x2cdf   :  { %v3417_v5 = vsel %vm5187_vm3, %v3259_v47, %v3416_v10  ;;  %v3223_v47 = vpop.f32.mrf.mxu1 }
0x2ce0   :  { %4991 = vtanh.f32 %v3417_v5  ;;  %v3224_v10 = vadd.f32 %v3223_v47, %v3134_v36 }
0x2ce2   :  { %v3260_v5 = vadd.f32 %v6075_v46, %v3224_v10 }
0x2ced   :  { %v4992_v50 = vpop.eup %4991 }
0x2cee   :  { %v3419_v12 = vmul.f32 0.5, %v4992_v50 }
0x2cf0   :  { %v3420_v52 = vadd.f32 0.5, %v3419_v12 }
0x2cf2   :  { %v3421_v57 = vsel %vm5187_vm3, %v4992_v50, %v3420_v52 }
0x2cf3   :  { %3424 = vrot.lane.b32.xlu1 %v3421_v57, %s5076_s24  ;;  %v3422_v28 = vmul.f32 0.0, %v3421_v57 }
0x2d65   :  { %v3425_v8 = vpop.permute.xlu1 %3424 }
0x2d66   :  { %v3427_v37 = vmul.f32 %v3425_v8, %v3421_v57 }
0x2d68   :  { %3429 = vrot.lane.b32.xlu0 %v3427_v37, %s5079_s27 }
0x2d6c   :  { %2265 = vrot.lane.b32.xlu0 %v5835_v51, %s5079_s27 }
0x2d70   :  { %1933 = vrot.lane.b32.xlu0 %v5724_v0, %s5079_s27 }
0x2dda   :  { %v3430_v17 = vpop.permute.xlu0 %3429 }
0x2ddb   :  { %v6090_v1 = vadd.f32 %v3430_v17, %v3422_v28 }
0x2ddd   :  { %4993 = vtanh.f32 %v6090_v1 }
0x2dde   :  { %4995 = vtanh.f32 %v2984_v56  ;;  %v2266_v59 = vpop.permute.xlu0 %2265 }
0x2ddf   :  { %2268 = vst.msk [vmem:[#allocation3 + $0x28] sm:$0xff] %vm92_vm0, %v2266_v59 }
0x2de2   :  { %v1934_v18 = vpop.permute.xlu0 %1933 }
0x2de3   :  { %1936 = vst.msk [vmem:[#allocation3 + $0x38] sm:$0xff] %vm92_vm0, %v1934_v18 }
0x2de6   :  { %v3056_v22 = vld [vmem:[#allocation3 + $0x28] sm:$0xff] }
0x2dea   :  { %v4994_v51 = vpop.eup %4993  ;;  %v3058_v38 = vld [vmem:[#allocation3 + $0x38] sm:$0xff] }
0x2deb   :  { %v4996_v14 = vpop.eup %4995  ;;  %3435 = vrot.lane.b32.xlu1 %v4994_v51, %s5076_s24  ;;  %v3278_v63 = vpack.c.bf16 %v3058_v38, %v3058_v38 }
0x2dec   :  { %v2986_v0 = vmul.f32 0.5, %v4996_v14 }
0x2dee   :  { %v2987_v27 = vadd.f32 0.5, %v2986_v0 }
0x2def   :  { %2419 = vrot.lane.b32.xlu1 %v5883_v4, %s5079_s27 }
0x2df0   :  { %v6103_v2 = vsel %vm5187_vm3, %v4996_v14, %v2987_v27  ;;  %v4861_v27 = vld [vmem:[#allocation6 + $0xa8] sm:$0xff]  }
0x2df1   :  { %v2989_v41 = vmul.f32 %v6103_v2, %v6021_v42  ;;  %4747 = vmatpush3.bf16.msra.mxu1 %v4861_v27 }
0x2df2   :  { %4748 = vmatprep.subr.bf16.mxu1 %v5080_v62 }
0x2df3   :  { %2111 = vrot.lane.b32.xlu1 %v5786_v24, %s5079_s27 }
0x2df7   :  { %2991 = vrot.lane.b32.xlu1 %v6103_v2, %s5076_s24 }
0x2e5d   :  { %v3436_v4 = vpop.permute.xlu1 %3435 }
0x2e5e   :  { %v3438_v30 = vmul.f32 %v3436_v4, %v3421_v57 }
0x2e60   :  { %v3463_v6 = vpack.c.bf16 %v3438_v30, %v3438_v30  ;;  %v4862_v30 = vld [vmem:[#allocation6 + $0xa0] sm:$0xff]  }
0x2e61   :  { %v2420_v31 = vpop.permute.xlu1 %2419  ;;  %4749 = vmatpush3.bf16.msra.mxu1 %v4862_v30 }
0x2e62   :  { %2422 = vst.msk [vmem:[#allocation3 + $0x20] sm:$0xff] %vm92_vm0, %v2420_v31  ;;  %3465 = vrot.lane.b32.xlu0 %v3463_v6, %s5079_s27  ;;  %4762 = vmatprep.subr.bf16.mxu1 %v5080_v62 }
0x2e65   :  { %v2112_v15 = vpop.permute.xlu1 %2111 }
0x2e66   :  { %2114 = vst.msk [vmem:[#allocation3 + $0x30] sm:$0xff] %vm92_vm0, %v2112_v15 }
0x2e69   :  { %v2992_v24 = vpop.permute.xlu1 %2991  ;;  %v3055_v53 = vld [vmem:[#allocation3 + $0x20] sm:$0xff] }
0x2e6a   :  { %v2994_v49 = vmul.f32 %v2992_v24, %v6103_v2  ;;  %v3061_v54 = vpack.c.bf16 %v3056_v22, %v3055_v53 }
0x2e6c   :  { %4722 = vmatprep.mubr.msk.bf16.mxu0 %vm92_vm0, %v3061_v54  ;;  %2996 = vrot.lane.b32.xlu1 %v2994_v49, %s5079_s27 }
0x2e6d   :  { %v3057_v33 = vld [vmem:[#allocation3 + $0x30] sm:$0xff] }
0x2e6e   :  { %v3062_v25 = vpack.c.bf16 %v3058_v38, %v3057_v33 }
0x2e70   :  { %4723 = vmatmul.mubr.msk.bf16.gmra.mxu0 %vm92_vm0, %v3062_v25 }
0x2e71   :  { %4742 = vmatprep.mubr.msk.bf16.mxu0 %vm5081_vm4, %v5080_v62 }
0x2e78   :  { %4743 = vmatmul.mubr.msk.bf16.vlgmr.msra.gmra.mxu0 %vm92_vm0, %v3278_v63 }
0x2e79   :  { %4755 = vmatpush3.bf16.msra.mxu0 %v6120_v39  ;;  %4758 = vmatprep.mubr.msk.bf16.mxu0 %vm5081_vm4, %v5080_v62 }
0x2e7a   :  { %4756 = vmatprep.subr.bf16.mxu0 %v5080_v62 }
0x2e7d   :  { %4757 = vmatpush3.bf16.msra.mxu0 %v6127_v55 }
0x2e7e   :  { %4770 = vmatprep.subr.bf16.mxu0 %v5080_v62 }
0x2ed4   :  { %v3466_v58 = vpop.permute.xlu0 %3465 }
0x2ed5   :  { %4759 = vmatmul.mubr.msk.bf16.vlgmr.msra.gmra.mxu0 %vm92_vm0, %v3466_v58 }
0x2ed6   :  { %4771 = vmatpush3.bf16.msra.mxu0 %v6120_v39  ;;  %4774 = vmatprep.mubr.msk.bf16.mxu0 %vm5081_vm4, %v5080_v62 }
0x2ed7   :  { %4772 = vmatprep.subr.bf16.mxu0 %v5080_v62 }
0x2eda   :  { %4773 = vmatpush3.bf16.msra.mxu0 %v6127_v55 }
0x2edb   :  { %4786 = vmatprep.subr.bf16.mxu0 %v5080_v62 }
0x2ede   :  { %v2997_v13 = vpop.permute.xlu1 %2996 }
0x2edf   :  { %v2999_v34 = vadd.f32 %v2997_v13, %v2989_v41 }
0x2ee1   :  { %4997 = vtanh.f32 %v2999_v34 }
0x2eee   :  { %v4998_v29 = vpop.eup %4997 }
0x2eef   :  { %3002 = vrot.lane.b32.xlu1 %v4998_v29, %s5076_s24 }
0x2ef3   :  { %2568 = vrot.lane.b32.xlu1 %v5958_v61, %s5079_s27 }
0x2ef7   :  { %2876 = vrot.lane.b32.xlu1 %v6045_v21, %s5079_s27 }
0x2f30   :  { %v6150_v11 = vpop.f32.mrf.mxu0 }
0x2f32   :  { %v6152_v43 = vpop.f32.mrf.mxu0 }
0x2f34   :  { %v6154_v42 = vpop.f32.mrf.mxu0 }
0x2f36   :  { %v6156_v45 = vpop.f32.mrf.mxu0 }
0x2f38   :  { %v6158_v44 = vpop.f32.mrf.mxu0 }
0x2f3a   :  { %v4744_v40 = vpop.f32.mrf.mxu0 }
0x2f3b   :  { %v3229_v40 = vadd.f32 %v6068_v3, %v6070_v9 }
0x2f3c   :  { %v3341_v32 = vpop.f32.mrf.mxu0 }
0x2f3d   :  { %v3261_v32 = vadd.f32 %v6075_v46, %v3229_v40 }
0x2f3e   :  { %v4745_v7 = vpop.f32.mrf.mxu0 }
0x2f61   :  { %v3003_v61 = vpop.permute.xlu1 %3002 }
0x2f62   :  { %v3005_v4 = vmul.f32 %v3003_v61, %v6103_v2 }
0x2f65   :  { %v2569_v20 = vpop.permute.xlu1 %2568 }
0x2f66   :  { %2571 = vst.msk [vmem:[#allocation2 + $0x20] sm:$0xff] %vm92_vm0, %v2569_v20 }
0x2f69   :  { %v2877_v21 = vpop.permute.xlu1 %2876 }
0x2f6a   :  { %2879 = vst.msk [vmem:[#allocation2 + $0x30] sm:$0xff] %vm92_vm0, %v2877_v21 }
0x2f6d   :  { %v3043_v2 = vld [vmem:[#allocation2 + $0x20] sm:$0xff] }
0x2f71   :  { %v3045_v22 = vld [vmem:[#allocation2 + $0x30] sm:$0xff] }
0x2f95   :  { %v3516_v50 = vpop.f32.mrf.mxu0 }
0x2f96   :  { %v3522_v12 = vadd.f32 %v3516_v50, %v3260_v5 }
0x2f97   :  { %v4760_v52 = vpop.f32.mrf.mxu0 }
0x2f98   :  { %v3523_v57 = vmul.f32 0.5, %v3522_v12 }
0x2f99   :  { %v3519_v8 = vpop.f32.mrf.mxu0 }
0x2f9a   :  { %v3524_v37 = vsel %vm5187_vm3, %v3522_v12, %v3523_v57 }
0x2f9b   :  { %4999 = vtanh.f32 %v3524_v37  ;;  %v4761_v16 = vpop.f32.mrf.mxu0 }
0x2fa8   :  { %v5000_v28 = vpop.eup %4999 }
0x2fa9   :  { %v3526_v17 = vmul.f32 0.5, %v5000_v28 }
0x2fab   :  { %v3527_v56 = vadd.f32 0.5, %v3526_v17 }
0x2fad   :  { %v3528_v59 = vsel %vm5187_vm3, %v5000_v28, %v3527_v56 }
0x2fae   :  { %3531 = vrot.lane.b32.xlu0 %v3528_v59, %s5076_s24  ;;  %v3529_v14 = vmul.f32 %v3528_v59, %v6090_v1 }
0x3020   :  { %v3532_v18 = vpop.permute.xlu0 %3531 }
0x3021   :  { %v3534_v51 = vmul.f32 %v3532_v18, %v3528_v59 }
0x3023   :  { %3536 = vrot.lane.b32.xlu0 %v3534_v51, %s5079_s27  ;;  %v3232_v51 = vadd.f32 %v6162_v48, %v6148_v19 }
0x3095   :  { %v3537_v0 = vpop.permute.xlu0 %3536 }
0x3096   :  { %v6172_v60 = vadd.f32 %v3537_v0, %v3529_v14  ;;  %v3262_v14 = vadd.f32 %v6075_v46, %v3232_v51 }
0x3098   :  { %5001 = vtanh.f32 %v6172_v60 }
0x30a5   :  { %v5002_v23 = vpop.eup %5001 }
0x30a6   :  { %3542 = vrot.lane.b32.xlu0 %v5002_v23, %s5076_s24 }
0x30aa   :  { %2722 = vrot.lane.b32.xlu0 %v5999_v26, %s5079_s27 }
0x30ae   :  { %3030 = vrot.lane.b32.xlu0 %v3005_v4, %s5079_s27 }
0x3118   :  { %v3543_v1 = vpop.permute.xlu0 %3542 }
0x3119   :  { %v3545_v6 = vmul.f32 %v3543_v1, %v3528_v59 }
0x311b   :  { %v3547_v31 = vpack.c.bf16 %v3545_v6, %v3545_v6 }
0x311c   :  { %v2723_v15 = vpop.permute.xlu0 %2722 }
0x311d   :  { %2725 = vst.msk [vmem:[#allocation2 + $0x28] sm:$0xff] %vm92_vm0, %v2723_v15  ;;  %3549 = vrot.lane.b32.xlu1 %v3547_v31, %s5079_s27 }
0x3120   :  { %v3031_v26 = vpop.permute.xlu0 %3030 }
0x3121   :  { %3033 = vst.msk [vmem:[#allocation2 + $0x38] sm:$0xff] %vm92_vm0, %v3031_v26 }
0x3124   :  { %v3044_v24 = vld [vmem:[#allocation2 + $0x28] sm:$0xff] }
0x3125   :  { %v3049_v53 = vpack.c.bf16 %v3044_v24, %v3043_v2 }
0x3127   :  { %4734 = vmatprep.mubr.msk.bf16.mxu1 %vm92_vm0, %v3049_v53 }
0x3128   :  { %v3046_v49 = vld [vmem:[#allocation2 + $0x38] sm:$0xff] }
0x3129   :  { %v3050_v54 = vpack.c.bf16 %v3046_v49, %v3045_v22  ;;  %v3276_v33 = vpack.c.bf16 %v3046_v49, %v3046_v49 }
0x312b   :  { %4735 = vmatmul.mubr.msk.bf16.gmra.mxu1 %vm92_vm0, %v3050_v54 }
0x312c   :  { %4750 = vmatprep.mubr.msk.bf16.mxu1 %vm5081_vm4, %v5080_v62 }
0x3133   :  { %4751 = vmatmul.mubr.msk.bf16.vlgmr.msra.gmra.mxu1 %vm92_vm0, %v3276_v33 }
0x3134   :  { %4763 = vmatpush3.bf16.msra.mxu1 %v6120_v39  ;;  %4766 = vmatprep.mubr.msk.bf16.mxu1 %vm5081_vm4, %v5080_v62 }
0x3135   :  { %4764 = vmatprep.subr.bf16.mxu1 %v5080_v62 }
0x3138   :  { %4765 = vmatpush3.bf16.msra.mxu1 %v6127_v55 }
0x3139   :  { %4778 = vmatprep.subr.bf16.mxu1 %v5080_v62 }
0x318f   :  { %v3550_v38 = vpop.permute.xlu1 %3549 }
0x3190   :  { %4767 = vmatmul.mubr.msk.bf16.vlgmr.msra.gmra.mxu1 %vm92_vm0, %v3550_v38 }
0x3191   :  { %4779 = vmatpush3.bf16.msra.mxu1 %v6120_v39  ;;  %4782 = vmatprep.mubr.msk.bf16.mxu1 %vm5081_vm4, %v5080_v62 }
0x3192   :  { %4780 = vmatprep.subr.bf16.mxu1 %v5080_v62 }
0x3195   :  { %4781 = vmatpush3.bf16.msra.mxu1 %v6127_v55 }
0x3196   :  { %4794 = vmatprep.subr.bf16.mxu1 %v5080_v62 }
0x31eb   :  { %v6203_v25 = vpop.f32.mrf.mxu1 }
0x31ed   :  { %v6205_v63 = vpop.f32.mrf.mxu1 }
0x31ef   :  { %v6207_v58 = vpop.f32.mrf.mxu1 }
0x31f1   :  { %v6209_v41 = vpop.f32.mrf.mxu1 }
0x31f3   :  { %v6211_v13 = vpop.f32.mrf.mxu1 }
0x31f5   :  { %v4752_v34 = vpop.f32.mrf.mxu1 }
0x31f6   :  { %v3237_v34 = vadd.f32 %v6205_v63, %v6152_v43 }
0x31f7   :  { %v3396_v29 = vpop.f32.mrf.mxu1 }
0x31f8   :  { %v3263_v29 = vadd.f32 %v6075_v46, %v3237_v34 }
0x31f9   :  { %v4753_v36 = vpop.f32.mrf.mxu1 }
0x3250   :  { %v3588_v7 = vpop.f32.mrf.mxu1 }
0x3251   :  { %v3594_v61 = vadd.f32 %v3588_v7, %v3261_v32 }
0x3252   :  { %v4768_v20 = vpop.f32.mrf.mxu1 }
0x3253   :  { %v3595_v21 = vmul.f32 0.5, %v3594_v61 }
0x3254   :  { %v3591_v47 = vpop.f32.mrf.mxu1 }
0x3255   :  { %v3596_v10 = vsel %vm5187_vm3, %v3594_v61, %v3595_v21 }
0x3256   :  { %5003 = vtanh.f32 %v3596_v10  ;;  %v4769_v5 = vpop.f32.mrf.mxu1 }
0x3263   :  { %v5004_v50 = vpop.eup %5003 }
0x3264   :  { %v3598_v12 = vmul.f32 0.5, %v5004_v50 }
0x3266   :  { %v3599_v52 = vadd.f32 0.5, %v3598_v12 }
0x3268   :  { %v3600_v57 = vsel %vm5187_vm3, %v5004_v50, %v3599_v52 }
0x3269   :  { %3603 = vrot.lane.b32.xlu0 %v3600_v57, %s5076_s24  ;;  %v3601_v8 = vmul.f32 %v3600_v57, %v6172_v60 }
0x32db   :  { %v3604_v3 = vpop.permute.xlu0 %3603 }
0x32dc   :  { %v3606_v9 = vmul.f32 %v3604_v3, %v3600_v57 }
0x32de   :  { %3608 = vrot.lane.b32.xlu1 %v3606_v9, %s5079_s27 }
0x3350   :  { %v3609_v37 = vpop.permute.xlu1 %3608 }
0x3351   :  { %v3611_v16 = vadd.f32 %v3609_v37, %v3601_v8 }
0x3353   :  { %5005 = vtanh.f32 %v3611_v16 }
0x3360   :  { %v5006_v28 = vpop.eup %5005 }
0x3361   :  { %3614 = vrot.lane.b32.xlu0 %v5006_v28, %s5076_s24  ;;  %v3240_v28 = vadd.f32 %v6209_v41, %v6156_v45 }
0x33d3   :  { %v3615_v17 = vpop.permute.xlu0 %3614 }
0x33d4   :  { %v3617_v56 = vmul.f32 %v3615_v17, %v3600_v57  ;;  %v3264_v17 = vadd.f32 %v6075_v46, %v3240_v28 }
0x33d6   :  { %v3619_v59 = vpack.c.bf16 %v3617_v56, %v3617_v56 }
0x33d8   :  { %3621 = vrot.lane.b32.xlu1 %v3619_v59, %s5079_s27 }
0x344a   :  { %v3622_v18 = vpop.permute.xlu1 %3621 }
0x344b   :  { %4775 = vmatmul.mubr.msk.bf16.vlgmr.msra.gmra.mxu0 %vm92_vm0, %v3622_v18 }
0x344c   :  { %4787 = vmatpush3.bf16.msra.mxu0 %v6120_v39  ;;  %4790 = vmatprep.mubr.msk.bf16.mxu0 %vm5081_vm4, %v5080_v62 }
0x344d   :  { %4788 = vmatprep.subr.bf16.mxu0 %v5080_v62 }
0x3450   :  { %4789 = vmatpush3.bf16.msra.mxu0 %v6127_v55 }
0x3451   :  { %4802 = vmatprep.subr.bf16.mxu0 %v5080_v62 }
0x350b   :  { %v3660_v0 = vpop.f32.mrf.mxu0 }
0x350c   :  { %v3666_v60 = vadd.f32 %v3660_v0, %v3262_v14 }
0x350d   :  { %v4776_v23 = vpop.f32.mrf.mxu0 }
0x350e   :  { %v3667_v27 = vmul.f32 0.5, %v3666_v60 }
0x350f   :  { %v3663_v4 = vpop.f32.mrf.mxu0 }
0x3510   :  { %v3668_v30 = vsel %vm5187_vm3, %v3666_v60, %v3667_v27 }
0x3511   :  { %5007 = vtanh.f32 %v3668_v30  ;;  %v4777_v1 = vpop.f32.mrf.mxu0 }
0x351e   :  { %v5008_v6 = vpop.eup %5007 }
0x351f   :  { %v3670_v31 = vmul.f32 0.5, %v5008_v6 }
0x3521   :  { %v3671_v15 = vadd.f32 0.5, %v3670_v31 }
0x3523   :  { %v3672_v26 = vsel %vm5187_vm3, %v5008_v6, %v3671_v15 }
0x3524   :  { %3675 = vrot.lane.b32.xlu0 %v3672_v26, %s5076_s24  ;;  %v3673_v2 = vmul.f32 %v3672_v26, %v3611_v16 }
0x3596   :  { %v3676_v19 = vpop.permute.xlu0 %3675 }
0x3597   :  { %v3678_v48 = vmul.f32 %v3676_v19, %v3672_v26 }
0x3599   :  { %3680 = vrot.lane.b32.xlu1 %v3678_v48, %s5079_s27  ;;  %v3245_v48 = vadd.f32 %v6203_v25, %v6150_v11 }
0x360b   :  { %v3681_v24 = vpop.permute.xlu1 %3680 }
0x360c   :  { %v3683_v53 = vadd.f32 %v3681_v24, %v3673_v2  ;;  %v3265_v2 = vadd.f32 %v6075_v46, %v3245_v48 }
0x360e   :  { %5009 = vtanh.f32 %v3683_v53 }
0x361b   :  { %v5010_v22 = vpop.eup %5009 }
0x361c   :  { %3686 = vrot.lane.b32.xlu0 %v5010_v22, %s5076_s24 }
0x368e   :  { %v3687_v49 = vpop.permute.xlu0 %3686 }
0x368f   :  { %v3689_v54 = vmul.f32 %v3687_v49, %v3672_v26 }
0x3691   :  { %v3691_v33 = vpack.c.bf16 %v3689_v54, %v3689_v54 }
0x3693   :  { %3693 = vrot.lane.b32.xlu1 %v3691_v33, %s5079_s27 }
0x3705   :  { %v3694_v38 = vpop.permute.xlu1 %3693 }
0x3706   :  { %4783 = vmatmul.mubr.msk.bf16.vlgmr.msra.gmra.mxu1 %vm92_vm0, %v3694_v38 }
0x3707   :  { %4795 = vmatpush3.bf16.msra.mxu1 %v6120_v39  ;;  %4798 = vmatprep.mubr.msk.bf16.mxu1 %vm5081_vm4, %v5080_v62 }
0x3708   :  { %4796 = vmatprep.subr.bf16.mxu1 %v5080_v62 }
0x370b   :  { %4797 = vmatpush3.bf16.msra.mxu1 %v6127_v55 }
0x370c   :  { %4810 = vmatprep.subr.bf16.mxu1 %v5080_v62 }
0x37c6   :  { %v3732_v36 = vpop.f32.mrf.mxu1 }
0x37c7   :  { %v3738_v40 = vadd.f32 %v3732_v36, %v3263_v29 }
0x37c8   :  { %v4784_v32 = vpop.f32.mrf.mxu1 }
0x37c9   :  { %v3739_v7 = vmul.f32 0.5, %v3738_v40  ;;  %v3394_v32 = vadd.f32 %v6211_v13, %v6158_v44 }
0x37ca   :  { %v3735_v61 = vpop.f32.mrf.mxu1 }
0x37cb   :  { %v3740_v20 = vsel %vm5187_vm3, %v3738_v40, %v3739_v7  ;;  %v4232_v7 = vld [vmem:[%s6333_s3 + $0x5] ss:$0 sm:$0xff] }
0x37cc   :  { %5011 = vtanh.f32 %v3740_v20  ;;  %v4785_v21 = vpop.f32.mrf.mxu1  ;;  %v3407_v61 = vadd.f32 %v4232_v7, %v3394_v32 }
0x37ce   :  { %v3439_v20 = vmul.f32 0.5, %v3407_v61 }
0x37d0   :  { %v3440_v21 = vsel %vm5187_vm3, %v3407_v61, %v3439_v20 }
0x37d9   :  { %v5012_v47 = vpop.eup %5011 }
0x37da   :  { %v3742_v10 = vmul.f32 0.5, %v5012_v47 }
0x37dc   :  { %v3743_v5 = vadd.f32 0.5, %v3742_v10 }
0x37de   :  { %v3744_v50 = vsel %vm5187_vm3, %v5012_v47, %v3743_v5 }
0x37df   :  { %3747 = vrot.lane.b32.xlu0 %v3744_v50, %s5076_s24  ;;  %v3745_v12 = vmul.f32 %v3744_v50, %v3683_v53 }
0x3851   :  { %v3748_v43 = vpop.permute.xlu0 %3747 }
0x3852   :  { %v3750_v63 = vmul.f32 %v3748_v43, %v3744_v50 }
0x3854   :  { %3752 = vrot.lane.b32.xlu1 %v3750_v63, %s5079_s27 }
0x38c6   :  { %v3753_v52 = vpop.permute.xlu1 %3752 }
0x38c7   :  { %v3755_v57 = vadd.f32 %v3753_v52, %v3745_v12 }
0x38c9   :  { %5013 = vtanh.f32 %v3755_v57 }
0x38d6   :  { %v5014_v3 = vpop.eup %5013 }
0x38d7   :  { %3758 = vrot.lane.b32.xlu0 %v5014_v3, %s5076_s24 }
0x3949   :  { %v3759_v9 = vpop.permute.xlu0 %3758 }
0x394a   :  { %v3761_v8 = vmul.f32 %v3759_v9, %v3744_v50 }
0x394c   :  { %v3763_v37 = vpack.c.bf16 %v3761_v8, %v3761_v8 }
0x394e   :  { %3765 = vrot.lane.b32.xlu1 %v3763_v37, %s5079_s27 }
0x39c0   :  { %v3766_v16 = vpop.permute.xlu1 %3765 }
0x39c1   :  { %4791 = vmatmul.mubr.msk.bf16.vlgmr.msra.gmra.mxu0 %vm92_vm0, %v3766_v16 }
0x39c2   :  { %4803 = vmatpush3.bf16.msra.mxu0 %v6120_v39  ;;  %4806 = vmatprep.mubr.msk.bf16.mxu0 %vm5081_vm4, %v5080_v62 }
0x39c3   :  { %4804 = vmatprep.subr.bf16.mxu0 %v5080_v62 }
0x39c6   :  { %4805 = vmatpush3.bf16.msra.mxu0 %v6127_v55 }
0x39c7   :  { %4818 = vmatprep.subr.bf16.mxu0 %v5080_v62 }
0x3a81   :  { %v3804_v56 = vpop.f32.mrf.mxu0 }
0x3a82   :  { %v3810_v59 = vadd.f32 %v3804_v56, %v3264_v17  ;;  %v4863_v56 = vld [vmem:[#allocation8 + $0x18] sm:$0xff]  }
0x3a83   :  { %v4792_v18 = vpop.f32.mrf.mxu0 }
0x3a84   :  { %v3811_v51 = vmul.f32 0.5, %v3810_v59 }
0x3a85   :  { %v3807_v14 = vpop.f32.mrf.mxu0 }
0x3a86   :  { %v3812_v39 = vsel %vm5187_vm3, %v3810_v59, %v3811_v51  ;;  %v4864_v59 = vld [vmem:[#allocation8 + $0x10] sm:$0xff]  }
0x3a87   :  { %5015 = vtanh.f32 %v3812_v39  ;;  %v4793_v0 = vpop.f32.mrf.mxu0  ;;  %v3248_v39 = vadd.f32 %v6207_v58, %v6154_v42 }
0x3a89   :  { %v3266_v0 = vadd.f32 %v6075_v46, %v3248_v39 }
0x3a94   :  { %v5016_v60 = vpop.eup %5015 }
0x3a95   :  { %v3814_v23 = vmul.f32 0.5, %v5016_v60 }
0x3a97   :  { %v3815_v55 = vadd.f32 0.5, %v3814_v23 }
0x3a99   :  { %v3816_v27 = vsel %vm5187_vm3, %v5016_v60, %v3815_v55 }
0x3a9a   :  { %3819 = vrot.lane.b32.xlu0 %v3816_v27, %s5076_s24  ;;  %v3817_v4 = vmul.f32 %v3816_v27, %v3755_v57 }
0x3b0c   :  { %v3820_v45 = vpop.permute.xlu0 %3819 }
0x3b0d   :  { %v3822_v41 = vmul.f32 %v3820_v45, %v3816_v27 }
0x3b0f   :  { %3824 = vrot.lane.b32.xlu1 %v3822_v41, %s5079_s27 }
0x3b81   :  { %v3825_v30 = vpop.permute.xlu1 %3824 }
0x3b82   :  { %v3827_v1 = vadd.f32 %v3825_v30, %v3817_v4 }
0x3b84   :  { %5017 = vtanh.f32 %v3827_v1 }
0x3b91   :  { %v5018_v6 = vpop.eup %5017 }
0x3b92   :  { %3830 = vrot.lane.b32.xlu0 %v5018_v6, %s5076_s24 }
0x3c04   :  { %v3831_v31 = vpop.permute.xlu0 %3830 }
0x3c05   :  { %v3833_v15 = vmul.f32 %v3831_v31, %v3816_v27 }
0x3c07   :  { %v3835_v26 = vpack.c.bf16 %v3833_v15, %v3833_v15 }
0x3c09   :  { %3837 = vrot.lane.b32.xlu1 %v3835_v26, %s5079_s27 }
0x3c7b   :  { %v3838_v19 = vpop.permute.xlu1 %3837 }
0x3c7c   :  { %4799 = vmatmul.mubr.msk.bf16.vlgmr.msra.gmra.mxu1 %vm92_vm0, %v3838_v19 }
0x3c7d   :  { %4814 = vmatprep.mubr.msk.bf16.mxu1 %vm5081_vm4, %v5080_v62  ;;  %4811 = vmatpush3.bf16.msra.mxu1 %v4863_v56 }
0x3c7e   :  { %4812 = vmatprep.subr.bf16.mxu1 %v5080_v62 }
0x3c81   :  { %4813 = vmatpush3.bf16.msra.mxu1 %v4864_v59 }
0x3d3c   :  { %v3876_v24 = vpop.f32.mrf.mxu1 }
0x3d3d   :  { %v3882_v53 = vadd.f32 %v3876_v24, %v3265_v2 }
0x3d3e   :  { %v4800_v22 = vpop.f32.mrf.mxu1 }
0x3d3f   :  { %v3883_v49 = vmul.f32 0.5, %v3882_v53  ;;  %v4865_v22 = vld [vmem:[#allocation8 + $0x8] sm:$0xff]  }
0x3d40   :  { %v3879_v54 = vpop.f32.mrf.mxu1 }
0x3d41   :  { %v3884_v33 = vsel %vm5187_vm3, %v3882_v53, %v3883_v49 }
0x3d42   :  { %5019 = vtanh.f32 %v3884_v33  ;;  %v4801_v38 = vpop.f32.mrf.mxu1 }
0x3d43   :  { %5021 = vtanh.f32 %v3440_v21 }
0x3d4f   :  { %v5020_v34 = vpop.eup %5019 }
0x3d50   :  { %v3886_v29 = vmul.f32 0.5, %v5020_v34  ;;  %v5022_v50 = vpop.eup %5021 }
0x3d51   :  { %v3442_v43 = vmul.f32 0.5, %v5022_v50 }
0x3d52   :  { %v3887_v36 = vadd.f32 0.5, %v3886_v29 }
0x3d53   :  { %v3443_v12 = vadd.f32 0.5, %v3442_v43 }
0x3d54   :  { %v3888_v40 = vsel %vm5187_vm3, %v5020_v34, %v3887_v36  ;;  %v4252_v36 = vld [vmem:[%s6335_s5] ss:$0 sm:$0xff] }
0x3d55   :  { %3891 = vrot.lane.b32.xlu0 %v3888_v40, %s5076_s24  ;;  %v3889_v47 = vmul.f32 %v3888_v40, %v3827_v1  ;;  %v3444_v44 = vsel %vm5187_vm3, %v5022_v50, %v3443_v12 }
0x3d56   :  { %v3445_v37 = vmul.f32 0.0, %v3444_v44 }
0x3dc7   :  { %v3892_v11 = vpop.permute.xlu0 %3891 }
0x3dc8   :  { %v3894_v25 = vmul.f32 %v3892_v11, %v3888_v40 }
0x3dca   :  { %3896 = vrot.lane.b32.xlu1 %v3894_v25, %s5079_s27 }
0x3e3c   :  { %v3897_v10 = vpop.permute.xlu1 %3896 }
0x3e3d   :  { %v3899_v5 = vadd.f32 %v3897_v10, %v3889_v47 }
0x3e3f   :  { %5023 = vtanh.f32 %v3899_v5 }
0x3e4c   :  { %v5024_v63 = vpop.eup %5023 }
0x3e4d   :  { %3902 = vrot.lane.b32.xlu0 %v5024_v63, %s5076_s24 }
0x3e51   :  { %3447 = vrot.lane.b32.xlu0 %v3444_v44, %s5076_s24 }
0x3ebf   :  { %v3903_v13 = vpop.permute.xlu0 %3902 }
0x3ec0   :  { %v3905_v52 = vmul.f32 %v3903_v13, %v3888_v40 }
0x3ec2   :  { %v3907_v57 = vpack.c.bf16 %v3905_v52, %v3905_v52 }
0x3ec3   :  { %v3448_v3 = vpop.permute.xlu0 %3447 }
0x3ec4   :  { %v3450_v9 = vmul.f32 %v3448_v3, %v3444_v44  ;;  %3909 = vrot.lane.b32.xlu1 %v3907_v57, %s5079_s27 }
0x3ec6   :  { %3452 = vrot.lane.b32.xlu0 %v3450_v9, %s5079_s27 }
0x3f36   :  { %v3910_v8 = vpop.permute.xlu1 %3909 }
0x3f37   :  { %4807 = vmatmul.mubr.msk.bf16.vlgmr.msra.gmra.mxu0 %vm92_vm0, %v3910_v8 }
0x3f38   :  { %v3453_v16 = vpop.permute.xlu0 %3452  ;;  %4822 = vmatprep.mubr.msk.bf16.mxu0 %vm5081_vm4, %v5080_v62  ;;  %4819 = vmatpush3.bf16.msra.mxu0 %v4865_v22 }
0x3f39   :  { %v3455_v28 = vadd.f32 %v3453_v16, %v3445_v37  ;;  %4820 = vmatprep.subr.bf16.mxu0 %v5080_v62 }
0x3f3b   :  { %5025 = vtanh.f32 %v3455_v28 }
0x3f3c   :  { %4821 = vmatpush3.bf16.msra.mxu0 %v4866_v35 }
0x3f48   :  { %v5026_v17 = vpop.eup %5025 }
0x3f49   :  { %3458 = vrot.lane.b32.xlu0 %v5026_v17, %s5076_s24 }
0x3fbb   :  { %v3459_v18 = vpop.permute.xlu0 %3458 }
0x3fbc   :  { %v3461_v51 = vmul.f32 %v3459_v18, %v3444_v44 }
0x3fbe   :  { %v3983_v14 = vpack.c.bf16 %v3461_v51, %v3461_v51 }
0x3fc0   :  { %3990 = vrot.lane.b32.xlu0 %v3983_v14, %s5079_s27 }
0x3ff7   :  { %v3948_v60 = vpop.f32.mrf.mxu0 }
0x3ff8   :  { %v3954_v23 = vadd.f32 %v3948_v60, %v3266_v0 }
0x3ff9   :  { %v4808_v55 = vpop.f32.mrf.mxu0 }
0x3ffa   :  { %v3955_v27 = vmul.f32 0.5, %v3954_v23 }
0x3ffb   :  { %v3951_v45 = vpop.f32.mrf.mxu0 }
0x3ffc   :  { %v3956_v41 = vsel %vm5187_vm3, %v3954_v23, %v3955_v27 }
0x3ffd   :  { %5027 = vtanh.f32 %v3956_v41  ;;  %v4809_v4 = vpop.f32.mrf.mxu0 }
0x400a   :  { %v5028_v30 = vpop.eup %5027 }
0x400b   :  { %v3958_v1 = vmul.f32 0.5, %v5028_v30 }
0x400d   :  { %v3959_v6 = vadd.f32 0.5, %v3958_v1 }
0x400f   :  { %v3960_v31 = vsel %vm5187_vm3, %v5028_v30, %v3959_v6 }
0x4010   :  { %3963 = vrot.lane.b32.xlu1 %v3960_v31, %s5076_s24  ;;  %v3961_v19 = vmul.f32 %v3960_v31, %v3899_v5 }
0x4032   :  { %v3991_v42 = vpop.permute.xlu0 %3990 }
0x4033   :  { %4815 = vmatmul.mubr.msk.bf16.vlgmr.msra.gmra.mxu1 %vm92_vm0, %v3991_v42 }
0x4082   :  { %v3964_v46 = vpop.permute.xlu1 %3963 }
0x4083   :  { %v3966_v58 = vmul.f32 %v3964_v46, %v3960_v31 }
0x4085   :  { %3968 = vrot.lane.b32.xlu1 %v3966_v58, %s5079_s27 }
0x40f3   :  { %v4041_v15 = vpop.f32.mrf.mxu1 }
0x40f5   :  { %v4816_v26 = vpop.f32.mrf.mxu1 }
0x40f7   :  { %v4044_v48 = vpop.f32.mrf.mxu1  ;;  %v3969_v2 = vpop.permute.xlu1 %3968 }
0x40f8   :  { %v3971_v24 = vadd.f32 %v3969_v2, %v3961_v19 }
0x40f9   :  { %v4817_v53 = vpop.f32.mrf.mxu1 }
0x40fa   :  { %5029 = vtanh.f32 %v3971_v24 }
0x4107   :  { %v5030_v49 = vpop.eup %5029 }
0x4108   :  { %3974 = vrot.lane.b32.xlu1 %v5030_v49, %s5076_s24 }
0x417a   :  { %v3975_v54 = vpop.permute.xlu1 %3974 }
0x417b   :  { %v3977_v33 = vmul.f32 %v3975_v54, %v3960_v31 }
0x417d   :  { %v3978_v38 = vpack.c.bf16 %v3977_v33, %v3977_v33 }
0x417f   :  { %4048 = vrot.lane.b32.xlu1 %v3978_v38, %s5079_s27 }
0x41f1   :  { %v4049_v34 = vpop.permute.xlu1 %4048 }
0x41f2   :  { %4823 = vmatmul.mubr.msk.bf16.vlgmr.msra.gmra.mxu0 %vm92_vm0, %v4049_v34 }
0x42b2   :  { %v4099_v29 = vpop.f32.mrf.mxu0 }
0x42b3   :  { %v4100_v40 = vadd.f32 %v4099_v29, %v4041_v15 }
0x42b4   :  { %v4824_v11 = vpop.f32.mrf.mxu0 }
0x42b5   :  { %v4112_v62 = vadd.f32 %v4252_v36, %v4100_v40 }
0x42b6   :  { %v4102_v25 = vpop.f32.mrf.mxu0 }
0x42b7   :  { %4113 = vst [vmem:[%s6336_s6] sm:$0xff] %v4112_v62 }
0x42b8   :  { %v4825_v32 = vpop.f32.mrf.mxu0 }
0x42b9   :  { %4118 = vsyncpa [#allocation7], 1 }
0x42ba   :  { %4119 = vsyncpa [#allocation9], 1 }

</bundles_post_ra>
